<compile_context>
chip_gen: v7x
topology: tpu7x:2x2x1
jax: 0.10.0
libtpu: 0.0.40
codegen_flags: <defaults>
</compile_context>

<pallas_src>
import numpy as np
import jax
import jax.numpy as jnp
from jax.experimental import pallas as pl
from jax.experimental.pallas import tpu as pltpu

IN_CH = 4          # input channels of conv_1
C_MID = 16         # channels of conv_1..conv_4
L = 94             # conv length (MaxPool1d(2) -> 47 matches Linear(47, 8))
SEG = 96           # rows per packed sample (94 data + 2 zero pad rows)
LP = 47            # pooled length
FC_OUT = 8
GUARD = 2          # guard rows at each end of the shift scratches


def _round_up(a, b):
    return (a + b - 1) // b * b


def _default_group_pack():
    """Samples packed per lane group: 16 on 256-wide-MXU chips, else 8."""
    try:
        kind = jax.devices()[0].device_kind.lower()
    except Exception:
        return 16
    if ("v2" in kind) or ("v3" in kind) or ("v4" in kind) or ("v5" in kind):
        return 8
    return 16


def _make_kernel(num_groups, gp):
    """Kernel for one block of num_groups*gp samples.

    x_ref    : (R, gp*4)       R = num_groups*96 rows, lane = j*4 + in_channel
    wN_ref   : (3, Kin, lanes) block-diagonal (kron) conv tap weights, bf16
    bN_ref   : (1, lanes)      per-channel bias tiled over the packed samples
    mask_ref : (R, 1) bf16     0 on the 2 pad rows of each 96-row segment
    hsum_ref : (lanes, lanes)  block-diag channel-mean matrix (1/16 folded in)
    hrow_ref : (96, lanes)     fc_1 weights placed on the stride-2 pooled rows
    fcb_ref  : (1, lanes)      fc_1 bias tiled over the packed samples
    o_ref    : (NG, lanes)     lane j*16 + o = output o of sample j of group
    sin/sa/sb: bf16 shift scratches with GUARD zero rows at each end
    """
    R = num_groups * SEG
    lanes = gp * C_MID
    in_lanes = gp * IN_CH
    G = GUARD

    def kernel(x_ref, w1_ref, w2_ref, w3_ref, w4_ref,
               b1_ref, b2_ref, b3_ref, b4_ref,
               mask_ref, hsum_ref, hrow_ref, fcb_ref, o_ref,
               sin_ref, sa_ref, sb_ref):
        # Zero the guard rows (rows [0,G) and [G+R, G+R+G)).  Every activation
        # store below covers exactly rows [G, G+R), so the guards stay zero and
        # give correct zero padding for the shifted tap loads.
        zi = jnp.zeros((G, in_lanes), jnp.bfloat16)
        za = jnp.zeros((G, lanes), jnp.bfloat16)
        sin_ref[0:G, :] = zi
        sin_ref[G + R:G + R + G, :] = zi
        sa_ref[0:G, :] = za
        sa_ref[G + R:G + R + G, :] = za
        sb_ref[0:G, :] = za
        sb_ref[G + R:G + R + G, :] = za

        # Segment mask (zeroes the 2 pad rows of each 96-row segment), hoisted
        # to a single broadcast and reused by the three masked layers.
        maskb = jnp.broadcast_to(mask_ref[...], (R, lanes))        # bf16

        def conv(s_ref, w_ref, b_ref, d):
            """3-tap conv: shifted static-slice loads + 3 MXU matmuls."""
            acc = jnp.dot(s_ref[G - d:G - d + R, :], w_ref[0],
                          preferred_element_type=jnp.float32)
            acc = acc + jnp.dot(s_ref[G:G + R, :], w_ref[1],
                                preferred_element_type=jnp.float32)
            acc = acc + jnp.dot(s_ref[G + d:G + d + R, :], w_ref[2],
                                preferred_element_type=jnp.float32)
            return acc + b_ref[...]

        # conv_1 + relu ----------------------------------------------------
        sin_ref[G:G + R, :] = x_ref[...]                           # bf16 input
        a1 = conv(sin_ref, w1_ref, b1_ref, 1)
        sa_ref[G:G + R, :] = jnp.maximum(a1, 0.0).astype(jnp.bfloat16) * maskb

        # conv_2, MaxPool1d(2), relu  (relu/mask commute with the pool max;
        # pooled data stays on the even rows of each segment -> conv_3/conv_4
        # simply use +-2 row shifts).
        a2 = conv(sa_ref, w2_ref, b2_ref, 1)
        sb_ref[G:G + R, :] = jnp.maximum(a2, 0.0).astype(jnp.bfloat16) * maskb
        sa_ref[G:G + R, :] = jnp.maximum(sb_ref[G:G + R, :],
                                         sb_ref[G + 1:G + 1 + R, :])

        # conv_3 + relu on the stride-2 row grid -----------------------------
        a3 = conv(sa_ref, w3_ref, b3_ref, 2)
        sb_ref[G:G + R, :] = jnp.maximum(a3, 0.0).astype(jnp.bfloat16) * maskb

        # conv_4 + relu -------------------------------------------------------
        a4 = conv(sb_ref, w4_ref, b4_ref, 2)
        x4 = jnp.maximum(a4, 0.0).astype(jnp.bfloat16)

        # head: channel mean (block-diag matmul, 1/16 folded in) then fc_1 as
        # a per-row weight table + one per-group row reduction.
        u = jnp.dot(x4, hsum_ref[...], preferred_element_type=jnp.float32)
        um = u.reshape(num_groups, SEG, lanes) * hrow_ref[...]
        o_ref[...] = jnp.sum(um, axis=1) + fcb_ref[...]

    return kernel


def lstm_network_forward(x, params, block_batch=256, group_pack=None):
    """x: (B, IN_CH, 94) float32 (PyTorch NCL layout).  Returns (B, 8)."""
    w1, b1, w2, b2, w3, b3, w4, b4, fcw, fcb = params
    B = x.shape[0]

    gp = _default_group_pack() if group_pack is None else group_pack
    lanes = gp * C_MID
    in_lanes = gp * IN_CH

    BB = min(_round_up(B, gp), _round_up(block_batch, gp))   # samples / block
    if _round_up(B, BB) > BB:          # multi-block: keep output rows 8-aligned
        BB = _round_up(BB, 8 * gp)
    B_pad = _round_up(B, BB)
    NB = B_pad // BB                   # grid size (keep >= 2 on v7x for 2 TCs)
    NG = BB // gp                      # lane groups / block
    R = NG * SEG                       # rows / block

    # ---- input slab: row = group*96 + position, lane = j*4 + channel ----
    xt = jnp.transpose(x, (0, 2, 1)).astype(jnp.float32)           # (B, 94, 4)
    xt = jnp.pad(xt, ((0, B_pad - B), (0, SEG - L), (0, 0)))       # (B_pad,96,4)
    xt = xt.reshape(B_pad // gp, gp, SEG, IN_CH)
    xt = jnp.transpose(xt, (0, 2, 1, 3)).reshape(NB * R, in_lanes)
    xt = xt.astype(jnp.bfloat16)                                   # halve DMA

    # ---- constants (block-diagonal / tiled parameter tables) ----
    def conv_block(w):                   # (Cout, Cin, 3) -> (3, gp*Cin, lanes)
        w = np.asarray(w, np.float32)
        taps = [np.kron(np.eye(gp, dtype=np.float32), w[:, :, k].T)
                for k in range(3)]
        return jnp.asarray(np.stack(taps)).astype(jnp.bfloat16)

    def bias_row(b):                     # (16,) -> (1, lanes)
        return jnp.asarray(np.tile(np.asarray(b, np.float32), gp)[None, :])

    w1b, w2b, w3b, w4b = map(conv_block, (w1, w2, w3, w4))
    b1r, b2r, b3r, b4r = map(bias_row, (b1, b2, b3, b4))

    seg_mask = (np.arange(SEG) < L).astype(np.float32)[:, None]    # (96, 1)
    mask_col = jnp.asarray(np.tile(seg_mask, (NG, 1))).astype(jnp.bfloat16)

    blk = np.zeros((C_MID, C_MID), np.float32)
    blk[:, :FC_OUT] = 1.0 / C_MID                                  # channel mean
    hsum = jnp.asarray(np.kron(np.eye(gp, dtype=np.float32), blk)
                       ).astype(jnp.bfloat16)                      # (lanes,lanes)

    fcw_np = np.asarray(fcw, np.float32)                           # (8, 47)
    hrow = np.zeros((SEG, lanes), np.float32)
    for j in range(gp):                                            # even rows
        hrow[0:2 * LP:2, j * C_MID:j * C_MID + FC_OUT] = fcw_np.T
    hrow = jnp.asarray(hrow)                                       # (96, lanes)

    fcbr = np.zeros((1, lanes), np.float32)
    for j in range(gp):
        fcbr[0, j * C_MID:j * C_MID + FC_OUT] = np.asarray(fcb, np.float32)
    fcbr = jnp.asarray(fcbr)

    def const_spec(a):
        nd = a.ndim
        return pl.BlockSpec(a.shape, lambda b, _nd=nd: (0,) * _nd)

    in_specs = [
        pl.BlockSpec((R, in_lanes), lambda b: (b, 0)),
        const_spec(w1b), const_spec(w2b), const_spec(w3b), const_spec(w4b),
        const_spec(b1r), const_spec(b2r), const_spec(b3r), const_spec(b4r),
        const_spec(mask_col), const_spec(hsum), const_spec(hrow),
        const_spec(fcbr),
    ]

    out = pl.pallas_call(
        _make_kernel(NG, gp),
        out_shape=jax.ShapeDtypeStruct((NB * NG, lanes), jnp.float32),
        grid=(NB,),
        in_specs=in_specs,
        out_specs=pl.BlockSpec((NG, lanes), lambda b: (b, 0)),
        scratch_shapes=[
            pltpu.VMEM((R + 2 * GUARD, in_lanes), jnp.bfloat16),   # input
            pltpu.VMEM((R + 2 * GUARD, lanes), jnp.bfloat16),      # ping
            pltpu.VMEM((R + 2 * GUARD, lanes), jnp.bfloat16),      # pong
        ],
        compiler_params=pltpu.CompilerParams(
            dimension_semantics=("parallel",),
            vmem_limit_bytes=40 * 1024 * 1024),
    )(xt, w1b, w2b, w3b, w4b, b1r, b2r, b3r, b4r, mask_col, hsum, hrow, fcbr)

    # unpack lane-packed output: lane j*16 + o -> sample (group*gp + j), out o
    out = out.reshape(B_pad // gp, gp, C_MID)[:, :, :FC_OUT].reshape(B_pad,
                                                                     FC_OUT)
    return out[:B]


def init_params(key):
    """Deterministic parameter init (PyTorch-style uniform bounds)."""
    ks = jax.random.split(key, 10)

    def u(k, shape, fan_in):
        bound = 1.0 / np.sqrt(fan_in)
        return jax.random.uniform(k, shape, jnp.float32, -bound, bound)

    w1 = u(ks[0], (C_MID, IN_CH, 3), IN_CH * 3)
    b1 = u(ks[1], (C_MID,), IN_CH * 3)
    w2 = u(ks[2], (C_MID, C_MID, 3), C_MID * 3)
    b2 = u(ks[3], (C_MID,), C_MID * 3)
    w3 = u(ks[4], (C_MID, C_MID, 3), C_MID * 3)
    b3 = u(ks[5], (C_MID,), C_MID * 3)
    w4 = u(ks[6], (C_MID, C_MID, 3), C_MID * 3)
    b4 = u(ks[7], (C_MID,), C_MID * 3)
    fcw = u(ks[8], (FC_OUT, LP), LP)
    fcb = u(ks[9], (FC_OUT,), LP)
    return (w1, b1, w2, b2, w3, b3, w4, b4, fcw, fcb)


def ref_forward(x, params):
    """Pure-JAX reference matching the PyTorch forward."""
    w1, b1, w2, b2, w3, b3, w4, b4, fcw, fcb = params

    def conv1d(x, w, b):
        y = jax.lax.conv_general_dilated(
            x, w, window_strides=(1,), padding=[(1, 1)],
            dimension_numbers=("NCH", "OIH", "NCH"),
            precision=jax.lax.Precision.HIGHEST)
        return y + b[None, :, None]

    x1 = jax.nn.relu(conv1d(x, w1, b1))
    x2 = conv1d(x1, w2, b2)
    xp_ = jax.nn.relu(x2.reshape(x2.shape[0], x2.shape[1], LP, 2).max(-1))
    x3 = jax.nn.relu(conv1d(xp_, w3, b3))
    x4 = jax.nn.relu(conv1d(x3, w4, b4))
    m = x4.mean(axis=1)
    return jnp.dot(m, fcw.T, precision=jax.lax.Precision.HIGHEST) + fcb


if __name__ == "__main__":
    key = jax.random.PRNGKey(0)
    kx, kp = jax.random.split(key)
    B = 10
    x = jax.random.normal(kx, (B, IN_CH, L), jnp.float32)   # (B, in_ch, 94)
    params = init_params(kp)

    out = jax.block_until_ready(lstm_network_forward(x, params))
    ref = jax.block_until_ready(ref_forward(x, params))

    assert out.shape == (B, FC_OUT), out.shape
    diff = np.max(np.abs(np.asarray(out) - np.asarray(ref)))
    if not np.allclose(np.asarray(out), np.asarray(ref), rtol=1e-2, atol=1e-2):
        raise AssertionError(
            f"Pallas kernel does not match JAX reference (max abs diff {diff})")
    print("KERNEL_OK")
</pallas_src>

<mosaic_0001>
module attributes {stable_mosaic.version = 11 : i64} {
  func.func @kernel(%arg0: i32, %arg1: memref<96x64xbf16, #tpu.memory_space<vmem>>, %arg2: memref<3x64x256xbf16, #tpu.memory_space<vmem>>, %arg3: memref<3x256x256xbf16, #tpu.memory_space<vmem>>, %arg4: memref<3x256x256xbf16, #tpu.memory_space<vmem>>, %arg5: memref<3x256x256xbf16, #tpu.memory_space<vmem>>, %arg6: memref<1x256xf32, #tpu.memory_space<vmem>>, %arg7: memref<1x256xf32, #tpu.memory_space<vmem>>, %arg8: memref<1x256xf32, #tpu.memory_space<vmem>>, %arg9: memref<1x256xf32, #tpu.memory_space<vmem>>, %arg10: memref<96x1xbf16, #tpu.memory_space<vmem>>, %arg11: memref<256x256xbf16, #tpu.memory_space<vmem>>, %arg12: memref<96x256xf32, #tpu.memory_space<vmem>>, %arg13: memref<1x256xf32, #tpu.memory_space<vmem>>, %arg14: memref<1x256xf32, #tpu.memory_space<vmem>>, %arg15: memref<100x64xbf16, #tpu.memory_space<vmem>>, %arg16: memref<100x256xbf16, #tpu.memory_space<vmem>>, %arg17: memref<100x256xbf16, #tpu.memory_space<vmem>>) attributes {dimension_semantics = [#tpu.dimension_semantics<parallel>], iteration_bounds = array<i64: 1>, scalar_prefetch = 0 : i64, scratch_operands = 3 : i64, tpu.core_type = #tpu.core_type<tc>, window_params = [{transform_indices = @transform_0, window_bounds = array<i64: 96, 64>}, {pipeline_mode = #tpu.pipeline_mode<synchronous>, transform_indices = @transform_1, window_bounds = array<i64: 3, 64, 256>}, {pipeline_mode = #tpu.pipeline_mode<synchronous>, transform_indices = @transform_2, window_bounds = array<i64: 3, 256, 256>}, {pipeline_mode = #tpu.pipeline_mode<synchronous>, transform_indices = @transform_3, window_bounds = array<i64: 3, 256, 256>}, {pipeline_mode = #tpu.pipeline_mode<synchronous>, transform_indices = @transform_4, window_bounds = array<i64: 3, 256, 256>}, {pipeline_mode = #tpu.pipeline_mode<synchronous>, transform_indices = @transform_5, window_bounds = array<i64: 1, 256>}, {pipeline_mode = #tpu.pipeline_mode<synchronous>, transform_indices = @transform_6, window_bounds = array<i64: 1, 256>}, {pipeline_mode = #tpu.pipeline_mode<synchronous>, transform_indices = @transform_7, window_bounds = array<i64: 1, 256>}, {pipeline_mode = #tpu.pipeline_mode<synchronous>, transform_indices = @transform_8, window_bounds = array<i64: 1, 256>}, {pipeline_mode = #tpu.pipeline_mode<synchronous>, transform_indices = @transform_9, window_bounds = array<i64: 96, 1>}, {pipeline_mode = #tpu.pipeline_mode<synchronous>, transform_indices = @transform_10, window_bounds = array<i64: 256, 256>}, {pipeline_mode = #tpu.pipeline_mode<synchronous>, transform_indices = @transform_11, window_bounds = array<i64: 96, 256>}, {pipeline_mode = #tpu.pipeline_mode<synchronous>, transform_indices = @transform_12, window_bounds = array<i64: 1, 256>}, {transform_indices = @transform_13, window_bounds = array<i64: 1, 256>}]} {
    %cst = arith.constant 0.000000e+00 : bf16
    %0 = vector.broadcast %cst : bf16 to vector<2x64xbf16>
    %cst_0 = arith.constant 0.000000e+00 : bf16
    %1 = vector.broadcast %cst_0 : bf16 to vector<2x256xbf16>
    %c0 = arith.constant 0 : index
    %c0_1 = arith.constant 0 : index
    %2 = vector.load %arg15[%c0, %c0_1] : memref<100x64xbf16, #tpu.memory_space<vmem>>, vector<2x64xbf16>
    tpu.vector_store %arg15[%c0, %c0_1], %0 {strides = array<i32>} : memref<100x64xbf16, #tpu.memory_space<vmem>>, vector<2x64xbf16>,
    %c98 = arith.constant 98 : index
    %c0_2 = arith.constant 0 : index
    %3 = vector.load %arg15[%c98, %c0_2] : memref<100x64xbf16, #tpu.memory_space<vmem>>, vector<2x64xbf16>
    tpu.vector_store %arg15[%c98, %c0_2], %0 {strides = array<i32>} : memref<100x64xbf16, #tpu.memory_space<vmem>>, vector<2x64xbf16>,
    %c0_3 = arith.constant 0 : index
    %c0_4 = arith.constant 0 : index
    %4 = vector.load %arg16[%c0_3, %c0_4] : memref<100x256xbf16, #tpu.memory_space<vmem>>, vector<2x256xbf16>
    tpu.vector_store %arg16[%c0_3, %c0_4], %1 {strides = array<i32>} : memref<100x256xbf16, #tpu.memory_space<vmem>>, vector<2x256xbf16>,
    %c98_5 = arith.constant 98 : index
    %c0_6 = arith.constant 0 : index
    %5 = vector.load %arg16[%c98_5, %c0_6] : memref<100x256xbf16, #tpu.memory_space<vmem>>, vector<2x256xbf16>
    tpu.vector_store %arg16[%c98_5, %c0_6], %1 {strides = array<i32>} : memref<100x256xbf16, #tpu.memory_space<vmem>>, vector<2x256xbf16>,
    %c0_7 = arith.constant 0 : index
    %c0_8 = arith.constant 0 : index
    %6 = vector.load %arg17[%c0_7, %c0_8] : memref<100x256xbf16, #tpu.memory_space<vmem>>, vector<2x256xbf16>
    tpu.vector_store %arg17[%c0_7, %c0_8], %1 {strides = array<i32>} : memref<100x256xbf16, #tpu.memory_space<vmem>>, vector<2x256xbf16>,
    %c98_9 = arith.constant 98 : index
    %c0_10 = arith.constant 0 : index
    %7 = vector.load %arg17[%c98_9, %c0_10] : memref<100x256xbf16, #tpu.memory_space<vmem>>, vector<2x256xbf16>
    tpu.vector_store %arg17[%c98_9, %c0_10], %1 {strides = array<i32>} : memref<100x256xbf16, #tpu.memory_space<vmem>>, vector<2x256xbf16>,
    %c0_11 = arith.constant 0 : index
    %c0_12 = arith.constant 0 : index
    %8 = vector.load %arg10[%c0_11, %c0_12] : memref<96x1xbf16, #tpu.memory_space<vmem>>, vector<96x1xbf16>
    %9 = vector.shape_cast %8 : vector<96x1xbf16> to vector<96x1xbf16>
    %10 = vector.broadcast %9 : vector<96x1xbf16> to vector<96x256xbf16>
    %c0_13 = arith.constant 0 : index
    %c0_14 = arith.constant 0 : index
    %11 = vector.load %arg1[%c0_13, %c0_14] : memref<96x64xbf16, #tpu.memory_space<vmem>>, vector<96x64xbf16>
    %c2 = arith.constant 2 : index
    %c0_15 = arith.constant 0 : index
    %12 = vector.load %arg15[%c2, %c0_15] : memref<100x64xbf16, #tpu.memory_space<vmem>>, vector<96x64xbf16>
    tpu.vector_store %arg15[%c2, %c0_15], %11 {strides = array<i32>} : memref<100x64xbf16, #tpu.memory_space<vmem>>, vector<96x64xbf16>,
    %c1 = arith.constant 1 : index
    %c0_16 = arith.constant 0 : index
    %13 = vector.load %arg15[%c1, %c0_16] : memref<100x64xbf16, #tpu.memory_space<vmem>>, vector<96x64xbf16>
    %c0_17 = arith.constant 0 : index
    %c0_18 = arith.constant 0 : index
    %c0_19 = arith.constant 0 : index
    %14 = vector.load %arg2[%c0_17, %c0_18, %c0_19] : memref<3x64x256xbf16, #tpu.memory_space<vmem>>, vector<1x64x256xbf16>
    %15 = vector.shape_cast %14 : vector<1x64x256xbf16> to vector<64x256xbf16>
    %cst_20 = arith.constant dense<0.000000e+00> : vector<96x256xf32>
    %16 = tpu.matmul %13, %15, %cst_20 {dimension_numbers = #tpu.dot_dimension_numbers<[1], [0], [0], [1], [0, 0, 1, 1], [], []>} : vector<96x64xbf16>, vector<64x256xbf16>, vector<96x256xf32> -> vector<96x256xf32>
    %c2_21 = arith.constant 2 : index
    %c0_22 = arith.constant 0 : index
    %17 = vector.load %arg15[%c2_21, %c0_22] : memref<100x64xbf16, #tpu.memory_space<vmem>>, vector<96x64xbf16>
    %c1_23 = arith.constant 1 : index
    %c0_24 = arith.constant 0 : index
    %c0_25 = arith.constant 0 : index
    %18 = vector.load %arg2[%c1_23, %c0_24, %c0_25] : memref<3x64x256xbf16, #tpu.memory_space<vmem>>, vector<1x64x256xbf16>
    %19 = vector.shape_cast %18 : vector<1x64x256xbf16> to vector<64x256xbf16>
    %cst_26 = arith.constant dense<0.000000e+00> : vector<96x256xf32>
    %20 = tpu.matmul %17, %19, %cst_26 {dimension_numbers = #tpu.dot_dimension_numbers<[1], [0], [0], [1], [0, 0, 1, 1], [], []>} : vector<96x64xbf16>, vector<64x256xbf16>, vector<96x256xf32> -> vector<96x256xf32>
    %21 = arith.addf %16, %20 : vector<96x256xf32>
    %c3 = arith.constant 3 : index
    %c0_27 = arith.constant 0 : index
    %22 = vector.load %arg15[%c3, %c0_27] : memref<100x64xbf16, #tpu.memory_space<vmem>>, vector<96x64xbf16>
    %c2_28 = arith.constant 2 : index
    %c0_29 = arith.constant 0 : index
    %c0_30 = arith.constant 0 : index
    %23 = vector.load %arg2[%c2_28, %c0_29, %c0_30] : memref<3x64x256xbf16, #tpu.memory_space<vmem>>, vector<1x64x256xbf16>
    %24 = vector.shape_cast %23 : vector<1x64x256xbf16> to vector<64x256xbf16>
    %cst_31 = arith.constant dense<0.000000e+00> : vector<96x256xf32>
    %25 = tpu.matmul %22, %24, %cst_31 {dimension_numbers = #tpu.dot_dimension_numbers<[1], [0], [0], [1], [0, 0, 1, 1], [], []>} : vector<96x64xbf16>, vector<64x256xbf16>, vector<96x256xf32> -> vector<96x256xf32>
    %26 = arith.addf %21, %25 : vector<96x256xf32>
    %c0_32 = arith.constant 0 : index
    %c0_33 = arith.constant 0 : index
    %27 = vector.load %arg6[%c0_32, %c0_33] : memref<1x256xf32, #tpu.memory_space<vmem>>, vector<1x256xf32>
    %28 = vector.broadcast %27 : vector<1x256xf32> to vector<96x256xf32>
    %29 = arith.addf %26, %28 : vector<96x256xf32>
    %cst_34 = arith.constant 0.000000e+00 : f32
    %30 = vector.broadcast %cst_34 : f32 to vector<96x256xf32>
    %31 = arith.maximumf %29, %30 : vector<96x256xf32>
    %32 = arith.truncf %31 : vector<96x256xf32> to vector<96x256xbf16>
    %33 = arith.mulf %32, %10 : vector<96x256xbf16>
    %c2_35 = arith.constant 2 : index
    %c0_36 = arith.constant 0 : index
    %34 = vector.load %arg16[%c2_35, %c0_36] : memref<100x256xbf16, #tpu.memory_space<vmem>>, vector<96x256xbf16>
    tpu.vector_store %arg16[%c2_35, %c0_36], %33 {strides = array<i32>} : memref<100x256xbf16, #tpu.memory_space<vmem>>, vector<96x256xbf16>,
    %c1_37 = arith.constant 1 : index
    %c0_38 = arith.constant 0 : index
    %35 = vector.load %arg16[%c1_37, %c0_38] : memref<100x256xbf16, #tpu.memory_space<vmem>>, vector<96x256xbf16>
    %c0_39 = arith.constant 0 : index
    %c0_40 = arith.constant 0 : index
    %c0_41 = arith.constant 0 : index
    %36 = vector.load %arg3[%c0_39, %c0_40, %c0_41] : memref<3x256x256xbf16, #tpu.memory_space<vmem>>, vector<1x256x256xbf16>
    %37 = vector.shape_cast %36 : vector<1x256x256xbf16> to vector<256x256xbf16>
    %cst_42 = arith.constant dense<0.000000e+00> : vector<96x256xf32>
    %38 = tpu.matmul %35, %37, %cst_42 {dimension_numbers = #tpu.dot_dimension_numbers<[1], [0], [0], [1], [0, 0, 1, 1], [], []>} : vector<96x256xbf16>, vector<256x256xbf16>, vector<96x256xf32> -> vector<96x256xf32>
    %c2_43 = arith.constant 2 : index
    %c0_44 = arith.constant 0 : index
    %39 = vector.load %arg16[%c2_43, %c0_44] : memref<100x256xbf16, #tpu.memory_space<vmem>>, vector<96x256xbf16>
    %c1_45 = arith.constant 1 : index
    %c0_46 = arith.constant 0 : index
    %c0_47 = arith.constant 0 : index
    %40 = vector.load %arg3[%c1_45, %c0_46, %c0_47] : memref<3x256x256xbf16, #tpu.memory_space<vmem>>, vector<1x256x256xbf16>
    %41 = vector.shape_cast %40 : vector<1x256x256xbf16> to vector<256x256xbf16>
    %cst_48 = arith.constant dense<0.000000e+00> : vector<96x256xf32>
    %42 = tpu.matmul %39, %41, %cst_48 {dimension_numbers = #tpu.dot_dimension_numbers<[1], [0], [0], [1], [0, 0, 1, 1], [], []>} : vector<96x256xbf16>, vector<256x256xbf16>, vector<96x256xf32> -> vector<96x256xf32>
    %43 = arith.addf %38, %42 : vector<96x256xf32>
    %c3_49 = arith.constant 3 : index
    %c0_50 = arith.constant 0 : index
    %44 = vector.load %arg16[%c3_49, %c0_50] : memref<100x256xbf16, #tpu.memory_space<vmem>>, vector<96x256xbf16>
    %c2_51 = arith.constant 2 : index
    %c0_52 = arith.constant 0 : index
    %c0_53 = arith.constant 0 : index
    %45 = vector.load %arg3[%c2_51, %c0_52, %c0_53] : memref<3x256x256xbf16, #tpu.memory_space<vmem>>, vector<1x256x256xbf16>
    %46 = vector.shape_cast %45 : vector<1x256x256xbf16> to vector<256x256xbf16>
    %cst_54 = arith.constant dense<0.000000e+00> : vector<96x256xf32>
    %47 = tpu.matmul %44, %46, %cst_54 {dimension_numbers = #tpu.dot_dimension_numbers<[1], [0], [0], [1], [0, 0, 1, 1], [], []>} : vector<96x256xbf16>, vector<256x256xbf16>, vector<96x256xf32> -> vector<96x256xf32>
    %48 = arith.addf %43, %47 : vector<96x256xf32>
    %c0_55 = arith.constant 0 : index
    %c0_56 = arith.constant 0 : index
    %49 = vector.load %arg7[%c0_55, %c0_56] : memref<1x256xf32, #tpu.memory_space<vmem>>, vector<1x256xf32>
    %50 = vector.broadcast %49 : vector<1x256xf32> to vector<96x256xf32>
    %51 = arith.addf %48, %50 : vector<96x256xf32>
    %cst_57 = arith.constant 0.000000e+00 : f32
    %52 = vector.broadcast %cst_57 : f32 to vector<96x256xf32>
    %53 = arith.maximumf %51, %52 : vector<96x256xf32>
    %54 = arith.truncf %53 : vector<96x256xf32> to vector<96x256xbf16>
    %55 = arith.mulf %54, %10 : vector<96x256xbf16>
    %c2_58 = arith.constant 2 : index
    %c0_59 = arith.constant 0 : index
    %56 = vector.load %arg17[%c2_58, %c0_59] : memref<100x256xbf16, #tpu.memory_space<vmem>>, vector<96x256xbf16>
    tpu.vector_store %arg17[%c2_58, %c0_59], %55 {strides = array<i32>} : memref<100x256xbf16, #tpu.memory_space<vmem>>, vector<96x256xbf16>,
    %c2_60 = arith.constant 2 : index
    %c0_61 = arith.constant 0 : index
    %57 = vector.load %arg17[%c2_60, %c0_61] : memref<100x256xbf16, #tpu.memory_space<vmem>>, vector<96x256xbf16>
    %c3_62 = arith.constant 3 : index
    %c0_63 = arith.constant 0 : index
    %58 = vector.load %arg17[%c3_62, %c0_63] : memref<100x256xbf16, #tpu.memory_space<vmem>>, vector<96x256xbf16>
    %59 = arith.maximumf %57, %58 : vector<96x256xbf16>
    %c2_64 = arith.constant 2 : index
    %c0_65 = arith.constant 0 : index
    %60 = vector.load %arg16[%c2_64, %c0_65] : memref<100x256xbf16, #tpu.memory_space<vmem>>, vector<96x256xbf16>
    tpu.vector_store %arg16[%c2_64, %c0_65], %59 {strides = array<i32>} : memref<100x256xbf16, #tpu.memory_space<vmem>>, vector<96x256xbf16>,
    %c0_66 = arith.constant 0 : index
    %c0_67 = arith.constant 0 : index
    %61 = vector.load %arg16[%c0_66, %c0_67] : memref<100x256xbf16, #tpu.memory_space<vmem>>, vector<96x256xbf16>
    %c0_68 = arith.constant 0 : index
    %c0_69 = arith.constant 0 : index
    %c0_70 = arith.constant 0 : index
    %62 = vector.load %arg4[%c0_68, %c0_69, %c0_70] : memref<3x256x256xbf16, #tpu.memory_space<vmem>>, vector<1x256x256xbf16>
    %63 = vector.shape_cast %62 : vector<1x256x256xbf16> to vector<256x256xbf16>
    %cst_71 = arith.constant dense<0.000000e+00> : vector<96x256xf32>
    %64 = tpu.matmul %61, %63, %cst_71 {dimension_numbers = #tpu.dot_dimension_numbers<[1], [0], [0], [1], [0, 0, 1, 1], [], []>} : vector<96x256xbf16>, vector<256x256xbf16>, vector<96x256xf32> -> vector<96x256xf32>
    %c2_72 = arith.constant 2 : index
    %c0_73 = arith.constant 0 : index
    %65 = vector.load %arg16[%c2_72, %c0_73] : memref<100x256xbf16, #tpu.memory_space<vmem>>, vector<96x256xbf16>
    %c1_74 = arith.constant 1 : index
    %c0_75 = arith.constant 0 : index
    %c0_76 = arith.constant 0 : index
    %66 = vector.load %arg4[%c1_74, %c0_75, %c0_76] : memref<3x256x256xbf16, #tpu.memory_space<vmem>>, vector<1x256x256xbf16>
    %67 = vector.shape_cast %66 : vector<1x256x256xbf16> to vector<256x256xbf16>
    %cst_77 = arith.constant dense<0.000000e+00> : vector<96x256xf32>
    %68 = tpu.matmul %65, %67, %cst_77 {dimension_numbers = #tpu.dot_dimension_numbers<[1], [0], [0], [1], [0, 0, 1, 1], [], []>} : vector<96x256xbf16>, vector<256x256xbf16>, vector<96x256xf32> -> vector<96x256xf32>
    %69 = arith.addf %64, %68 : vector<96x256xf32>
    %c4 = arith.constant 4 : index
    %c0_78 = arith.constant 0 : index
    %70 = vector.load %arg16[%c4, %c0_78] : memref<100x256xbf16, #tpu.memory_space<vmem>>, vector<96x256xbf16>
    %c2_79 = arith.constant 2 : index
    %c0_80 = arith.constant 0 : index
    %c0_81 = arith.constant 0 : index
    %71 = vector.load %arg4[%c2_79, %c0_80, %c0_81] : memref<3x256x256xbf16, #tpu.memory_space<vmem>>, vector<1x256x256xbf16>
    %72 = vector.shape_cast %71 : vector<1x256x256xbf16> to vector<256x256xbf16>
    %cst_82 = arith.constant dense<0.000000e+00> : vector<96x256xf32>
    %73 = tpu.matmul %70, %72, %cst_82 {dimension_numbers = #tpu.dot_dimension_numbers<[1], [0], [0], [1], [0, 0, 1, 1], [], []>} : vector<96x256xbf16>, vector<256x256xbf16>, vector<96x256xf32> -> vector<96x256xf32>
    %74 = arith.addf %69, %73 : vector<96x256xf32>
    %c0_83 = arith.constant 0 : index
    %c0_84 = arith.constant 0 : index
    %75 = vector.load %arg8[%c0_83, %c0_84] : memref<1x256xf32, #tpu.memory_space<vmem>>, vector<1x256xf32>
    %76 = vector.broadcast %75 : vector<1x256xf32> to vector<96x256xf32>
    %77 = arith.addf %74, %76 : vector<96x256xf32>
    %cst_85 = arith.constant 0.000000e+00 : f32
    %78 = vector.broadcast %cst_85 : f32 to vector<96x256xf32>
    %79 = arith.maximumf %77, %78 : vector<96x256xf32>
    %80 = arith.truncf %79 : vector<96x256xf32> to vector<96x256xbf16>
    %81 = arith.mulf %80, %10 : vector<96x256xbf16>
    %c2_86 = arith.constant 2 : index
    %c0_87 = arith.constant 0 : index
    %82 = vector.load %arg17[%c2_86, %c0_87] : memref<100x256xbf16, #tpu.memory_space<vmem>>, vector<96x256xbf16>
    tpu.vector_store %arg17[%c2_86, %c0_87], %81 {strides = array<i32>} : memref<100x256xbf16, #tpu.memory_space<vmem>>, vector<96x256xbf16>,
    %c0_88 = arith.constant 0 : index
    %c0_89 = arith.constant 0 : index
    %83 = vector.load %arg17[%c0_88, %c0_89] : memref<100x256xbf16, #tpu.memory_space<vmem>>, vector<96x256xbf16>
    %c0_90 = arith.constant 0 : index
    %c0_91 = arith.constant 0 : index
    %c0_92 = arith.constant 0 : index
    %84 = vector.load %arg5[%c0_90, %c0_91, %c0_92] : memref<3x256x256xbf16, #tpu.memory_space<vmem>>, vector<1x256x256xbf16>
    %85 = vector.shape_cast %84 : vector<1x256x256xbf16> to vector<256x256xbf16>
    %cst_93 = arith.constant dense<0.000000e+00> : vector<96x256xf32>
    %86 = tpu.matmul %83, %85, %cst_93 {dimension_numbers = #tpu.dot_dimension_numbers<[1], [0], [0], [1], [0, 0, 1, 1], [], []>} : vector<96x256xbf16>, vector<256x256xbf16>, vector<96x256xf32> -> vector<96x256xf32>
    %c2_94 = arith.constant 2 : index
    %c0_95 = arith.constant 0 : index
    %87 = vector.load %arg17[%c2_94, %c0_95] : memref<100x256xbf16, #tpu.memory_space<vmem>>, vector<96x256xbf16>
    %c1_96 = arith.constant 1 : index
    %c0_97 = arith.constant 0 : index
    %c0_98 = arith.constant 0 : index
    %88 = vector.load %arg5[%c1_96, %c0_97, %c0_98] : memref<3x256x256xbf16, #tpu.memory_space<vmem>>, vector<1x256x256xbf16>
    %89 = vector.shape_cast %88 : vector<1x256x256xbf16> to vector<256x256xbf16>
    %cst_99 = arith.constant dense<0.000000e+00> : vector<96x256xf32>
    %90 = tpu.matmul %87, %89, %cst_99 {dimension_numbers = #tpu.dot_dimension_numbers<[1], [0], [0], [1], [0, 0, 1, 1], [], []>} : vector<96x256xbf16>, vector<256x256xbf16>, vector<96x256xf32> -> vector<96x256xf32>
    %91 = arith.addf %86, %90 : vector<96x256xf32>
    %c4_100 = arith.constant 4 : index
    %c0_101 = arith.constant 0 : index
    %92 = vector.load %arg17[%c4_100, %c0_101] : memref<100x256xbf16, #tpu.memory_space<vmem>>, vector<96x256xbf16>
    %c2_102 = arith.constant 2 : index
    %c0_103 = arith.constant 0 : index
    %c0_104 = arith.constant 0 : index
    %93 = vector.load %arg5[%c2_102, %c0_103, %c0_104] : memref<3x256x256xbf16, #tpu.memory_space<vmem>>, vector<1x256x256xbf16>
    %94 = vector.shape_cast %93 : vector<1x256x256xbf16> to vector<256x256xbf16>
    %cst_105 = arith.constant dense<0.000000e+00> : vector<96x256xf32>
    %95 = tpu.matmul %92, %94, %cst_105 {dimension_numbers = #tpu.dot_dimension_numbers<[1], [0], [0], [1], [0, 0, 1, 1], [], []>} : vector<96x256xbf16>, vector<256x256xbf16>, vector<96x256xf32> -> vector<96x256xf32>
    %96 = arith.addf %91, %95 : vector<96x256xf32>
    %c0_106 = arith.constant 0 : index
    %c0_107 = arith.constant 0 : index
    %97 = vector.load %arg9[%c0_106, %c0_107] : memref<1x256xf32, #tpu.memory_space<vmem>>, vector<1x256xf32>
    %98 = vector.broadcast %97 : vector<1x256xf32> to vector<96x256xf32>
    %99 = arith.addf %96, %98 : vector<96x256xf32>
    %cst_108 = arith.constant 0.000000e+00 : f32
    %100 = vector.broadcast %cst_108 : f32 to vector<96x256xf32>
    %101 = arith.maximumf %99, %100 : vector<96x256xf32>
    %102 = arith.truncf %101 : vector<96x256xf32> to vector<96x256xbf16>
    %c0_109 = arith.constant 0 : index
    %c0_110 = arith.constant 0 : index
    %103 = vector.load %arg11[%c0_109, %c0_110] : memref<256x256xbf16, #tpu.memory_space<vmem>>, vector<256x256xbf16>
    %cst_111 = arith.constant dense<0.000000e+00> : vector<96x256xf32>
    %104 = tpu.matmul %102, %103, %cst_111 {dimension_numbers = #tpu.dot_dimension_numbers<[1], [0], [0], [1], [0, 0, 1, 1], [], []>} : vector<96x256xbf16>, vector<256x256xbf16>, vector<96x256xf32> -> vector<96x256xf32>
    %105 = vector.shape_cast %104 : vector<96x256xf32> to vector<1x96x256xf32>
    %c0_112 = arith.constant 0 : index
    %c0_113 = arith.constant 0 : index
    %106 = vector.load %arg12[%c0_112, %c0_113] : memref<96x256xf32, #tpu.memory_space<vmem>>, vector<96x256xf32>
    %107 = vector.shape_cast %106 : vector<96x256xf32> to vector<1x96x256xf32>
    %108 = arith.mulf %105, %107 : vector<1x96x256xf32>
    %cst_114 = arith.constant dense<0.000000e+00> : vector<1x256xf32>
    %109 = vector.multi_reduction <add>, %108, %cst_114 [1] : vector<1x96x256xf32> to vector<1x256xf32>
    %c0_115 = arith.constant 0 : index
    %c0_116 = arith.constant 0 : index
    %110 = vector.load %arg13[%c0_115, %c0_116] : memref<1x256xf32, #tpu.memory_space<vmem>>, vector<1x256xf32>
    %111 = arith.addf %109, %110 : vector<1x256xf32>
    %c0_117 = arith.constant 0 : index
    %c0_118 = arith.constant 0 : index
    %112 = vector.load %arg14[%c0_117, %c0_118] : memref<1x256xf32, #tpu.memory_space<vmem>>, vector<1x256xf32>
    tpu.vector_store %arg14[%c0_117, %c0_118], %111 {strides = array<i32>} : memref<1x256xf32, #tpu.memory_space<vmem>>, vector<1x256xf32>,
    return
  }
  func.func @transform_0(%arg0: i32) -> (i32, i32) {
    %c0_i32 = arith.constant 0 : i32
    %c0_i32_0 = arith.constant 0 : i32
    return %arg0, %c0_i32 : i32, i32
  }
  func.func @transform_1(%arg0: i32) -> (i32, i32, i32) {
    %c0_i32 = arith.constant 0 : i32
    %c0_i32_0 = arith.constant 0 : i32
    %c0_i32_1 = arith.constant 0 : i32
    %c0_i32_2 = arith.constant 0 : i32
    return %c0_i32, %c0_i32_0, %c0_i32_1 : i32, i32, i32
  }
  func.func @transform_2(%arg0: i32) -> (i32, i32, i32) {
    %c0_i32 = arith.constant 0 : i32
    %c0_i32_0 = arith.constant 0 : i32
    %c0_i32_1 = arith.constant 0 : i32
    %c0_i32_2 = arith.constant 0 : i32
    return %c0_i32, %c0_i32_0, %c0_i32_1 : i32, i32, i32
  }
  func.func @transform_3(%arg0: i32) -> (i32, i32, i32) {
    %c0_i32 = arith.constant 0 : i32
    %c0_i32_0 = arith.constant 0 : i32
    %c0_i32_1 = arith.constant 0 : i32
    %c0_i32_2 = arith.constant 0 : i32
    return %c0_i32, %c0_i32_0, %c0_i32_1 : i32, i32, i32
  }
  func.func @transform_4(%arg0: i32) -> (i32, i32, i32) {
    %c0_i32 = arith.constant 0 : i32
    %c0_i32_0 = arith.constant 0 : i32
    %c0_i32_1 = arith.constant 0 : i32
    %c0_i32_2 = arith.constant 0 : i32
    return %c0_i32, %c0_i32_0, %c0_i32_1 : i32, i32, i32
  }
  func.func @transform_5(%arg0: i32) -> (i32, i32) {
    %c0_i32 = arith.constant 0 : i32
    %c0_i32_0 = arith.constant 0 : i32
    %c0_i32_1 = arith.constant 0 : i32
    return %c0_i32, %c0_i32_0 : i32, i32
  }
  func.func @transform_6(%arg0: i32) -> (i32, i32) {
    %c0_i32 = arith.constant 0 : i32
    %c0_i32_0 = arith.constant 0 : i32
    %c0_i32_1 = arith.constant 0 : i32
    return %c0_i32, %c0_i32_0 : i32, i32
  }
  func.func @transform_7(%arg0: i32) -> (i32, i32) {
    %c0_i32 = arith.constant 0 : i32
    %c0_i32_0 = arith.constant 0 : i32
    %c0_i32_1 = arith.constant 0 : i32
    return %c0_i32, %c0_i32_0 : i32, i32
  }
  func.func @transform_8(%arg0: i32) -> (i32, i32) {
    %c0_i32 = arith.constant 0 : i32
    %c0_i32_0 = arith.constant 0 : i32
    %c0_i32_1 = arith.constant 0 : i32
    return %c0_i32, %c0_i32_0 : i32, i32
  }
  func.func @transform_9(%arg0: i32) -> (i32, i32) {
    %c0_i32 = arith.constant 0 : i32
    %c0_i32_0 = arith.constant 0 : i32
    %c0_i32_1 = arith.constant 0 : i32
    return %c0_i32, %c0_i32_0 : i32, i32
  }
  func.func @transform_10(%arg0: i32) -> (i32, i32) {
    %c0_i32 = arith.constant 0 : i32
    %c0_i32_0 = arith.constant 0 : i32
    %c0_i32_1 = arith.constant 0 : i32
    return %c0_i32, %c0_i32_0 : i32, i32
  }
  func.func @transform_11(%arg0: i32) -> (i32, i32) {
    %c0_i32 = arith.constant 0 : i32
    %c0_i32_0 = arith.constant 0 : i32
    %c0_i32_1 = arith.constant 0 : i32
    return %c0_i32, %c0_i32_0 : i32, i32
  }
  func.func @transform_12(%arg0: i32) -> (i32, i32) {
    %c0_i32 = arith.constant 0 : i32
    %c0_i32_0 = arith.constant 0 : i32
    %c0_i32_1 = arith.constant 0 : i32
    return %c0_i32, %c0_i32_0 : i32, i32
  }
  func.func @transform_13(%arg0: i32) -> (i32, i32) {
    %c0_i32 = arith.constant 0 : i32
    %c0_i32_0 = arith.constant 0 : i32
    return %arg0, %c0_i32 : i32, i32
  }
}

</mosaic_0001>

<bundles_post_ra>
// kernel: tpu_custom_call.1
= control target key start
LH: loop header
LB: loop body
LE: loop exit
PB: predicated region body
PF: predicated region fallthrough
CT: control target
= control target key end

     0   :  { %18 = vsyncpa [#allocation6], 0  ;;  %s8234_s0 = inlined_call_operand.vmem [shape: bf16[96,64], index: 0, kind: input, shape index: {}]   ;;  %s8235_s1 = inlined_call_operand.hbm [shape: bf16[3,64,256], index: 1, kind: input, shape index: {}]   ;;  %s8236_s2 = inlined_call_operand.hbm [shape: bf16[3,256,256], index: 2, kind: input, shape index: {}]   ;;  %s8237_s3 = inlined_call_operand.hbm [shape: bf16[3,256,256], index: 3, kind: input, shape index: {}]   ;;  %s8238_s4 = inlined_call_operand.hbm [shape: bf16[3,256,256], index: 4, kind: input, shape index: {}]   ;;  %s8239_s5 = inlined_call_operand.vmem [shape: f32[1,256], index: 5, kind: input, shape index: {}]   ;;  %s8240_s6 = inlined_call_operand.vmem [shape: f32[1,256], index: 6, kind: input, shape index: {}]   ;;  %s8241_s7 = inlined_call_operand.vmem [shape: f32[1,256], index: 7, kind: input, shape index: {}]   ;;  %s8242_s8 = inlined_call_operand.vmem [shape: f32[1,256], index: 8, kind: input, shape index: {}]   ;;  %s8243_s9 = inlined_call_operand.vmem [shape: bf16[96,1], index: 9, kind: input, shape index: {}]   ;;  %s8244_s10 = inlined_call_operand.hbm [shape: bf16[256,256], index: 10, kind: input, shape index: {}]   ;;  %s8245_s11 = inlined_call_operand.hbm [shape: f32[96,256], index: 11, kind: input, shape index: {}]   ;;  %s8246_s12 = inlined_call_operand.vmem [shape: f32[1,256], index: 12, kind: input, shape index: {}]   ;;  %s8247_s13 = inlined_call_operand.hbm [shape: f32[1,256], index: 13, kind: output, shape index: {}]  }
   0x1   :  { %19 = vsyncpa [#allocation9], 0 }
   0x2   :  { %20 = vsyncpa [#allocation12], 0 }
   0x3   :  { %21 = vsyncpa [#allocation15], 0 }
   0x4   :  { %22 = vsyncpa [#allocation7], 0  ;;  %s7025_s25 = smov [#allocation8]   ;;  %s7026_s27 = smov [#allocation11]  }
   0x5   :  { %s42_s26 = sshll.u32 %s7025_s25, 4  ;;  %s66_s28 = sshll.u32 %s7026_s27, 4  ;;  %s43_s26 = int_to_ptr.vmem [resolvable:$true] %s42_s26  ;;  %s7109_s28 = int_to_ptr.vmem [resolvable:$true] %s66_s28 }
   0x6   :  { %s6861_s14 = scalar_lea.hbm %s8236_s2, 12288 }
   0x7   :  { %p6862_p0 = scmp.ne.s32.totalorder %s8236_s2, %s6861_s14  ;;  %p6865_p1 = scmp.lt.u32.totalorder %s6861_s14, %s8236_s2 }
   0x9   :  { %p6867_p2 = pnand %p6865_p1, %p6862_p0 }
   0xb   :  { %6870 = shalt.err (!%p6867_p2)
}
   0xc   :  { %s6871_s19 = scalar_lea.vmem %s43_s26, 12288  ;;  %p6876_p4 = scmp.lt.s32.totalorder %s43_s26, %s43_s26 }
   0xd   :  { %p6872_p3 = scmp.ne.s32.totalorder %s43_s26, %s6871_s19  ;;  %p6877_p5 = scmp.lt.s32.totalorder %s6871_s19, %s6871_s19 }
   0xf   :  { %p6878_p6 = por %p6877_p5, %p6876_p4 }
  0x11   :  { %p6879_p7 = pnand %p6878_p6, %p6872_p3 }
  0x13   :  { %6882 = shalt.err (!%p6879_p7)
}
  0x14   :  { %s7027_s20 = smov 128   ;;  %s7028_s21 = smov 8  }
  0x15   :  { %48 = dma.hbm_to_vmem [thread:$0]  %s8236_s2, 12288, %s43_s26, [#allocation9], %s7027_s20, %s7027_s20, %s7028_s21  }
  0x16   :  { %s6883_s27 = scalar_lea.hbm %s8238_s4, 12288 }
  0x17   :  { %p6884_p8 = scmp.ne.s32.totalorder %s8238_s4, %s6883_s27  ;;  %p6887_p9 = scmp.lt.u32.totalorder %s6883_s27, %s8238_s4 }
  0x19   :  { %p6889_p10 = pnand %p6887_p9, %p6884_p8 }
  0x1b   :  { %6892 = shalt.err (!%p6889_p10)
}
  0x1c   :  { %s6893_s16 = scalar_lea.vmem %s7109_s28, 12288  ;;  %p6898_p12 = scmp.lt.s32.totalorder %s7109_s28, %s7109_s28 }
  0x1d   :  { %p6894_p11 = scmp.ne.s32.totalorder %s7109_s28, %s6893_s16  ;;  %p6899_p13 = scmp.lt.s32.totalorder %s6893_s16, %s6893_s16 }
  0x1f   :  { %p6900_p0 = por %p6899_p13, %p6898_p12 }
  0x21   :  { %p6901_p1 = pnand %p6900_p0, %p6894_p11 }
  0x23   :  { %6904 = shalt.err (!%p6901_p1)
}
  0x24   :  { %72 = dma.hbm_to_vmem [thread:$0]  %s8238_s4, 12288, %s7109_s28, [#allocation12], %s7027_s20, %s7027_s20, %s7028_s21  }
  0x25   :  { %s7029_s17 = smov [#allocation5]   ;;  %s7030_s19 = smov [#allocation10]  }
  0x26   :  { %s30_s18 = sshll.u32 %s7029_s17, 4  ;;  %s54_s22 = sshll.u32 %s7030_s19, 4  ;;  %s31_s18 = int_to_ptr.vmem [resolvable:$true] %s30_s18  ;;  %s7146_s22 = int_to_ptr.vmem [resolvable:$true] %s54_s22 }
  0x27   :  { %s6905_s25 = scalar_lea.hbm %s8235_s1, 3072 }
  0x28   :  { %p6906_p2 = scmp.ne.s32.totalorder %s8235_s1, %s6905_s25  ;;  %p6909_p3 = scmp.lt.u32.totalorder %s6905_s25, %s8235_s1 }
  0x2a   :  { %p6911_p4 = pnand %p6909_p3, %p6906_p2 }
  0x2c   :  { %6914 = shalt.err (!%p6911_p4)
}
  0x2d   :  { %s6915_s4 = scalar_lea.vmem %s31_s18, 3072  ;;  %p6920_p6 = scmp.lt.s32.totalorder %s31_s18, %s31_s18 }
  0x2e   :  { %p6916_p5 = scmp.ne.s32.totalorder %s31_s18, %s6915_s4  ;;  %p6921_p7 = scmp.lt.s32.totalorder %s6915_s4, %s6915_s4 }
  0x30   :  { %p6922_p8 = por %p6921_p7, %p6920_p6 }
  0x32   :  { %p6923_p9 = pnand %p6922_p8, %p6916_p5 }
  0x34   :  { %6926 = shalt.err (!%p6923_p9)
}
  0x35   :  { %36 = dma.hbm_to_vmem [thread:$0]  %s8235_s1, 3072, %s31_s18, [#allocation6], %s7027_s20, %s7027_s20, %s7028_s21  }
  0x36   :  { %s6927_s26 = scalar_lea.hbm %s8237_s3, 12288 }
  0x37   :  { %p6928_p10 = scmp.ne.s32.totalorder %s8237_s3, %s6927_s26  ;;  %p6931_p11 = scmp.lt.u32.totalorder %s6927_s26, %s8237_s3 }
  0x39   :  { %p6933_p12 = pnand %p6931_p11, %p6928_p10 }
  0x3b   :  { %6936 = shalt.err (!%p6933_p12)
}
  0x3c   :  { %s6937_s25 = scalar_lea.vmem %s7146_s22, 12288  ;;  %p6942_p0 = scmp.lt.s32.totalorder %s7146_s22, %s7146_s22 }
  0x3d   :  { %p6938_p13 = scmp.ne.s32.totalorder %s7146_s22, %s6937_s25  ;;  %p6943_p1 = scmp.lt.s32.totalorder %s6937_s25, %s6937_s25 }
  0x3f   :  { %p6944_p2 = por %p6943_p1, %p6942_p0 }
  0x41   :  { %p6945_p3 = pnand %p6944_p2, %p6938_p13 }
  0x43   :  { %6948 = shalt.err (!%p6945_p3)
}
  0x44   :  { %60 = dma.hbm_to_vmem [thread:$0]  %s8237_s3, 12288, %s7146_s22, [#allocation9], %s7027_s20, %s7027_s20, %s7028_s21  }
  0x45   :  { %s7031_s27 = smov [#allocation13]   ;;  %s7032_s30 = smov [#allocation14]  }
  0x46   :  { %s88_s29 = sshll.u32 %s7031_s27, 4  ;;  %s100_s14 = sshll.u32 %s7032_s30, 4  ;;  %s89_s29 = int_to_ptr.vmem [resolvable:$true] %s88_s29  ;;  %s7183_s14 = int_to_ptr.vmem [resolvable:$true] %s100_s14 }
  0x47   :  { %s6949_s15 = scalar_lea.hbm %s8244_s10, 4096 }
  0x48   :  { %p6950_p4 = scmp.ne.s32.totalorder %s8244_s10, %s6949_s15  ;;  %p6953_p5 = scmp.lt.u32.totalorder %s6949_s15, %s8244_s10 }
  0x4a   :  { %p6955_p6 = pnand %p6953_p5, %p6950_p4 }
  0x4c   :  { %6958 = shalt.err (!%p6955_p6)
}
  0x4d   :  { %s6959_s3 = scalar_lea.vmem %s89_s29, 4096  ;;  %p6964_p8 = scmp.lt.s32.totalorder %s89_s29, %s89_s29 }
  0x4e   :  { %p6960_p7 = scmp.ne.s32.totalorder %s89_s29, %s6959_s3  ;;  %p6965_p9 = scmp.lt.s32.totalorder %s6959_s3, %s6959_s3 }
  0x50   :  { %p6966_p10 = por %p6965_p9, %p6964_p8 }
  0x52   :  { %p6967_p11 = pnand %p6966_p10, %p6960_p7 }
  0x54   :  { %6970 = shalt.err (!%p6967_p11)
}
  0x55   :  { %94 = dma.hbm_to_vmem [thread:$0]  %s8244_s10, 4096, %s89_s29, [#allocation12], %s7027_s20, %s7027_s20, %s7028_s21  }
  0x56   :  { %s6971_s25 = scalar_lea.hbm %s8245_s11, 3072 }
  0x57   :  { %p6972_p12 = scmp.ne.s32.totalorder %s8245_s11, %s6971_s25  ;;  %p6975_p13 = scmp.lt.u32.totalorder %s6971_s25, %s8245_s11 }
  0x59   :  { %p6977_p0 = pnand %p6975_p13, %p6972_p12 }
  0x5b   :  { %6980 = shalt.err (!%p6977_p0)
}
  0x5c   :  { %s6981_s4 = scalar_lea.vmem %s7183_s14, 3072  ;;  %p6986_p2 = scmp.lt.s32.totalorder %s7183_s14, %s7183_s14 }
  0x5d   :  { %p6982_p1 = scmp.ne.s32.totalorder %s7183_s14, %s6981_s4  ;;  %p6987_p3 = scmp.lt.s32.totalorder %s6981_s4, %s6981_s4 }
  0x5f   :  { %p6988_p4 = por %p6987_p3, %p6986_p2 }
  0x61   :  { %p6989_p5 = pnand %p6988_p4, %p6982_p1 }
  0x63   :  { %6992 = shalt.err (!%p6989_p5)
}
  0x64   :  { %s7033_s10 = smov 256   ;;  %s7034_s20 = smov 16  }
  0x65   :  { %106 = dma.hbm_to_vmem [thread:$0]  %s8245_s11, 3072, %s7183_s14, [#allocation15], %s7033_s10, %s7033_s10, %s7034_s20  }
  0x66   :  { %7015 = dma.done.wait [#allocation6], 3072  }
  0x67   :  { %7016 = vsyncadd [#allocation6], 4294964224 }
  0x68   :  { %7017 = dma.done.wait [#allocation9], 24576  }
  0x69   :  { %7018 = vsyncadd [#allocation9], 4294942720 }
  0x6a   :  { %7019 = dma.done.wait [#allocation12], 16384  }
  0x6b   :  { %7020 = vsyncadd [#allocation12], 4294950912 }
  0x6c   :  { %7021 = dma.done.wait [#allocation15], 3072  }
  0x6d   :  { %7022 = vsyncadd [#allocation15], 4294964224  ;;  %vm128_vm0 = vcmask 516096   ;;  %v7035_v0 = vmov 0   ;;  %v6324_v1 = vld [vmem:[#allocation5 + $0x44] ss:$8 sps:$4 sm:$0xff]  }
  0x6e   :  { %551 = vmatprep.mubr.bf16.mxu0 %v7035_v0  ;;  %132 = vst [vmem:[#allocation3] sm:$0x11] %v7035_v0  ;;  %133 = vst [vmem:[#allocation3 + $0x60] sm:$0x22] %v7035_v0  ;;  %6323 = vset.pattern.permute.xlu1 %v7035_v0  ;;  %v6326_v2 = vld [vmem:[#allocation5 + $0x40] ss:$8 sps:$4 sm:$0xff]  }
  0x6f   :  { %134 = vst [vmem:[#allocation4] sm:$0x11] %v7035_v0  ;;  %135 = vst [vmem:[#allocation4 + $0x60] sm:$0x22] %v7035_v0  ;;  %6322 = vset.pattern.permute.xlu0 %v7035_v0  ;;  %519 = vmatprep.subr.bf16.mxu0 %v6324_v1  ;;  %v6327_v3 = vld [vmem:[#allocation5 + $0x54] ss:$8 sps:$4 sm:$0xff]  }
  0x70   :  { %129 = vst.msk [vmem:[#allocation2] sm:$0x1] %vm128_vm0, %v7035_v0  ;;  %520 = vmatpush1.bf16.msra.mxu0 %v6326_v2  ;;  %v6329_v4 = vld [vmem:[#allocation5 + $0x50] ss:$8 sps:$4 sm:$0xff]   ;;  %vm316_vm1 = vcmask 1040384   ;;  %vm317_vm2 = vcmask 1044484  }
  0x71   :  { %521 = vmatprep.subr.bf16.mxu0 %v6327_v3  ;;  %v6330_v5 = vld [vmem:[#allocation5 + $0x64] ss:$8 sps:$4 sm:$0xff]   ;;  %v293_v7 = vld [vmem:[%s8234_s0 + $0x4] sm:$0xf]  ;;  %vm367_vm3 = vcmask 519169   ;;  %vm369_vm4 = vcmask 519168   ;;  %vm7238_vm5 = vmor %vm316_vm1, %vm317_vm2 }
  0x72   :  { %v292_v6 = vld [vmem:[%s8234_s0] sm:$0xf]  ;;  %v294_v8 = vld [vmem:[%s8234_s0 + $0x8] sm:$0xf]  ;;  %v295_v9 = vld [vmem:[%s8234_s0 + $0xc] sm:$0xf] }
  0x73   :  { %v319_v11 = vrot.slane %v292_v6, 7  ;;  %v321_v12 = vrot.slane %v293_v7, 7  ;;  %v6332_v13 = vld [vmem:[#allocation5 + $0x60] ss:$8 sps:$4 sm:$0xff]   ;;  %v324_v14 = vrot.slane %v294_v8, 7  ;;  %v327_v15 = vrot.slane %v295_v9, 7 }
  0x74   :  { %522 = vmatpush1.bf16.msra.mxu0 %v6329_v4  ;;  %v6333_v16 = vld [vmem:[#allocation5 + $0x74] ss:$8 sps:$4 sm:$0xff]   ;;  %v297_v21 = vld [vmem:[%s8234_s0 + $0x14] sm:$0xf]  ;;  %v6335_v24 = vld [vmem:[#allocation5 + $0x70] ss:$8 sps:$4 sm:$0xff]  }
  0x75   :  { %523 = vmatprep.subr.bf16.mxu0 %v6330_v5  ;;  %v320_v17 = vrot.slane %v319_v11, 4  ;;  %v323_v18 = vrot.slane %v321_v12, 4  ;;  %368 = vst.msk [vmem:[#allocation2] sm:$0xe] %vm367_vm3, %v319_v11  ;;  %v296_v19 = vld [vmem:[%s8234_s0 + $0x10] sm:$0xf] }
  0x76   :  { %v326_v20 = vrot.slane %v324_v14, 4  ;;  %v329_v22 = vrot.slane %v327_v15, 4  ;;  %v330_v23 = vrot.slane %v296_v19, 7  ;;  %v6341_v27 = vld [vmem:[#allocation5 + $0x4] ss:$8 sps:$4 sm:$0xff]   ;;  %v333_v28 = vrot.slane %v297_v21, 7 }
  0x77   :  { %v322_v25 = vsel %vm7238_vm5, %v320_v17, %v321_v12  ;;  %v325_v26 = vsel %vm7238_vm5, %v323_v18, %v324_v14  ;;  %v298_v32 = vld [vmem:[%s8234_s0 + $0x18] sm:$0xf]  ;;  %v299_v33 = vld [vmem:[%s8234_s0 + $0x1c] sm:$0xf]  ;;  %v300_v37 = vld [vmem:[%s8234_s0 + $0x20] sm:$0xf] }
  0x78   :  { %524 = vmatpush1.bf16.msra.mxu0 %v6332_v13  ;;  %v328_v29 = vsel %vm7238_vm5, %v326_v20, %v327_v15  ;;  %370 = vst.msk [vmem:[#allocation2 + $0x4] sm:$0xf] %vm369_vm4, %v322_v25  ;;  %371 = vst.msk [vmem:[#allocation2 + $0x8] sm:$0xf] %vm369_vm4, %v325_v26  ;;  %v331_v30 = vsel %vm7238_vm5, %v329_v22, %v330_v23  ;;  %v332_v31 = vrot.slane %v330_v23, 4  ;;  %v335_v34 = vrot.slane %v333_v28, 4 }
  0x79   :  { %525 = vmatprep.subr.bf16.mxu0 %v6333_v16  ;;  %372 = vst.msk [vmem:[#allocation2 + $0xc] sm:$0xf] %vm369_vm4, %v328_v29  ;;  %373 = vst.msk [vmem:[#allocation2 + $0x10] sm:$0xf] %vm369_vm4, %v331_v30  ;;  %v336_v35 = vrot.slane %v298_v32, 7  ;;  %v339_v36 = vrot.slane %v299_v33, 7 }
  0x7a   :  { %v334_v38 = vsel %vm7238_vm5, %v332_v31, %v333_v28  ;;  %v301_v39 = vld [vmem:[%s8234_s0 + $0x24] sm:$0xf]  ;;  %v342_v40 = vrot.slane %v300_v37, 7  ;;  %v302_v49 = vld [vmem:[%s8234_s0 + $0x28] sm:$0xf]  ;;  %vm446_vm6 = vcmask 1046528  }
  0x7b   :  { %374 = vst.msk [vmem:[#allocation2 + $0x14] sm:$0xf] %vm369_vm4, %v334_v38  ;;  %v337_v41 = vsel %vm7238_vm5, %v335_v34, %v336_v35  ;;  %v338_v42 = vrot.slane %v336_v35, 4  ;;  %v341_v43 = vrot.slane %v339_v36, 4  ;;  %v345_v44 = vrot.slane %v301_v39, 7 }
  0x7c   :  { %526 = vmatpush1.bf16.msra.mxu0 %v6335_v24  ;;  %v403_v45 = vld [vmem:[#allocation2] sm:$0xe]  ;;  %375 = vst.msk [vmem:[#allocation2 + $0x18] sm:$0xf] %vm369_vm4, %v337_v41  ;;  %v344_v46 = vrot.slane %v342_v40, 4  ;;  %v348_v53 = vrot.slane %v302_v49, 7 }
  0x7d   :  { %726 = vmatprep.subr.bf16.mxu0 %v6341_v27  ;;  %v340_v47 = vsel %vm7238_vm5, %v338_v42, %v339_v36  ;;  %v343_v48 = vsel %vm7238_vm5, %v341_v43, %v342_v40  ;;  %v303_v50 = vld [vmem:[%s8234_s0 + $0x2c] sm:$0xf]  ;;  %v347_v51 = vrot.slane %v345_v44, 4  ;;  %v6339_v60 = vld [vmem:[#allocation5] ss:$8 sps:$4 sm:$0xff]   ;;  %vm500_vm7 = vcmask 523264  }
  0x7e   :  { %376 = vst.msk [vmem:[#allocation2 + $0x1c] sm:$0xf] %vm369_vm4, %v340_v47  ;;  %v346_v52 = vsel %vm7238_vm5, %v344_v46, %v345_v44  ;;  %377 = vst.msk [vmem:[#allocation2 + $0x20] sm:$0xf] %vm369_vm4, %v343_v48  ;;  %v351_v54 = vrot.slane %v303_v50, 7  ;;  %v350_v59 = vrot.slane %v348_v53, 4 }
  0x7f   :  { %v7292_v55 = vld [vmem:[#allocation2 + $0x4] sm:$0xf]  ;;  %378 = vst.msk [vmem:[#allocation2 + $0x24] sm:$0xf] %vm369_vm4, %v346_v52  ;;  %v349_v58 = vsel %vm7238_vm5, %v347_v51, %v348_v53  ;;  %v6345_v3 = vld [vmem:[#allocation5 + $0x14] ss:$8 sps:$4 sm:$0xff]  }
  0x80   :  { %v7296_v56 = vcombine.low %v403_v45, %v7292_v55  ;;  %v7298_v57 = vld [vmem:[#allocation2 + $0x8] sm:$0xff]   ;;  %379 = vst.msk [vmem:[#allocation2 + $0x28] sm:$0xf] %vm369_vm4, %v349_v58  ;;  %v353_v61 = vrot.slane %v351_v54, 4  ;;  %v352_v2 = vsel %vm7238_vm5, %v350_v59, %v351_v54  ;;  %v6343_v6 = vld [vmem:[#allocation5 + $0x10] ss:$8 sps:$4 sm:$0xff]  }
  0x81   :  { %v448_v63 = vrot.slane %v7298_v57, 1  ;;  %380 = vst.msk [vmem:[#allocation2 + $0x2c] sm:$0xf] %vm369_vm4, %v352_v2  ;;  %v6350_v7 = vld [vmem:[#allocation5 + $0x24] ss:$8 sps:$4 sm:$0xff]   ;;  %vm3589_vm13 = vcmask 1045504  }
  0x82   :  { %v447_v62 = vrot.slane %v7296_v56, 1  ;;  %v7305_v1 = vld [vmem:[#allocation2 + $0x10] sm:$0xff]   ;;  %381 = vst.msk [vmem:[#allocation2 + $0x30] sm:$0x1] %vm128_vm0, %v353_v61  ;;  %v6348_v8 = vld [vmem:[#allocation5 + $0x20] ss:$8 sps:$4 sm:$0xff]  }
  0x83   :  { %v450_v5 = vrot.slane %v7305_v1, 1  ;;  %v6354_v12 = vld [vmem:[#allocation5 + $0x34] ss:$8 sps:$4 sm:$0xff]   ;;  %v6352_v14 = vld [vmem:[#allocation5 + $0x30] ss:$8 sps:$4 sm:$0xff]   ;;  %v632_v2 = vshll.u32 %v7305_v1, 16 }
  0x84   :  { %v449_v4 = vsel %vm446_vm6, %v447_v62, %v448_v63  ;;  %v138_v15 = vld [vmem:[%s8243_s9 + $0x8] sm:$0xf]  ;;  %v6358_v16 = vld [vmem:[#allocation5 + $0x84] ss:$8 sps:$4 sm:$0xff]   ;;  %v139_v18 = vld [vmem:[%s8243_s9 + $0xc] sm:$0xf] }
  0x85   :  { %5660 = vmatmul.mubr.msk.bf16.vlgmr.msra.gmra.mrb[0].mxu0 %vm500_vm7, %v449_v4  ;;  %v451_v9 = vsel %vm446_vm6, %v448_v63, %v450_v5  ;;  %v7316_v11 = vld [vmem:[#allocation2 + $0x18] sm:$0xff]   ;;  %174 = vperm.xlu1 %6323, %v138_v15   ;;  %v136_v17 = vld [vmem:[%s8243_s9] sm:$0xf]  ;;  %v137_v19 = vld [vmem:[%s8243_s9 + $0x4] sm:$0xf]  ;;  %v628_v63 = vshrl.u32 %v7298_v57, 16 }
  0x86   :  { %727 = vmatpush1.bf16.msra.mxu0 %v6339_v60  ;;  %561 = vmatprep.mubr.bf16.mxu0 %v7035_v0  ;;  %v452_v13 = vrot.slane %v7316_v11, 1  ;;  %v7334_v21 = vld [vmem:[#allocation2 + $0x20] sm:$0xff]   ;;  %v6369_v25 = vld [vmem:[#allocation8 + $0x104] ss:$8 sps:$4 sm:$0xff]   ;;  %v143_v29 = vld [vmem:[%s8243_s9 + $0x1c] sm:$0xf] }
  0x87   :  { %728 = vmatprep.subr.bf16.mxu0 %v6345_v3  ;;  %150 = vperm.xlu0 %6322, %v136_v17   ;;  %v141_v22 = vld [vmem:[%s8243_s9 + $0x14] sm:$0xf]  ;;  %v140_v23 = vld [vmem:[%s8243_s9 + $0x10] sm:$0xf]  ;;  %v454_v24 = vrot.slane %v7334_v21, 1  ;;  %v644_v17 = vshrl.u32 %v7316_v11, 16 }
  0x88   :  { %v453_v20 = vsel %vm446_vm6, %v450_v5, %v452_v13  ;;  %v6371_v26 = vld [vmem:[#allocation8 + $0x100] ss:$8 sps:$4 sm:$0xff]   ;;  %v6372_v27 = vld [vmem:[#allocation8 + $0x114] ss:$8 sps:$4 sm:$0xff]   ;;  %1604 = vmatprep.subr.bf16.mxu1 %v6369_v25  ;;  %v142_v30 = vld [vmem:[%s8243_s9 + $0x18] sm:$0xf] }
  0x89   :  { %186 = vperm.xlu1 %6323, %v139_v18   ;;  %v7345_v28 = vld [vmem:[#allocation2 + $0x28] sm:$0xff]   ;;  %1605 = vmatpush1.bf16.msra.mxu1 %v6371_v26  ;;  %v6374_v31 = vld [vmem:[#allocation8 + $0x110] ss:$8 sps:$4 sm:$0xff]   ;;  %v455_v32 = vsel %vm446_vm6, %v452_v13, %v454_v24  ;;  %v144_v35 = vld [vmem:[%s8243_s9 + $0x20] sm:$0xf]  ;;  %v648_v18 = vshll.u32 %v7334_v21, 16 }
  0x8a   :  { %729 = vmatpush1.bf16.msra.mxu0 %v6343_v6  ;;  %v145_v33 = vld [vmem:[%s8243_s9 + $0x24] sm:$0xf]  ;;  %1606 = vmatprep.subr.bf16.mxu1 %v6372_v27  ;;  %v6375_v34 = vld [vmem:[#allocation8 + $0x124] ss:$8 sps:$4 sm:$0xff]   ;;  %v6377_v36 = vld [vmem:[#allocation8 + $0x120] ss:$8 sps:$4 sm:$0xff]  }
  0x8b   :  { %730 = vmatprep.subr.bf16.mxu0 %v6350_v7  ;;  %162 = vperm.xlu0 %6322, %v137_v19   ;;  %v6378_v37 = vld [vmem:[#allocation8 + $0x134] ss:$8 sps:$4 sm:$0xff]   ;;  %v456_v39 = vrot.slane %v7345_v28, 1  ;;  %v147_v40 = vld [vmem:[%s8243_s9 + $0x2c] sm:$0xf]  ;;  %v634_v6 = vrot.slane %v632_v2, 1 }
  0x8c   :  { %v382_v38 = vld [vmem:[#allocation2] sm:$0xf]  ;;  %v146_v41 = vld [vmem:[%s8243_s9 + $0x28] sm:$0xf]  ;;  %v6380_v42 = vld [vmem:[#allocation8 + $0x130] ss:$8 sps:$4 sm:$0xff]  }
  0x8d   :  { %5661 = vmatmul.mubr.msk.bf16.gmra.mrb[4].mxu0 %vm500_vm7, %v451_v9  ;;  %210 = vperm.xlu1 %6323, %v141_v22   ;;  %v7369_v43 = vld [vmem:[#allocation2 + $0x30] ss:$0 sps:$4 sm:$0x11]   ;;  %v5666_v45 = vcombine.low %v382_v38, %v7292_v55  ;;  %v457_v46 = vsel %vm446_vm6, %v454_v24, %v456_v39  ;;  %v6383_v47 = vld [vmem:[#allocation8 + $0x140] ss:$8 sps:$4 sm:$0xff]   ;;  %v624_v55 = vshll.u32 %v7298_v57, 16 }
  0x8e   :  { %571 = vmatprep.mubr.bf16.mxu0 %v7035_v0  ;;  %731 = vmatpush1.bf16.msra.mxu0 %v6348_v8  ;;  %v6381_v44 = vld [vmem:[#allocation8 + $0x144] ss:$8 sps:$4 sm:$0xff]   ;;  %v6384_v48 = vld [vmem:[#allocation8 + $0x154] ss:$8 sps:$4 sm:$0xff]   ;;  %v458_v49 = vrot.slane %v7369_v43, 1  ;;  %v640_v57 = vshll.u32 %v7316_v11, 16 }
  0x8f   :  { %732 = vmatprep.subr.bf16.mxu0 %v6354_v12  ;;  %198 = vperm.xlu0 %6322, %v140_v23   ;;  %v619_v50 = vshll.u32 %v5666_v45, 16  ;;  %v6386_v51 = vld [vmem:[#allocation8 + $0x150] ss:$8 sps:$4 sm:$0xff]   ;;  %v617_v53 = vshrl.u32 %v5666_v45, 16  ;;  %v626_v59 = vrot.slane %v624_v55, 1  ;;  %v636_v12 = vshrl.u32 %v7305_v1, 16 }
  0x90   :  { %1607 = vmatpush1.bf16.msra.mxu1 %v6374_v31  ;;  %v459_v52 = vsel %vm446_vm6, %v456_v39, %v458_v49  ;;  %vm615_vm8 = vsmask.f32 7424  ;;  %v6356_v60 = vld [vmem:[#allocation5 + $0x80] ss:$8 sps:$4 sm:$0xff]   ;;  %v6361_v61 = vld [vmem:[#allocation5 + $0x94] ss:$8 sps:$4 sm:$0xff]  }
  0x91   :  { %234 = vperm.xlu1 %6323, %v143_v29   ;;  %1608 = vmatprep.subr.bf16.mxu1 %v6375_v34  ;;  %v621_v54 = vrot.slane %v619_v50, 1  ;;  %v6359_v3 = vld [vmem:[#allocation5 + $0x90] ss:$8 sps:$4 sm:$0xff]   ;;  %v6364_v4 = vld [vmem:[#allocation5 + $0xa4] ss:$8 sps:$4 sm:$0xff]   ;;  %v630_v5 = vor.u32 %v628_v63, %v626_v59  ;;  %v642_v15 = vrot.slane %v640_v57, 1 }
  0x92   :  { %733 = vmatpush1.bf16.msra.mxu0 %v6352_v14  ;;  %v6362_v7 = vld [vmem:[#allocation5 + $0xa0] ss:$8 sps:$4 sm:$0xff]   ;;  %v6367_v8 = vld [vmem:[#allocation5 + $0xb4] ss:$8 sps:$4 sm:$0xff]   ;;  %v6365_v13 = vld [vmem:[#allocation5 + $0xb0] ss:$8 sps:$4 sm:$0xff]   ;;  %v638_v14 = vor.u32 %v636_v12, %v634_v6 }
  0x93   :  { %928 = vmatprep.subr.bf16.mxu0 %v6358_v16  ;;  %222 = vperm.xlu0 %6322, %v142_v30   ;;  %v622_v58 = vor.u32 %v621_v54, %v617_v53  ;;  %v635_v9 = vsel %vm615_vm8, %v630_v5, %v634_v6  ;;  %v646_v1 = vor.u32 %v644_v17, %v642_v15  ;;  %v650_v19 = vrot.slane %v648_v18, 1  ;;  %v6368_v49 = vld [vmem:[#allocation2 + $0x30] ss:$0 sps:$4 sm:$0x33]   ;;  %v6395_v6 = vld [vmem:[#allocation8 + $0x180] ss:$8 sps:$4 sm:$0xff]  }
  0x94   :  { %1609 = vmatpush1.bf16.msra.mxu1 %v6377_v36  ;;  %v643_v16 = vsel %vm615_vm8, %v638_v14, %v642_v15  ;;  %v652_v22 = vshrl.u32 %v7334_v21, 16  ;;  %v656_v23 = vshll.u32 %v7345_v28, 16  ;;  %v660_v26 = vshrl.u32 %v7345_v28, 16  ;;  %v6393_v5 = vld [vmem:[#allocation8 + $0x184] ss:$8 sps:$4 sm:$0xff]  }
  0x95   :  { %5662 = vmatmul.mubr.msk.bf16.gmra.mrb[8].mxu0 %vm500_vm7, %v453_v20  ;;  %258 = vperm.xlu1 %6323, %v145_v33   ;;  %v627_v62 = vsel %vm615_vm8, %v622_v58, %v626_v59  ;;  %v651_v20 = vsel %vm615_vm8, %v646_v1, %v650_v19  ;;  %v664_v27 = vshll.u32 %v7369_v43, 16  ;;  %v834_v30 = vshrl.u32 %v7296_v56, 16  ;;  %v6407_v14 = vld [vmem:[#allocation8 + $0x1c0] ss:$8 sps:$4 sm:$0xff]   ;;  %v6408_v15 = vld [vmem:[#allocation8 + $0x1d4] ss:$8 sps:$4 sm:$0xff]  }
  0x96   :  { %581 = vmatprep.mubr.bf16.mxu0 %v7035_v0  ;;  %1610 = vmatprep.subr.bf16.mxu1 %v6378_v37  ;;  %v654_v11 = vor.u32 %v652_v22, %v650_v19  ;;  %v658_v24 = vrot.slane %v656_v23, 1  ;;  %v837_v31 = vshll.u32 %v7296_v56, 16  ;;  %v842_v36 = vrot.slane %v624_v55, 2  ;;  %v6414_v1 = vld [vmem:[#allocation8 + $0x1f4] ss:$8 sps:$4 sm:$0xff]  }
  0x97   :  { %246 = vperm.xlu0 %6322, %v144_v35   ;;  %v666_v21 = vrot.slane %v664_v27, 1  ;;  %v836_v34 = vrot.slane %v834_v30, 1  ;;  %vm832_vm9 = vsmask.f32 6400  ;;  %v845_v39 = vrot.slane %v636_v12, 1 }
  0x98   :  { %1611 = vmatpush1.bf16.msra.mxu1 %v6380_v42  ;;  %v659_v25 = vsel %vm615_vm8, %v654_v11, %v658_v24  ;;  %v662_v29 = vor.u32 %v660_v26, %v658_v24  ;;  %v839_v35 = vrot.slane %v837_v31, 2  ;;  %v849_v42 = vrot.slane %v644_v17, 1  ;;  %v6402_v12 = vld [vmem:[#allocation8 + $0x1b4] ss:$8 sps:$4 sm:$0xff]   ;;  %v6411_v17 = vld [vmem:[#allocation8 + $0x1e4] ss:$8 sps:$4 sm:$0xff]  }
  0x99   :  { %282 = vperm.xlu1 %6323, %v147_v40   ;;  %1612 = vmatprep.subr.bf16.mxu1 %v6381_v44  ;;  %v846_v40 = vrot.slane %v632_v2, 2  ;;  %v850_v43 = vrot.slane %v640_v57, 2  ;;  %v862_v54 = vshrl.u32 %v6368_v49, 16  ;;  %v865_v55 = vshll.u32 %v6368_v49, 16  ;;  %v6389_v2 = vld [vmem:[#allocation8 + $0x160] ss:$8 sps:$4 sm:$0xff]  }
  0x9a   :  { %v667_v33 = vsel %vm615_vm8, %v662_v29, %v666_v21  ;;  %v840_v28 = vor.u32 %v839_v35, %v836_v34  ;;  %v6404_v57 = vld [vmem:[#allocation8 + $0x1b0] ss:$8 sps:$4 sm:$0xff]   ;;  %v7036_v24 = vmov 839922192   ;;  %v1045_v31 = vld [vmem:[%s8239_s5] sm:$0x3] }
  0x9b   :  { %270 = vperm.xlu0 %6322, %v146_v41   ;;  %v847_v56 = vor.u32 %v846_v40, %v845_v39  ;;  %v851_v44 = vor.u32 %v850_v43, %v849_v42  ;;  %v864_v59 = vrot.slane %v862_v54, 1  ;;  %v6416_v19 = vld [vmem:[#allocation8 + $0x1f0] ss:$8 sps:$4 sm:$0xff]   ;;  %vm2680_vm10 = vsmask.f32 3328 }
  0x9c   :  { %1613 = vmatpush1.bf16.msra.mxu1 %v6383_v47  ;;  %v854_v47 = vrot.slane %v648_v18, 2  ;;  %v6413_v18 = vld [vmem:[#allocation8 + $0x1e0] ss:$8 sps:$4 sm:$0xff]   ;;  %vm2681_vm11 = vsmask.f32 7440 }
  0x9d   :  { %5663 = vmatmul.mubr.msk.bf16.gmra.mrb[12].mxu0 %vm500_vm7, %v455_v32  ;;  %1614 = vmatprep.subr.bf16.mxu1 %v6384_v48  ;;  %v841_v32 = vrot.slane %v628_v63, 1  ;;  %v852_v45 = vsel %vm832_vm9, %v847_v56, %v851_v44  ;;  %v6387_v63 = vld [vmem:[#allocation8 + $0x164] ss:$8 sps:$4 sm:$0xff]   ;;  %vm7850_vm12 = vmor %vm2680_vm10, %vm2681_vm11 }
  0x9e   :  { %591 = vmatprep.mubr.bf16.mxu0 %v7035_v0 }
  0x9f   :  { %v843_v37 = vor.u32 %v842_v36, %v841_v32 }
  0xa0   :  { %1615 = vmatpush1.bf16.msra.mxu1 %v6386_v51  ;;  %v857_v51 = vrot.slane %v660_v26, 1 }
  0xa1   :  { %v844_v38 = vsel %vm832_vm9, %v840_v28, %v843_v37  ;;  %v848_v41 = vsel %vm832_vm9, %v843_v37, %v847_v56  ;;  %1616 = vmatprep.subr.bf16.mxu1 %v6387_v63 }
  0xa4   :  { %1617 = vmatpush1.bf16.msra.mxu1 %v6389_v2 }
  0xa5   :  { %5664 = vmatmul.mubr.msk.bf16.gmra.mrb[16].mxu0 %vm500_vm7, %v457_v46  ;;  %v853_v46 = vrot.slane %v652_v22, 1  ;;  %v8248_v22 = vlaneseq }
  0xa6   :  { %601 = vmatprep.mubr.bf16.mxu0 %v7035_v0 }
  0xa7   :  { %v855_v48 = vor.u32 %v854_v47, %v853_v46  ;;  %v7428_v26 = vshrl.u32 %v8248_v22, 7 }
  0xa9   :  { %v856_v50 = vsel %vm832_vm9, %v851_v44, %v855_v48  ;;  %v7431_v30 = vsub.s32 0, %v7428_v26  ;;  %v7437_v32 = vsub.s32 1, %v7428_v26 }
  0xab   :  { %v7445_v35 = vrot.slane %v1045_v31, %v7431_v30  ;;  %v7450_v28 = vrot.slane %v1045_v31, %v7437_v32 }
  0xad   :  { %5665 = vmatmul.mubr.msk.bf16.gmra.mrb[20].mxu0 %vm500_vm7, %v459_v52  ;;  %v858_v52 = vrot.slane %v656_v23, 2 }
  0xae   :  { %758 = vmatprep.mubr.bf16.mxu0 %v7035_v0 }
  0xaf   :  { %v859_v53 = vor.u32 %v858_v52, %v857_v51 }
  0xb1   :  { %v860_v58 = vsel %vm832_vm9, %v855_v48, %v859_v53 }
  0xb5   :  { %5675 = vmatmul.mubr.msk.bf16.vlgmr.msra.gmra.mrb[0].mxu0 %vm500_vm7, %v627_v62 }
  0xb6   :  { %929 = vmatpush1.bf16.msra.mxu0 %v6356_v60  ;;  %768 = vmatprep.mubr.bf16.mxu0 %v7035_v0  ;;  %v867_v60 = vrot.slane %v865_v55, 2 }
  0xb7   :  { %930 = vmatprep.subr.bf16.mxu0 %v6361_v61 }
  0xb8   :  { %v868_v61 = vor.u32 %v867_v60, %v864_v59 }
  0xba   :  { %931 = vmatpush1.bf16.msra.mxu0 %v6359_v3  ;;  %v869_v62 = vsel %vm832_vm9, %v859_v53, %v868_v61  ;;  %v6390_v3 = vld [vmem:[#allocation8 + $0x174] ss:$8 sps:$4 sm:$0xff]  }
  0xbb   :  { %932 = vmatprep.subr.bf16.mxu0 %v6364_v4  ;;  %v6392_v4 = vld [vmem:[#allocation8 + $0x170] ss:$8 sps:$4 sm:$0xff]   ;;  %1618 = vmatprep.subr.bf16.mxu1 %v6390_v3 }
  0xbc   :  { %1619 = vmatpush1.bf16.msra.mxu1 %v6392_v4 }
  0xbd   :  { %5676 = vmatmul.mubr.msk.bf16.gmra.mrb[4].mxu0 %vm500_vm7, %v635_v9  ;;  %1620 = vmatprep.subr.bf16.mxu1 %v6393_v5  ;;  %v6401_v9 = vld [vmem:[#allocation8 + $0x1a0] ss:$8 sps:$4 sm:$0xff]  }
  0xbe   :  { %778 = vmatprep.mubr.bf16.mxu0 %v7035_v0  ;;  %933 = vmatpush1.bf16.msra.mxu0 %v6362_v7  ;;  %v6396_v7 = vld [vmem:[#allocation8 + $0x194] ss:$8 sps:$4 sm:$0xff]  }
  0xbf   :  { %934 = vmatprep.subr.bf16.mxu0 %v6367_v8  ;;  %v6398_v8 = vld [vmem:[#allocation8 + $0x190] ss:$8 sps:$4 sm:$0xff]  }
  0xc0   :  { %1621 = vmatpush1.bf16.msra.mxu1 %v6395_v6 }
  0xc1   :  { %1622 = vmatprep.subr.bf16.mxu1 %v6396_v7 }
  0xc2   :  { %935 = vmatpush1.bf16.msra.mxu0 %v6365_v13  ;;  %v6405_v13 = vld [vmem:[#allocation8 + $0x1c4] ss:$8 sps:$4 sm:$0xff]  }
  0xc4   :  { %1623 = vmatpush1.bf16.msra.mxu1 %v6398_v8 }
  0xc5   :  { %5677 = vmatmul.mubr.msk.bf16.gmra.mrb[8].mxu0 %vm500_vm7, %v643_v16  ;;  %v6410_v16 = vld [vmem:[#allocation8 + $0x1d0] ss:$8 sps:$4 sm:$0xff]  }
  0xc6   :  { %788 = vmatprep.mubr.bf16.mxu0 %v7035_v0 }
  0xcd   :  { %5678 = vmatmul.mubr.msk.bf16.gmra.mrb[12].mxu0 %vm500_vm7, %v651_v20  ;;  %v6419_v20 = vld [vmem:[#allocation8 + $0x4] ss:$8 sps:$4 sm:$0xff]  }
  0xce   :  { %798 = vmatprep.mubr.bf16.mxu0 %v7035_v0 }
  0xd5   :  { %5679 = vmatmul.mubr.msk.bf16.gmra.mrb[16].mxu0 %vm500_vm7, %v659_v25  ;;  %v154_v25 = vunpack.c.l.s4 %v7036_v24 }
  0xd6   :  { %808 = vmatprep.mubr.bf16.mxu0 %v7035_v0 }
  0xd7   :  { %v155_v21 = vunpack.c.0.s8 %v154_v25 }
  0xdd   :  { %5680 = vmatmul.mubr.msk.bf16.gmra.mrb[20].mxu0 %vm500_vm7, %v667_v33  ;;  %v7440_v33 = vsub.s32 %v155_v21, %v7428_v26 }
  0xde   :  { %960 = vmatprep.mubr.bf16.mxu0 %v7035_v0 }
  0xe5   :  { %5690 = vmatmul.mubr.msk.bf16.vlgmr.msra.gmra.mrb[0].mxu0 %vm500_vm7, %v844_v38 }
  0xe6   :  { %970 = vmatprep.mubr.bf16.mxu0 %v7035_v0 }
  0xed   :  { %5691 = vmatmul.mubr.msk.bf16.gmra.mrb[4].mxu0 %vm500_vm7, %v848_v41 }
  0xee   :  { %980 = vmatprep.mubr.bf16.mxu0 %v7035_v0 }
  0xf5   :  { %5692 = vmatmul.mubr.msk.bf16.gmra.mrb[8].mxu0 %vm500_vm7, %v852_v45 }
  0xf6   :  { %990 = vmatprep.mubr.bf16.mxu0 %v7035_v0 }
  0xfd   :  { %5693 = vmatmul.mubr.msk.bf16.gmra.mrb[12].mxu0 %vm500_vm7, %v856_v50 }
  0xfe   :  { %1000 = vmatprep.mubr.bf16.mxu0 %v7035_v0 }
 0x104   :  { %v175_v23 = vpop.permute.xlu1 %174 }
 0x105   :  { %5694 = vmatmul.mubr.msk.bf16.gmra.mrb[16].mxu0 %vm500_vm7, %v860_v58  ;;  %v183_v4 = vrot.slane %v175_v23, %v7440_v33 }
 0x106   :  { %1010 = vmatprep.mubr.bf16.mxu0 %v7035_v0  ;;  %v6399_v0 = vld [vmem:[#allocation8 + $0x1a4] ss:$8 sps:$4 sm:$0xff]   ;;  %v151_v11 = vpop.permute.xlu0 %150 }
 0x107   :  { %1624 = vmatprep.subr.bf16.mxu1 %v6399_v0  ;;  %v159_v38 = vrot.slane %v151_v11, %v7440_v33 }
 0x108   :  { %1625 = vmatpush1.bf16.msra.mxu1 %v6401_v9  ;;  %v187_v27 = vpop.permute.xlu1 %186 }
 0x109   :  { %1626 = vmatprep.subr.bf16.mxu1 %v6402_v12  ;;  %v195_v5 = vrot.slane %v187_v27, %v7440_v33 }
 0x10a   :  { %v163_v29 = vpop.permute.xlu0 %162 }
 0x10b   :  { %v171_v39 = vrot.slane %v163_v29, %v7440_v33 }
 0x10c   :  { %1627 = vmatpush1.bf16.msra.mxu1 %v6404_v57  ;;  %v7442_v34 = vpop.permute.xlu1 %210 }
 0x10d   :  { %5695 = vmatmul.mubr.msk.bf16.gmra.mrb[20].mxu0 %vm500_vm7, %v869_v62  ;;  %1628 = vmatprep.subr.bf16.mxu1 %v6405_v13  ;;  %v7462_v48 = vcombine.low %v159_v38, %v171_v39 }
 0x10e   :  { %v7447_v36 = vpop.permute.xlu0 %198 }
 0x110   :  { %1629 = vmatpush1.bf16.msra.mxu1 %v6407_v14  ;;  %v7456_v43 = vpop.permute.xlu1 %234 }
 0x111   :  { %1630 = vmatprep.subr.bf16.mxu1 %v6408_v15  ;;  %v243_v27 = vrot.slane %v7456_v43, %v7440_v33 }
 0x112   :  { %v7459_v46 = vpop.permute.xlu0 %222 }
 0x113   :  { %v231_v29 = vrot.slane %v7459_v46, %v7440_v33 }
 0x114   :  { %1631 = vmatpush1.bf16.msra.mxu1 %v6410_v16  ;;  %v259_v59 = vpop.permute.xlu1 %258  ;;  %v7472_v16 = vcombine.low %v183_v4, %v195_v5 }
 0x115   :  { %1632 = vmatprep.subr.bf16.mxu1 %v6411_v17  ;;  %v219_v17 = vrot.slane %v7442_v34, %v7440_v33 }
 0x116   :  { %v247_v63 = vpop.permute.xlu0 %246 }
 0x118   :  { %1633 = vmatpush1.bf16.msra.mxu1 %v6413_v18  ;;  %v283_v18 = vpop.permute.xlu1 %282 }
 0x119   :  { %1634 = vmatprep.subr.bf16.mxu1 %v6414_v1 }
 0x11a   :  { %v271_v11 = vpop.permute.xlu0 %270 }
 0x11c   :  { %1635 = vmatpush1.bf16.msra.mxu1 %v6416_v19  ;;  %v207_v19 = vrot.slane %v7447_v36, %v7440_v33 }
 0x11d   :  { %1978 = vmatprep.subr.bf16.mxu1 %v6419_v20 }
 0x1b8   :  { %v962_v37 = vpop.f32.mrb[0].mxu0 }
 0x1b9   :  { %v1057_v40 = vadd.f32 %v7445_v35, %v962_v37  ;;  %v964_v56 = vpop.f32.mrb[1].mxu0  ;;  %v267_v37 = vrot.slane %v259_v59, %v7440_v33  ;;  %v7498_v59 = vcombine.low %v231_v29, %v243_v27 }
 0x1ba   :  { %v1058_v41 = vadd.f32 %v7450_v28, %v964_v56  ;;  %v966_v42 = vpop.f32.mrb[2].mxu0  ;;  %v255_v56 = vrot.slane %v247_v63, %v7440_v33 }
 0x1bb   :  { %v1059_v44 = vadd.f32 %v7445_v35, %v966_v42  ;;  %v968_v45 = vpop.f32.mrb[3].mxu0  ;;  %v1081_v49 = vmax.f32 %v1057_v40, 0.0  ;;  %v279_v42 = vrot.slane %v271_v11, %v7440_v33 }
 0x1bc   :  { %v1060_v47 = vadd.f32 %v7450_v28, %v968_v45  ;;  %v1082_v51 = vmax.f32 %v1058_v41, 0.0  ;;  %v291_v41 = vrot.slane %v283_v18, %v7440_v33 }
 0x1bd   :  { %v1083_v50 = vmax.f32 %v1059_v44, 0.0 }
 0x1be   :  { %v1084_v52 = vmax.f32 %v1060_v47, 0.0  ;;  %v7502_v33 = vcombine.low %v279_v42, %v291_v41  ;;  %v6417_v42 = vld [vmem:[#allocation8] ss:$8 sps:$4 sm:$0xff]  }
 0x1bf   :  { %v1105_v53 = vpack.c.bf16 %v1083_v50, %v1081_v49  ;;  %v7496_v49 = vcombine.low %v207_v19, %v219_v17 }
 0x1c0   :  { %v1106_v54 = vpack.c.bf16 %v1084_v52, %v1082_v51  ;;  %v972_v55 = vpop.f32.mrb[4].mxu0 }
 0x1c1   :  { %v1153_v58 = vmul.bf16 %v7462_v48, %v1105_v53  ;;  %v1061_v60 = vadd.f32 %v7445_v35, %v972_v55  ;;  %v974_v61 = vpop.f32.mrb[5].mxu0 }
 0x1c2   :  { %v1154_v62 = vmul.bf16 %v7462_v48, %v1106_v54  ;;  %v1062_v2 = vadd.f32 %v7450_v28, %v974_v61  ;;  %v976_v3 = vpop.f32.mrb[6].mxu0 }
 0x1c3   :  { %v1063_v6 = vadd.f32 %v7445_v35, %v976_v3  ;;  %v978_v7 = vpop.f32.mrb[7].mxu0  ;;  %v1085_v12 = vmax.f32 %v1061_v60, 0.0  ;;  %v7500_v60 = vcombine.low %v255_v56, %v267_v37 }
 0x1c4   :  { %v5702_v8 = vcombine.low %v1153_v58, %v1154_v62  ;;  %v5703_v0 = vcombine.high %v1153_v58, %v1154_v62  ;;  %v1064_v9 = vadd.f32 %v7450_v28, %v978_v7  ;;  %v1086_v14 = vmax.f32 %v1062_v2, 0.0 }
 0x1c5   :  { %v1087_v57 = vmax.f32 %v1063_v6, 0.0 }
 0x1c6   :  { %v1213_v13 = vrot.slane %v5702_v8, 7  ;;  %v1088_v15 = vmax.f32 %v1064_v9, 0.0  ;;  %v1215_v23 = vrot.slane %v5703_v0, 7 }
 0x1c7   :  { %v1107_v1 = vpack.c.bf16 %v1087_v57, %v1085_v12 }
 0x1c8   :  { %v1214_v20 = vrot.slane %v1213_v13, 4  ;;  %1261 = vst [vmem:[#allocation3] sm:$0xee] %v1213_v13  ;;  %v1108_v24 = vpack.c.bf16 %v1088_v15, %v1086_v14  ;;  %v982_v25 = vpop.f32.mrb[8].mxu0  ;;  %v1217_v50 = vrot.slane %v1215_v23, 4 }
 0x1c9   :  { %v1155_v21 = vmul.bf16 %v7472_v16, %v1107_v1  ;;  %v1065_v31 = vadd.f32 %v7445_v35, %v982_v25  ;;  %v984_v34 = vpop.f32.mrb[9].mxu0 }
 0x1ca   :  { %v7486_v36 = vsel %vm7238_vm5, %v1214_v20, %v1215_v23  ;;  %v1156_v38 = vmul.bf16 %v7472_v16, %v1108_v24  ;;  %v1066_v39 = vadd.f32 %v7450_v28, %v984_v34  ;;  %v986_v40 = vpop.f32.mrb[10].mxu0 }
 0x1cb   :  { %v1067_v43 = vadd.f32 %v7445_v35, %v986_v40  ;;  %v988_v44 = vpop.f32.mrb[11].mxu0  ;;  %v1089_v51 = vmax.f32 %v1065_v31, 0.0 }
 0x1cc   :  { %v5704_v45 = vcombine.low %v1155_v21, %v1156_v38  ;;  %v5705_v46 = vcombine.high %v1155_v21, %v1156_v38  ;;  %v1068_v47 = vadd.f32 %v7450_v28, %v988_v44  ;;  %v1090_v55 = vmax.f32 %v1066_v39, 0.0 }
 0x1cd   :  { %v1091_v52 = vmax.f32 %v1067_v43, 0.0 }
 0x1ce   :  { %v1218_v53 = vrot.slane %v5704_v45, 7  ;;  %v1221_v54 = vrot.slane %v5705_v46, 7  ;;  %v1092_v58 = vmax.f32 %v1068_v47, 0.0 }
 0x1cf   :  { %v1109_v61 = vpack.c.bf16 %v1091_v52, %v1089_v51  ;;  %v1319_v62 = vld [vmem:[#allocation3] sm:$0xee] }
 0x1d0   :  { %v7504_v63 = vld [vmem:[#allocation3] sm:$0xff]  ;;  %v1219_v2 = vsel %vm7238_vm5, %v1217_v50, %v1218_v53  ;;  %v1220_v3 = vrot.slane %v1218_v53, 4  ;;  %v1223_v4 = vrot.slane %v1221_v54, 4  ;;  %v1110_v5 = vpack.c.bf16 %v1092_v58, %v1090_v55  ;;  %v992_v6 = vpop.f32.mrb[12].mxu0 }
 0x1d1   :  { %v1157_v7 = vmul.bf16 %v7496_v49, %v1109_v61  ;;  %v1069_v8 = vadd.f32 %v7445_v35, %v992_v6  ;;  %v994_v0 = vpop.f32.mrb[13].mxu0  ;;  %v7511_v9 = vcombine.high %v1319_v62, %v7486_v36  ;;  %v7514_v12 = vcombine.low %v1319_v62, %v7486_v36  ;;  %v6422_v52 = vld [vmem:[#allocation8 + $0x14] ss:$8 sps:$4 sm:$0xff]  }
 0x1d2   :  { %v1222_v57 = vsel %vm7238_vm5, %v1220_v3, %v1221_v54  ;;  %v1158_v13 = vmul.bf16 %v7496_v49, %v1110_v5  ;;  %v1070_v14 = vadd.f32 %v7450_v28, %v994_v0  ;;  %v996_v15 = vpop.f32.mrb[14].mxu0  ;;  %v5761_v17 = vcombine.high %v7504_v63, %v7486_v36  ;;  %v6420_v0 = vld [vmem:[#allocation8 + $0x10] ss:$8 sps:$4 sm:$0xff]  }
 0x1d3   :  { %v1093_v18 = vmax.f32 %v1069_v8, 0.0  ;;  %v1071_v1 = vadd.f32 %v7445_v35, %v996_v15  ;;  %v998_v19 = vpop.f32.mrb[15].mxu0  ;;  %v7523_v20 = vcombine.high %v1219_v2, %v1222_v57  ;;  %v1409_v23 = vrot.slane %v7511_v9, 1 }
 0x1d4   :  { %v5706_v11 = vcombine.low %v1157_v7, %v1158_v13  ;;  %v5707_v24 = vcombine.high %v1157_v7, %v1158_v13  ;;  %v1094_v25 = vmax.f32 %v1070_v14, 0.0  ;;  %v1072_v27 = vadd.f32 %v7450_v28, %v998_v19 }
 0x1d5   :  { %v1095_v29 = vmax.f32 %v1071_v1, 0.0  ;;  %v1410_v21 = vrot.slane %v7523_v20, 1  ;;  %v7528_v31 = vcombine.low %v1219_v2, %v1222_v57  ;;  %v1406_v34 = vrot.slane %v7514_v12, 1  ;;  %v6425_v1 = vld [vmem:[#allocation8 + $0x24] ss:$8 sps:$4 sm:$0xff]  }
 0x1d6   :  { %v1224_v37 = vrot.slane %v5706_v11, 7  ;;  %v1227_v38 = vrot.slane %v5707_v24, 7  ;;  %v1096_v39 = vmax.f32 %v1072_v27, 0.0  ;;  %v1715_v40 = vshrl.u32 %v5761_v17, 16 }
 0x1d7   :  { %v1111_v56 = vpack.c.bf16 %v1095_v29, %v1093_v18  ;;  %v1411_v41 = vsel %vm446_vm6, %v1409_v23, %v1410_v21  ;;  %v1407_v43 = vrot.slane %v7528_v31, 1  ;;  %v1717_v44 = vshll.u32 %v5761_v17, 16 }
 0x1d8   :  { %v1225_v45 = vsel %vm7238_vm5, %v1223_v4, %v1224_v37  ;;  %v1226_v46 = vrot.slane %v1224_v37, 4  ;;  %v1229_v47 = vrot.slane %v1227_v38, 4  ;;  %v1112_v50 = vpack.c.bf16 %v1096_v39, %v1094_v25  ;;  %v1002_v51 = vpop.f32.mrb[16].mxu0  ;;  %1636 = vmatprep.mubr.bf16.mxu1 %v1411_v41  ;;  %v6423_v39 = vld [vmem:[#allocation8 + $0x20] ss:$8 sps:$4 sm:$0xff]  }
 0x1d9   :  { %v1159_v53 = vmul.bf16 %v7498_v59, %v1111_v56  ;;  %v1073_v54 = vadd.f32 %v7445_v35, %v1002_v51  ;;  %v1004_v55 = vpop.f32.mrb[17].mxu0  ;;  %v1408_v58 = vsel %vm446_vm6, %v1406_v34, %v1407_v43  ;;  %v1719_v61 = vrot.slane %v1717_v44, 1 }
 0x1da   :  { %v1228_v62 = vsel %vm7238_vm5, %v1226_v46, %v1227_v38  ;;  %v1160_v2 = vmul.bf16 %v7498_v59, %v1112_v50  ;;  %v1074_v3 = vadd.f32 %v7450_v28, %v1004_v55  ;;  %v1006_v4 = vpop.f32.mrb[18].mxu0  ;;  %1637 = vmatmul.mubr.bf16.vlgmr.msra.gmra.mrb[0].mxu1 %v1408_v58  ;;  %v1722_v5 = vshll.u32 %v7523_v20, 16  ;;  %v6428_v50 = vld [vmem:[#allocation8 + $0x34] ss:$8 sps:$4 sm:$0xff]  }
 0x1db   :  { %v1097_v6 = vmax.f32 %v1073_v54, 0.0  ;;  %v1075_v7 = vadd.f32 %v7445_v35, %v1006_v4  ;;  %v1008_v8 = vpop.f32.mrb[19].mxu0  ;;  %1979 = vmatpush1.bf16.msra.mxu1 %v6417_v42  ;;  %v7544_v57 = vcombine.high %v1225_v45, %v1228_v62  ;;  %v7546_v13 = vcombine.low %v1225_v45, %v1228_v62 }
 0x1dc   :  { %v5708_v14 = vcombine.low %v1159_v53, %v1160_v2  ;;  %v5709_v15 = vcombine.high %v1159_v53, %v1160_v2  ;;  %v1098_v17 = vmax.f32 %v1074_v3, 0.0  ;;  %v1076_v18 = vadd.f32 %v7450_v28, %v1008_v8  ;;  %1980 = vmatprep.subr.bf16.mxu1 %v6422_v52  ;;  %v6426_v2 = vld [vmem:[#allocation8 + $0x30] ss:$8 sps:$4 sm:$0xff]  }
 0x1dd   :  { %v1099_v19 = vmax.f32 %v1075_v7, 0.0  ;;  %v1414_v23 = vrot.slane %v7544_v57, 1  ;;  %v1412_v11 = vrot.slane %v7546_v13, 1  ;;  %v1720_v24 = vor.u32 %v1719_v61, %v1715_v40 }
 0x1de   :  { %v1230_v25 = vrot.slane %v5708_v14, 7  ;;  %v1233_v27 = vrot.slane %v5709_v15, 7  ;;  %v1100_v29 = vmax.f32 %v1076_v18, 0.0  ;;  %v7553_v34 = vrot.slane %v1722_v5, 1  ;;  %v6431_v14 = vld [vmem:[#allocation8 + $0x44] ss:$8 sps:$4 sm:$0xff]  }
 0x1df   :  { %v1113_v37 = vpack.c.bf16 %v1099_v19, %v1097_v6  ;;  %1981 = vmatpush1.bf16.msra.mxu1 %v6420_v0  ;;  %v1415_v38 = vsel %vm446_vm6, %v1410_v21, %v1414_v23  ;;  %v1413_v56 = vsel %vm446_vm6, %v1407_v43, %v1412_v11  ;;  %v5760_v41 = vcombine.low %v7504_v63, %v7486_v36 }
 0x1e0   :  { %v1231_v40 = vsel %vm7238_vm5, %v1229_v47, %v1230_v25  ;;  %v1232_v42 = vrot.slane %v1230_v25, 4  ;;  %v1235_v44 = vrot.slane %v1233_v27, 4  ;;  %v1114_v45 = vpack.c.bf16 %v1100_v29, %v1098_v17  ;;  %v1012_v46 = vpop.f32.mrb[20].mxu0  ;;  %1646 = vmatprep.mubr.bf16.mxu1 %v1415_v38  ;;  %1982 = vmatprep.subr.bf16.mxu1 %v6425_v1 }
 0x1e1   :  { %v1161_v51 = vmul.bf16 %v7500_v60, %v1113_v37  ;;  %v1077_v21 = vadd.f32 %v7445_v35, %v1012_v46  ;;  %v1014_v52 = vpop.f32.mrb[21].mxu0  ;;  %v7565_v43 = vsel %vm615_vm8, %v1720_v24, %v7553_v34  ;;  %v1703_v36 = vshrl.u32 %v5760_v41, 16  ;;  %v6429_v37 = vld [vmem:[#allocation8 + $0x40] ss:$8 sps:$4 sm:$0xff]  }
 0x1e2   :  { %v1234_v63 = vsel %vm7238_vm5, %v1232_v42, %v1233_v27  ;;  %v1162_v47 = vmul.bf16 %v7500_v60, %v1114_v45  ;;  %v1078_v53 = vadd.f32 %v7450_v28, %v1014_v52  ;;  %v1016_v54 = vpop.f32.mrb[22].mxu0  ;;  %1647 = vmatmul.mubr.bf16.gmra.mrb[4].mxu1 %v1413_v56  ;;  %v1705_v55 = vshll.u32 %v5760_v41, 16 }
 0x1e3   :  { %v1101_v58 = vmax.f32 %v1077_v21, 0.0  ;;  %v1079_v61 = vadd.f32 %v7445_v35, %v1016_v54  ;;  %v1018_v62 = vpop.f32.mrb[23].mxu0  ;;  %1983 = vmatpush1.bf16.msra.mxu1 %v6423_v39  ;;  %v7572_v3 = vcombine.high %v1231_v40, %v1234_v63  ;;  %v7574_v4 = vcombine.low %v1231_v40, %v1234_v63  ;;  %v6434_v40 = vld [vmem:[#allocation8 + $0x54] ss:$8 sps:$4 sm:$0xff]   ;;  %v6432_v21 = vld [vmem:[#allocation8 + $0x50] ss:$8 sps:$4 sm:$0xff]  }
 0x1e4   :  { %v5710_v6 = vcombine.low %v1161_v51, %v1162_v47  ;;  %v5711_v7 = vcombine.high %v1161_v51, %v1162_v47  ;;  %v1102_v8 = vmax.f32 %v1078_v53, 0.0  ;;  %v1080_v0 = vadd.f32 %v7450_v28, %v1018_v62  ;;  %1984 = vmatprep.subr.bf16.mxu1 %v6428_v50 }
 0x1e5   :  { %v1103_v15 = vmax.f32 %v1079_v61, 0.0  ;;  %v1418_v17 = vrot.slane %v7572_v3, 1  ;;  %v1416_v18 = vrot.slane %v7574_v4, 1  ;;  %v1707_v35 = vrot.slane %v1705_v55, 1  ;;  %v6437_v55 = vld [vmem:[#allocation8 + $0x64] ss:$8 sps:$4 sm:$0xff]  }
 0x1e6   :  { %v1236_v1 = vrot.slane %v5710_v6, 7  ;;  %v1239_v19 = vrot.slane %v5711_v7, 7  ;;  %v1104_v24 = vmax.f32 %v1080_v0, 0.0  ;;  %v1710_v25 = vshll.u32 %v7528_v31, 16 }
 0x1e7   :  { %v1115_v27 = vpack.c.bf16 %v1103_v15, %v1101_v58  ;;  %1985 = vmatpush1.bf16.msra.mxu1 %v6426_v2  ;;  %v1419_v29 = vsel %vm446_vm6, %v1414_v23, %v1418_v17  ;;  %v1417_v28 = vsel %vm446_vm6, %v1412_v11, %v1416_v18  ;;  %v1708_v38 = vor.u32 %v1707_v35, %v1703_v36  ;;  %v6435_v35 = vld [vmem:[#allocation8 + $0x60] ss:$8 sps:$4 sm:$0xff]  }
 0x1e8   :  { %v1237_v39 = vsel %vm7238_vm5, %v1235_v44, %v1236_v1  ;;  %v1238_v56 = vrot.slane %v1236_v1, 4  ;;  %v1116_v41 = vpack.c.bf16 %v1104_v24, %v1102_v8  ;;  %1656 = vmatprep.mubr.bf16.mxu1 %v1419_v29  ;;  %1986 = vmatprep.subr.bf16.mxu1 %v6431_v14  ;;  %v1241_v42 = vrot.slane %v1239_v19, 4 }
 0x1e9   :  { %v1163_v45 = vmul.bf16 %v7502_v33, %v1115_v27  ;;  %v1712_v46 = vrot.slane %v1710_v25, 1  ;;  %v1738_v23 = vshll.u32 %v7544_v57, 16  ;;  %v1734_v44 = vshrl.u32 %v7523_v20, 16 }
 0x1ea   :  { %v1240_v11 = vsel %vm7238_vm5, %v1238_v56, %v1239_v19  ;;  %v1164_v50 = vmul.bf16 %v7502_v33, %v1116_v41  ;;  %1657 = vmatmul.mubr.bf16.gmra.mrb[8].mxu1 %v1417_v28  ;;  %v1730_v51 = vshll.u32 %v7546_v13, 16  ;;  %v1726_v47 = vshrl.u32 %v7528_v31, 16  ;;  %v6440_v28 = vld [vmem:[#allocation8 + $0x74] ss:$8 sps:$4 sm:$0xff]  }
 0x1eb   :  { %1987 = vmatpush1.bf16.msra.mxu1 %v6429_v37  ;;  %v7593_v52 = vcombine.high %v1237_v39, %v1240_v11  ;;  %v7595_v36 = vcombine.low %v1237_v39, %v1240_v11  ;;  %v7598_v63 = vsel %vm615_vm8, %v1708_v38, %v1712_v46  ;;  %v1736_v58 = vor.u32 %v1734_v44, %v7553_v34 }
 0x1ec   :  { %v5712_v53 = vcombine.low %v1163_v45, %v1164_v50  ;;  %v5713_v54 = vcombine.high %v1163_v45, %v1164_v50  ;;  %1988 = vmatprep.subr.bf16.mxu1 %v6434_v40  ;;  %v1740_v61 = vrot.slane %v1738_v23, 1  ;;  %v1728_v6 = vor.u32 %v1726_v47, %v1712_v46  ;;  %v6438_v46 = vld [vmem:[#allocation8 + $0x70] ss:$8 sps:$4 sm:$0xff]  }
 0x1ed   :  { %v1422_v62 = vrot.slane %v7593_v52, 1  ;;  %v1420_v2 = vrot.slane %v7595_v36, 1  ;;  %v1732_v7 = vrot.slane %v1730_v51, 1  ;;  %v1750_v34 = vshrl.u32 %v7544_v57, 16 }
 0x1ee   :  { %v1242_v8 = vrot.slane %v5712_v53, 7  ;;  %v1245_v0 = vrot.slane %v5713_v54, 7  ;;  %v7613_v14 = vsel %vm615_vm8, %v1736_v58, %v1740_v61  ;;  %v1754_v24 = vshll.u32 %v7572_v3, 16  ;;  %v6443_v54 = vld [vmem:[#allocation8 + $0x84] ss:$8 sps:$4 sm:$0xff]  }
 0x1ef   :  { %1989 = vmatpush1.bf16.msra.mxu1 %v6432_v21  ;;  %v1423_v15 = vsel %vm446_vm6, %v1418_v17, %v1422_v62  ;;  %v1421_v1 = vsel %vm446_vm6, %v1416_v18, %v1420_v2  ;;  %v7619_v19 = vsel %vm615_vm8, %v1728_v6, %v1732_v7  ;;  %v1752_v38 = vor.u32 %v1750_v34, %v1740_v61 }
 0x1f0   :  { %v1243_v27 = vsel %vm7238_vm5, %v1241_v42, %v1242_v8  ;;  %v1244_v29 = vrot.slane %v1242_v8, 4  ;;  %v1247_v37 = vrot.slane %v1245_v0, 4  ;;  %1666 = vmatprep.mubr.bf16.mxu1 %v1423_v15  ;;  %1990 = vmatprep.subr.bf16.mxu1 %v6437_v55  ;;  %v1756_v17 = vrot.slane %v1754_v24, 1 }
 0x1f1   :  { %v1742_v18 = vshrl.u32 %v7546_v13, 16  ;;  %v1746_v39 = vshll.u32 %v7574_v4, 16  ;;  %v1766_v56 = vshrl.u32 %v7572_v3, 16  ;;  %v8251_v40 = vshll.u32 %v7593_v52, 16 }
 0x1f2   :  { %v1246_v41 = vsel %vm7238_vm5, %v1244_v29, %v1245_v0  ;;  %1273 = vst [vmem:[#allocation3 + $0x60] sm:$0x11] %v1247_v37  ;;  %1667 = vmatmul.mubr.bf16.gmra.mrb[12].mxu1 %v1421_v1  ;;  %v1758_v42 = vshrl.u32 %v7574_v4, 16  ;;  %v8250_v45 = vshll.u32 %v7595_v36, 16  ;;  %v7641_v21 = vsel %vm615_vm8, %v1752_v38, %v1756_v17  ;;  %v6441_v37 = vld [vmem:[#allocation8 + $0x80] ss:$8 sps:$4 sm:$0xff]  }
 0x1f3   :  { %1991 = vmatpush1.bf16.msra.mxu1 %v6435_v35  ;;  %v7636_v11 = vcombine.high %v1243_v27, %v1246_v41  ;;  %v7638_v50 = vcombine.low %v1243_v27, %v1246_v41  ;;  %v1744_v53 = vor.u32 %v1742_v18, %v1732_v7  ;;  %v1748_v55 = vrot.slane %v1746_v39, 1  ;;  %v6447_v41 = vld [vmem:[#allocation8 + $0x94] ss:$8 sps:$4 sm:$0xff]  }
 0x1f4   :  { %1992 = vmatprep.subr.bf16.mxu1 %v6440_v28  ;;  %v1768_v58 = vor.u32 %v1766_v56, %v1756_v17  ;;  %v1772_v61 = vrot.slane %v8251_v40, 1  ;;  %v1764_v6 = vrot.slane %v8250_v45, 1  ;;  %v8254_v7 = vshrl.u32 %v7593_v52, 16 }
 0x1f5   :  { %v1426_v8 = vrot.slane %v7636_v11, 1  ;;  %v1424_v0 = vrot.slane %v7638_v50, 1  ;;  %v8249_v15 = vshll.u32 %v7636_v11, 16  ;;  %v7658_v35 = vsel %vm615_vm8, %v1744_v53, %v1748_v55 }
 0x1f6   :  { %v7661_v1 = vsel %vm615_vm8, %v1768_v58, %v1772_v61  ;;  %v1760_v27 = vor.u32 %v1758_v42, %v1748_v55  ;;  %v1784_v38 = vor.u32 %v8254_v7, %v1772_v61  ;;  %v2123_v58 = vshrl.u32 %v7511_v9, 16 }
 0x1f7   :  { %1993 = vmatpush1.bf16.msra.mxu1 %v6438_v46  ;;  %v1427_v29 = vsel %vm446_vm6, %v1422_v62, %v1426_v8  ;;  %v1425_v28 = vsel %vm446_vm6, %v1420_v2, %v1424_v0  ;;  %v7671_v17 = vrot.slane %v8249_v15, 1  ;;  %v8253_v46 = vshrl.u32 %v7595_v36, 16  ;;  %v6445_v15 = vld [vmem:[#allocation8 + $0x90] ss:$8 sps:$4 sm:$0xff]  }
 0x1f8   :  { %1676 = vmatprep.mubr.bf16.mxu1 %v1427_v29  ;;  %1994 = vmatprep.subr.bf16.mxu1 %v6443_v54  ;;  %v7674_v53 = vsel %vm615_vm8, %v1760_v27, %v1764_v6  ;;  %v8252_v62 = vshll.u32 %v7638_v50, 16  ;;  %v2126_v61 = vshll.u32 %v7511_v9, 16  ;;  %v2130_v40 = vrot.slane %v1734_v44, 1 }
 0x1f9   :  { %v1286_v55 = vld [vmem:[#allocation3 + $0x60] sm:$0x11]  ;;  %v7680_v2 = vsel %vm615_vm8, %v1784_v38, %v7671_v17  ;;  %v1776_v27 = vor.u32 %v8253_v46, %v1764_v6  ;;  %v2125_v38 = vrot.slane %v2123_v58, 1  ;;  %v2131_v9 = vrot.slane %v1722_v5, 2  ;;  %v6448_v5 = vld [vmem:[#allocation8 + $0xa0] ss:$8 sps:$4 sm:$0xff]  }
 0x1fa   :  { %1677 = vmatmul.mubr.bf16.gmra.mrb[16].mxu1 %v1425_v28  ;;  %v7684_v29 = vcombine.high %v1286_v55, %v1286_v55  ;;  %v7686_v54 = vcombine.low %v1286_v55, %v1286_v55  ;;  %v7692_v22 = vrot.slane %v8252_v62, 1  ;;  %v2128_v45 = vrot.slane %v2126_v61, 2  ;;  %v6450_v55 = vld [vmem:[#allocation8 + $0xa4] ss:$8 sps:$4 sm:$0xff]  }
 0x1fb   :  { %1995 = vmatpush1.bf16.msra.mxu1 %v6441_v37  ;;  %v2118_v37 = vrot.slane %v1726_v47, 1  ;;  %v2132_v61 = vor.u32 %v2131_v9, %v2130_v40  ;;  %v2111_v20 = vshrl.u32 %v7514_v12, 16  ;;  %v2119_v7 = vrot.slane %v1710_v25, 2  ;;  %v6454_v47 = vld [vmem:[#allocation8 + $0xb4] ss:$8 sps:$4 sm:$0xff]  }
 0x1fc   :  { %v1430_v28 = vrot.slane %v7684_v29, 1  ;;  %1996 = vmatprep.subr.bf16.mxu1 %v6447_v41  ;;  %v7701_v6 = vsel %vm615_vm8, %v1776_v27, %v7692_v22  ;;  %v1428_v62 = vrot.slane %v7686_v54, 1  ;;  %v2129_v58 = vor.u32 %v2128_v45, %v2125_v38  ;;  %v6452_v9 = vld [vmem:[#allocation8 + $0xb0] ss:$8 sps:$4 sm:$0xff]  }
 0x1fd   :  { %v1798_v41 = vshrl.u32 %v7636_v11, 16  ;;  %v2114_v27 = vshll.u32 %v7514_v12, 16  ;;  %v1790_v40 = vshrl.u32 %v7638_v50, 16  ;;  %v2113_v45 = vrot.slane %v2111_v20, 1 }
 0x1fe   :  { %v1431_v44 = vsel %vm446_vm6, %v1426_v8, %v1430_v28  ;;  %v7710_v46 = vsel %vm832_vm9, %v2129_v58, %v2132_v61  ;;  %v2138_v8 = vrot.slane %v1750_v34, 1  ;;  %v1429_v38 = vsel %vm446_vm6, %v1424_v0, %v1428_v62 }
 0x1ff   :  { %1686 = vmatprep.mubr.bf16.mxu1 %v1431_v44  ;;  %1997 = vmatpush1.bf16.msra.mxu1 %v6445_v15  ;;  %v2139_v15 = vrot.slane %v1738_v23, 2  ;;  %v2116_v28 = vrot.slane %v2114_v27, 2  ;;  %v2120_v58 = vor.u32 %v2119_v7, %v2118_v37  ;;  %v2134_v12 = vrot.slane %v1742_v18, 1  ;;  %v6517_v23 = vld [vmem:[#allocation10 + $0x100] ss:$8 sps:$4 sm:$0xff]  }
 0x200   :  { %1998 = vmatprep.subr.bf16.mxu1 %v6450_v55  ;;  %v2135_v25 = vrot.slane %v1730_v51, 2  ;;  %v2146_v55 = vrot.slane %v1766_v56, 1  ;;  %v2147_v57 = vrot.slane %v1754_v24, 2  ;;  %v2142_v0 = vrot.slane %v1758_v42, 1  ;;  %v6519_v7 = vld [vmem:[#allocation10 + $0x104] ss:$8 sps:$4 sm:$0xff]  }
 0x201   :  { %v2140_v31 = vor.u32 %v2139_v15, %v2138_v8  ;;  %v2117_v34 = vor.u32 %v2116_v28, %v2113_v45  ;;  %v2143_v18 = vrot.slane %v1746_v39, 2  ;;  %v8257_v13 = vshrl.u32 %v7593_v52, 16  ;;  %v6457_v56 = vld [vmem:[#allocation8 + $0xc4] ss:$8 sps:$4 sm:$0xff]   ;;  %3181 = vmatprep.subr.bf16.mxu0 %v6519_v7  ;;  %v6455_v45 = vld [vmem:[#allocation8 + $0xc0] ss:$8 sps:$4 sm:$0xff]  }
 0x202   :  { %1687 = vmatmul.mubr.bf16.gmra.mrb[20].mxu1 %v1429_v38  ;;  %v2136_v24 = vor.u32 %v2135_v25, %v2134_v12  ;;  %v2148_v62 = vor.u32 %v2147_v57, %v2146_v55  ;;  %v8259_v4 = vshrl.u32 %v7595_v36, 16  ;;  %v8260_v20 = vshll.u32 %v7595_v36, 16  ;;  %3182 = vmatpush1.bf16.msra.mxu0 %v6517_v23  ;;  %v6458_v23 = vld [vmem:[#allocation8 + $0xd0] ss:$8 sps:$4 sm:$0xff]  }
 0x203   :  { %1999 = vmatpush1.bf16.msra.mxu1 %v6448_v5  ;;  %2010 = vmatprep.mubr.bf16.mxu1 %v7565_v43  ;;  %v2154_v51 = vrot.slane %v8257_v13, 1  ;;  %v7737_v3 = vsel %vm832_vm9, %v2132_v61, %v2140_v31  ;;  %v8258_v43 = vshll.u32 %v7593_v52, 16  ;;  %v7742_v44 = vsel %vm832_vm9, %v2117_v34, %v2120_v58  ;;  %v6461_v13 = vld [vmem:[#allocation8 + $0xe0] ss:$8 sps:$4 sm:$0xff]   ;;  %v6464_v7 = vld [vmem:[#allocation8 + $0xf0] ss:$8 sps:$4 sm:$0xff]  }
 0x204   :  { %2000 = vmatprep.subr.bf16.mxu1 %v6454_v47  ;;  %v2144_v42 = vor.u32 %v2143_v18, %v2142_v0  ;;  %v2150_v39 = vrot.slane %v8259_v4, 1  ;;  %v2151_v5 = vrot.slane %v8260_v20, 2  ;;  %v7749_v27 = vsel %vm832_vm9, %v2120_v58, %v2136_v24  ;;  %v6460_v58 = vld [vmem:[#allocation8 + $0xd4] ss:$8 sps:$4 sm:$0xff]   ;;  %v6463_v0 = vld [vmem:[#allocation8 + $0xe4] ss:$8 sps:$4 sm:$0xff]  }
 0x205   :  { %v2155_v37 = vrot.slane %v8258_v43, 2  ;;  %v7752_v61 = vsel %vm832_vm9, %v2140_v31, %v2148_v62  ;;  %v2162_v52 = vrot.slane %v1798_v41, 1  ;;  %v8261_v36 = vshll.u32 %v7636_v11, 16  ;;  %v6470_v43 = vld [vmem:[#allocation8 + $0x210] ss:$8 sps:$4 sm:$0xff]  }
 0x206   :  { %v7757_v8 = vsel %vm832_vm9, %v2136_v24, %v2144_v42  ;;  %v2152_v15 = vor.u32 %v2151_v5, %v2150_v39  ;;  %v2158_v28 = vrot.slane %v1790_v40, 1  ;;  %v8262_v31 = vshll.u32 %v7638_v50, 16  ;;  %v6467_v24 = vld [vmem:[#allocation8 + $0x200] ss:$8 sps:$4 sm:$0xff]   ;;  %v6478_v4 = vld [vmem:[#allocation8 + $0x234] ss:$8 sps:$4 sm:$0xff]  }
 0x207   :  { %v2156_v47 = vor.u32 %v2155_v37, %v2154_v51  ;;  %2001 = vmatpush1.bf16.msra.mxu1 %v6452_v9  ;;  %v2163_v38 = vrot.slane %v8261_v36, 2  ;;  %v6466_v51 = vld [vmem:[#allocation8 + $0xf4] ss:$8 sps:$4 sm:$0xff]   ;;  %v6475_v37 = vld [vmem:[#allocation8 + $0x224] ss:$8 sps:$4 sm:$0xff]   ;;  %v1800_v36 = vor.u32 %v1798_v41, %v7671_v17 }
 0x208   :  { %2002 = vmatprep.subr.bf16.mxu1 %v6457_v56  ;;  %v2159_v25 = vrot.slane %v8262_v31, 2  ;;  %v7769_v9 = vsel %vm832_vm9, %v2144_v42, %v2152_v15  ;;  %v6469_v56 = vld [vmem:[#allocation8 + $0x204] ss:$8 sps:$4 sm:$0xff]   ;;  %v6473_v42 = vld [vmem:[#allocation8 + $0x220] ss:$8 sps:$4 sm:$0xff]   ;;  %v1792_v31 = vor.u32 %v1790_v40, %v7692_v22 }
 0x209   :  { %v7764_v12 = vsel %vm832_vm9, %v2148_v62, %v2156_v47  ;;  %v7771_v55 = vor.u32 %v2163_v38, %v2162_v52  ;;  %v6472_v62 = vld [vmem:[#allocation8 + $0x214] ss:$8 sps:$4 sm:$0xff]   ;;  %v6476_v39 = vld [vmem:[#allocation8 + $0x230] ss:$8 sps:$4 sm:$0xff]   ;;  %v6481_v20 = vld [vmem:[#allocation8 + $0x244] ss:$8 sps:$4 sm:$0xff]  }
 0x20a   :  { %v7773_v57 = vor.u32 %v2159_v25, %v2158_v28  ;;  %v6482_v5 = vld [vmem:[#allocation8 + $0x250] ss:$8 sps:$4 sm:$0xff]   ;;  %v1802_v52 = vshll.u32 %v7684_v29, 16  ;;  %v6496_v38 = vld [vmem:[#allocation8 + $0x294] ss:$8 sps:$4 sm:$0xff]   ;;  %v1794_v28 = vshll.u32 %v7686_v54, 16 }
 0x20b   :  { %2003 = vmatpush1.bf16.msra.mxu1 %v6455_v45  ;;  %v7777_v34 = vsel %vm832_vm9, %v2156_v47, %v7771_v55  ;;  %v6487_v47 = vld [vmem:[#allocation8 + $0x264] ss:$8 sps:$4 sm:$0xff]   ;;  %v6488_v45 = vld [vmem:[#allocation8 + $0x270] ss:$8 sps:$4 sm:$0xff]   ;;  %v6497_v11 = vld [vmem:[#allocation8 + $0x2a0] ss:$8 sps:$4 sm:$0xff]  }
 0x20c   :  { %2004 = vmatprep.subr.bf16.mxu1 %v6460_v58  ;;  %v7781_v18 = vsel %vm832_vm9, %v2152_v15, %v7773_v57  ;;  %v1804_v15 = vrot.slane %v1802_v52, 1  ;;  %v6499_v29 = vld [vmem:[#allocation8 + $0x2a4] ss:$8 sps:$4 sm:$0xff]   ;;  %v1796_v58 = vrot.slane %v1794_v28, 1  ;;  %v6502_v17 = vld [vmem:[#allocation8 + $0x2b4] ss:$8 sps:$4 sm:$0xff]  }
 0x20d   :  { %v6505_v41 = vld [vmem:[#allocation8 + $0x2c4] ss:$8 sps:$4 sm:$0xff]   ;;  %v6503_v25 = vld [vmem:[#allocation8 + $0x2c0] ss:$8 sps:$4 sm:$0xff]   ;;  %v6514_v40 = vld [vmem:[#allocation8 + $0x2f4] ss:$8 sps:$4 sm:$0xff]  }
 0x20e   :  { %v1797_v54 = vsel %vm615_vm8, %v1792_v31, %v1796_v58  ;;  %v6511_v22 = vld [vmem:[#allocation8 + $0x2e4] ss:$8 sps:$4 sm:$0xff]   ;;  %v6509_v50 = vld [vmem:[#allocation8 + $0x2e0] ss:$8 sps:$4 sm:$0xff]   ;;  %v6550_v28 = vld [vmem:[#allocation10 + $0x1b0] ss:$8 sps:$4 sm:$0xff]  }
 0x20f   :  { %2005 = vmatpush1.bf16.msra.mxu1 %v6458_v23  ;;  %v6508_v23 = vld [vmem:[#allocation8 + $0x2d4] ss:$8 sps:$4 sm:$0xff]   ;;  %v6541_v52 = vld [vmem:[#allocation10 + $0x180] ss:$8 sps:$4 sm:$0xff]   ;;  %v6556_v58 = vld [vmem:[#allocation10 + $0x1d0] ss:$8 sps:$4 sm:$0xff]  }
 0x210   :  { %2006 = vmatprep.subr.bf16.mxu1 %v6463_v0  ;;  %v6506_v0 = vld [vmem:[#allocation8 + $0x2d0] ss:$8 sps:$4 sm:$0xff]   ;;  %v6561_v31 = vld [vmem:[#allocation10 + $0x1e4] ss:$8 sps:$4 sm:$0xff]  }
 0x213   :  { %2007 = vmatpush1.bf16.msra.mxu1 %v6461_v13  ;;  %v6512_v13 = vld [vmem:[#allocation8 + $0x2f0] ss:$8 sps:$4 sm:$0xff]  }
 0x214   :  { %2008 = vmatprep.subr.bf16.mxu1 %v6466_v51 }
 0x217   :  { %2009 = vmatpush1.bf16.msra.mxu1 %v6464_v7 }
 0x218   :  { %2356 = vmatprep.subr.bf16.mxu1 %v6469_v56 }
 0x21a   :  { %2011 = vmatmul.mubr.bf16.vlgmr.msra.gmra.mrb[0].mxu1 %v7598_v63  ;;  %v6479_v63 = vld [vmem:[#allocation8 + $0x240] ss:$8 sps:$4 sm:$0xff]  }
 0x21b   :  { %2020 = vmatprep.mubr.bf16.mxu1 %v7613_v14  ;;  %2357 = vmatpush1.bf16.msra.mxu1 %v6467_v24  ;;  %v6484_v14 = vld [vmem:[#allocation8 + $0x254] ss:$8 sps:$4 sm:$0xff]  }
 0x21c   :  { %2358 = vmatprep.subr.bf16.mxu1 %v6472_v62 }
 0x21f   :  { %2359 = vmatpush1.bf16.msra.mxu1 %v6470_v43 }
 0x220   :  { %2360 = vmatprep.subr.bf16.mxu1 %v6475_v37 }
 0x222   :  { %2021 = vmatmul.mubr.bf16.gmra.mrb[4].mxu1 %v7619_v19  ;;  %v6485_v19 = vld [vmem:[#allocation8 + $0x260] ss:$8 sps:$4 sm:$0xff]  }
 0x223   :  { %2030 = vmatprep.mubr.bf16.mxu1 %v7641_v21  ;;  %2361 = vmatpush1.bf16.msra.mxu1 %v6473_v42  ;;  %v6490_v21 = vld [vmem:[#allocation8 + $0x274] ss:$8 sps:$4 sm:$0xff]  }
 0x224   :  { %2362 = vmatprep.subr.bf16.mxu1 %v6478_v4  ;;  %v6522_v4 = vld [vmem:[#allocation10 + $0x114] ss:$8 sps:$4 sm:$0xff]  }
 0x225   :  { %3183 = vmatprep.subr.bf16.mxu0 %v6522_v4 }
 0x227   :  { %2363 = vmatpush1.bf16.msra.mxu1 %v6476_v39  ;;  %v6523_v39 = vld [vmem:[#allocation10 + $0x120] ss:$8 sps:$4 sm:$0xff]  }
 0x228   :  { %2364 = vmatprep.subr.bf16.mxu1 %v6481_v20  ;;  %v6528_v20 = vld [vmem:[#allocation10 + $0x134] ss:$8 sps:$4 sm:$0xff]  }
 0x22a   :  { %2031 = vmatmul.mubr.bf16.gmra.mrb[8].mxu1 %v7658_v35  ;;  %v6493_v35 = vld [vmem:[#allocation8 + $0x284] ss:$8 sps:$4 sm:$0xff]  }
 0x22b   :  { %2040 = vmatprep.mubr.bf16.mxu1 %v7661_v1  ;;  %2365 = vmatpush1.bf16.msra.mxu1 %v6479_v63  ;;  %v6491_v1 = vld [vmem:[#allocation8 + $0x280] ss:$8 sps:$4 sm:$0xff]   ;;  %v6526_v63 = vld [vmem:[#allocation10 + $0x130] ss:$8 sps:$4 sm:$0xff]  }
 0x22c   :  { %2366 = vmatprep.subr.bf16.mxu1 %v6484_v14  ;;  %v6534_v14 = vld [vmem:[#allocation10 + $0x154] ss:$8 sps:$4 sm:$0xff]  }
 0x22f   :  { %2367 = vmatpush1.bf16.msra.mxu1 %v6482_v5  ;;  %v6532_v5 = vld [vmem:[#allocation10 + $0x150] ss:$8 sps:$4 sm:$0xff]  }
 0x230   :  { %2368 = vmatprep.subr.bf16.mxu1 %v6487_v47  ;;  %v6537_v47 = vld [vmem:[#allocation10 + $0x164] ss:$8 sps:$4 sm:$0xff]  }
 0x232   :  { %2041 = vmatmul.mubr.bf16.gmra.mrb[12].mxu1 %v7674_v53  ;;  %v1805_v53 = vsel %vm615_vm8, %v1800_v36, %v1804_v15  ;;  %v6544_v15 = vld [vmem:[#allocation10 + $0x190] ss:$8 sps:$4 sm:$0xff]   ;;  %v6549_v36 = vld [vmem:[#allocation10 + $0x1a4] ss:$8 sps:$4 sm:$0xff]  }
 0x233   :  { %2050 = vmatprep.mubr.bf16.mxu1 %v7680_v2  ;;  %2369 = vmatpush1.bf16.msra.mxu1 %v6485_v19  ;;  %v6494_v2 = vld [vmem:[#allocation8 + $0x290] ss:$8 sps:$4 sm:$0xff]   ;;  %v6540_v19 = vld [vmem:[#allocation10 + $0x174] ss:$8 sps:$4 sm:$0xff]  }
 0x234   :  { %2370 = vmatprep.subr.bf16.mxu1 %v6490_v21  ;;  %v6538_v21 = vld [vmem:[#allocation10 + $0x170] ss:$8 sps:$4 sm:$0xff]  }
 0x237   :  { %2371 = vmatpush1.bf16.msra.mxu1 %v6488_v45  ;;  %v6543_v45 = vld [vmem:[#allocation10 + $0x184] ss:$8 sps:$4 sm:$0xff]  }
 0x238   :  { %2372 = vmatprep.subr.bf16.mxu1 %v6493_v35  ;;  %v6546_v35 = vld [vmem:[#allocation10 + $0x194] ss:$8 sps:$4 sm:$0xff]  }
 0x23a   :  { %2051 = vmatmul.mubr.bf16.gmra.mrb[16].mxu1 %v7701_v6  ;;  %v6500_v6 = vld [vmem:[#allocation8 + $0x2b0] ss:$8 sps:$4 sm:$0xff]  }
 0x23b   :  { %2060 = vmatprep.mubr.bf16.mxu1 %v1805_v53  ;;  %2373 = vmatpush1.bf16.msra.mxu1 %v6491_v1  ;;  %v6547_v1 = vld [vmem:[#allocation10 + $0x1a0] ss:$8 sps:$4 sm:$0xff]   ;;  %v6555_v53 = vld [vmem:[#allocation10 + $0x1c4] ss:$8 sps:$4 sm:$0xff]  }
 0x23c   :  { %2374 = vmatprep.subr.bf16.mxu1 %v6496_v38  ;;  %v6552_v38 = vld [vmem:[#allocation10 + $0x1b4] ss:$8 sps:$4 sm:$0xff]  }
 0x23f   :  { %2375 = vmatpush1.bf16.msra.mxu1 %v6494_v2  ;;  %v6553_v2 = vld [vmem:[#allocation10 + $0x1c0] ss:$8 sps:$4 sm:$0xff]  }
 0x240   :  { %2376 = vmatprep.subr.bf16.mxu1 %v6499_v29  ;;  %v6558_v29 = vld [vmem:[#allocation10 + $0x1d4] ss:$8 sps:$4 sm:$0xff]  }
 0x242   :  { %2061 = vmatmul.mubr.bf16.gmra.mrb[20].mxu1 %v1797_v54  ;;  %v6562_v54 = vld [vmem:[#allocation10 + $0x1f0] ss:$8 sps:$4 sm:$0xff]  }
 0x243   :  { %2377 = vmatpush1.bf16.msra.mxu1 %v6497_v11  ;;  %2388 = vmatprep.mubr.bf16.mxu1 %v7710_v46  ;;  %v2071_v46 = vld [vmem:[#allocation3 + $0x60] sm:$0x33]  ;;  %v6559_v11 = vld [vmem:[#allocation10 + $0x1e0] ss:$8 sps:$4 sm:$0xff]  }
 0x244   :  { %2378 = vmatprep.subr.bf16.mxu1 %v6502_v17  ;;  %v5795_v51 = vcombine.high %v2071_v46, %v2071_v46  ;;  %v5794_v24 = vcombine.low %v2071_v46, %v2071_v46  ;;  %v6564_v17 = vld [vmem:[#allocation10 + $0x1f4] ss:$8 sps:$4 sm:$0xff]  }
 0x246   :  { %v2176_v7 = vshrl.u32 %v5795_v51, 16  ;;  %v2179_v56 = vshll.u32 %v5795_v51, 16 }
 0x247   :  { %2379 = vmatpush1.bf16.msra.mxu1 %v6500_v6  ;;  %v6567_v6 = vld [vmem:[#allocation10 + $0x4] ss:$8 sps:$4 sm:$0xff]  }
 0x248   :  { %2380 = vmatprep.subr.bf16.mxu1 %v6505_v41  ;;  %v2178_v62 = vrot.slane %v2176_v7, 1  ;;  %v2181_v43 = vrot.slane %v2179_v56, 2  ;;  %v2473_v41 = vld [vmem:[%s8240_s6] sm:$0x3] }
 0x24b   :  { %2381 = vmatpush1.bf16.msra.mxu1 %v6503_v25  ;;  %v7820_v25 = vrot.slane %v2473_v41, %v7431_v30 }
 0x24c   :  { %2382 = vmatprep.subr.bf16.mxu1 %v6508_v23  ;;  %v7823_v23 = vrot.slane %v2473_v41, %v7437_v32 }
 0x24f   :  { %2383 = vmatpush1.bf16.msra.mxu1 %v6506_v0 }
 0x250   :  { %2384 = vmatprep.subr.bf16.mxu1 %v6511_v22 }
 0x253   :  { %2385 = vmatpush1.bf16.msra.mxu1 %v6509_v50 }
 0x254   :  { %2386 = vmatprep.subr.bf16.mxu1 %v6514_v40 }
 0x257   :  { %2387 = vmatpush1.bf16.msra.mxu1 %v6512_v13 }
 0x25a   :  { %2389 = vmatmul.mubr.bf16.vlgmr.msra.gmra.mrb[0].mxu1 %v7742_v44  ;;  %v2170_v44 = vshll.u32 %v5794_v24, 16 }
 0x25b   :  { %2398 = vmatprep.mubr.bf16.mxu1 %v7737_v3  ;;  %v2167_v3 = vshrl.u32 %v5794_v24, 16 }
 0x25d   :  { %v2169_v37 = vrot.slane %v2167_v3, 1 }
 0x262   :  { %2399 = vmatmul.mubr.bf16.gmra.mrb[4].mxu1 %v7749_v27  ;;  %v2182_v27 = vor.u32 %v2181_v43, %v2178_v62 }
 0x263   :  { %2408 = vmatprep.mubr.bf16.mxu1 %v7752_v61  ;;  %v2172_v61 = vrot.slane %v2170_v44, 2 }
 0x26a   :  { %2409 = vmatmul.mubr.bf16.gmra.mrb[8].mxu1 %v7757_v8  ;;  %v2183_v8 = vsel %vm832_vm9, %v7771_v55, %v2182_v27  ;;  %v6529_v55 = vld [vmem:[#allocation10 + $0x140] ss:$8 sps:$4 sm:$0xff]  }
 0x26b   :  { %2418 = vmatprep.mubr.bf16.mxu1 %v7764_v12  ;;  %v2173_v12 = vor.u32 %v2172_v61, %v2169_v37 }
 0x26d   :  { %v2174_v42 = vsel %vm832_vm9, %v7773_v57, %v2173_v12  ;;  %v6535_v57 = vld [vmem:[#allocation10 + $0x160] ss:$8 sps:$4 sm:$0xff]  }
 0x272   :  { %2419 = vmatmul.mubr.bf16.gmra.mrb[12].mxu1 %v7769_v9  ;;  %v6520_v9 = vld [vmem:[#allocation10 + $0x110] ss:$8 sps:$4 sm:$0xff]  }
 0x273   :  { %2428 = vmatprep.mubr.bf16.mxu1 %v7777_v34  ;;  %3184 = vmatpush1.bf16.msra.mxu0 %v6520_v9  ;;  %v6525_v34 = vld [vmem:[#allocation10 + $0x124] ss:$8 sps:$4 sm:$0xff]  }
 0x274   :  { %3185 = vmatprep.subr.bf16.mxu0 %v6525_v34 }
 0x277   :  { %3186 = vmatpush1.bf16.msra.mxu0 %v6523_v39 }
 0x278   :  { %3187 = vmatprep.subr.bf16.mxu0 %v6528_v20 }
 0x27a   :  { %2429 = vmatmul.mubr.bf16.gmra.mrb[16].mxu1 %v7781_v18  ;;  %v6531_v18 = vld [vmem:[#allocation10 + $0x144] ss:$8 sps:$4 sm:$0xff]  }
 0x27b   :  { %2438 = vmatprep.mubr.bf16.mxu1 %v2183_v8  ;;  %3188 = vmatpush1.bf16.msra.mxu0 %v6526_v63 }
 0x27c   :  { %3189 = vmatprep.subr.bf16.mxu0 %v6531_v18 }
 0x27f   :  { %3190 = vmatpush1.bf16.msra.mxu0 %v6529_v55 }
 0x280   :  { %3191 = vmatprep.subr.bf16.mxu0 %v6534_v14 }
 0x282   :  { %2439 = vmatmul.mubr.bf16.gmra.mrb[20].mxu1 %v2174_v42 }
 0x283   :  { %3192 = vmatpush1.bf16.msra.mxu0 %v6532_v5 }
 0x284   :  { %3193 = vmatprep.subr.bf16.mxu0 %v6537_v47 }
 0x287   :  { %3194 = vmatpush1.bf16.msra.mxu0 %v6535_v57 }
 0x288   :  { %3195 = vmatprep.subr.bf16.mxu0 %v6540_v19 }
 0x28b   :  { %3196 = vmatpush1.bf16.msra.mxu0 %v6538_v21 }
 0x28c   :  { %3197 = vmatprep.subr.bf16.mxu0 %v6543_v45 }
 0x28f   :  { %3198 = vmatpush1.bf16.msra.mxu0 %v6541_v52 }
 0x290   :  { %3199 = vmatprep.subr.bf16.mxu0 %v6546_v35 }
 0x293   :  { %3200 = vmatpush1.bf16.msra.mxu0 %v6544_v15 }
 0x294   :  { %3201 = vmatprep.subr.bf16.mxu0 %v6549_v36 }
 0x297   :  { %3202 = vmatpush1.bf16.msra.mxu0 %v6547_v1 }
 0x298   :  { %3203 = vmatprep.subr.bf16.mxu0 %v6552_v38 }
 0x29b   :  { %3204 = vmatpush1.bf16.msra.mxu0 %v6550_v28 }
 0x29c   :  { %3205 = vmatprep.subr.bf16.mxu0 %v6555_v53 }
 0x29f   :  { %3206 = vmatpush1.bf16.msra.mxu0 %v6553_v2 }
 0x2a0   :  { %3207 = vmatprep.subr.bf16.mxu0 %v6558_v29 }
 0x2a3   :  { %3208 = vmatpush1.bf16.msra.mxu0 %v6556_v58 }
 0x2a4   :  { %3209 = vmatprep.subr.bf16.mxu0 %v6561_v31 }
 0x2a7   :  { %3210 = vmatpush1.bf16.msra.mxu0 %v6559_v11 }
 0x2a8   :  { %3211 = vmatprep.subr.bf16.mxu0 %v6564_v17 }
 0x2ab   :  { %3212 = vmatpush1.bf16.msra.mxu0 %v6562_v54 }
 0x2ac   :  { %3451 = vmatprep.subr.bf16.mxu0 %v6567_v6 }
 0x32d   :  { %v2390_v0 = vpop.f32.mrb[0].mxu1 }
 0x32e   :  { %v2485_v22 = vadd.f32 %v7820_v25, %v2390_v0  ;;  %v2392_v50 = vpop.f32.mrb[1].mxu1 }
 0x32f   :  { %v2486_v40 = vadd.f32 %v7823_v23, %v2392_v50  ;;  %v2394_v13 = vpop.f32.mrb[2].mxu1 }
 0x330   :  { %v2487_v46 = vadd.f32 %v7820_v25, %v2394_v13  ;;  %v2396_v51 = vpop.f32.mrb[3].mxu1  ;;  %v2509_v56 = vmax.f32 %v2485_v22, 0.0 }
 0x331   :  { %v2488_v7 = vadd.f32 %v7823_v23, %v2396_v51  ;;  %v2510_v62 = vmax.f32 %v2486_v40, 0.0 }
 0x332   :  { %v2511_v24 = vmax.f32 %v2487_v46, 0.0 }
 0x333   :  { %v2512_v43 = vmax.f32 %v2488_v7, 0.0 }
 0x334   :  { %v2533_v3 = vpack.c.bf16 %v2511_v24, %v2509_v56 }
 0x335   :  { %v2534_v44 = vpack.c.bf16 %v2512_v43, %v2510_v62  ;;  %v2400_v27 = vpop.f32.mrb[4].mxu1 }
 0x336   :  { %v2545_v37 = vmul.bf16 %v7462_v48, %v2533_v3  ;;  %v2489_v61 = vadd.f32 %v7820_v25, %v2400_v27  ;;  %v2402_v8 = vpop.f32.mrb[5].mxu1 }
 0x337   :  { %v2546_v12 = vmul.bf16 %v7462_v48, %v2534_v44  ;;  %v2490_v42 = vadd.f32 %v7823_v23, %v2402_v8  ;;  %v2404_v9 = vpop.f32.mrb[6].mxu1 }
 0x338   :  { %v2491_v4 = vadd.f32 %v7820_v25, %v2404_v9  ;;  %v2406_v34 = vpop.f32.mrb[7].mxu1  ;;  %v2513_v18 = vmax.f32 %v2489_v61, 0.0 }
 0x339   :  { %v5828_v39 = vcombine.low %v2545_v37, %v2546_v12  ;;  %v5829_v20 = vcombine.high %v2545_v37, %v2546_v12  ;;  %v2492_v63 = vadd.f32 %v7823_v23, %v2406_v34  ;;  %v2514_v5 = vmax.f32 %v2490_v42, 0.0 }
 0x33a   :  { %v2515_v55 = vmax.f32 %v2491_v4, 0.0 }
 0x33b   :  { %v2605_v14 = vrot.slane %v5828_v39, 7  ;;  %v2516_v57 = vmax.f32 %v2492_v63, 0.0  ;;  %v2607_v21 = vrot.slane %v5829_v20, 7 }
 0x33c   :  { %v2535_v47 = vpack.c.bf16 %v2515_v55, %v2513_v18 }
 0x33d   :  { %v2606_v19 = vrot.slane %v2605_v14, 4  ;;  %2653 = vst [vmem:[#allocation4] sm:$0xee] %v2605_v14  ;;  %v2536_v52 = vpack.c.bf16 %v2516_v57, %v2514_v5  ;;  %v2410_v45 = vpop.f32.mrb[8].mxu1  ;;  %v2609_v50 = vrot.slane %v2607_v21, 4 }
 0x33e   :  { %v2547_v35 = vmul.bf16 %v7472_v16, %v2535_v47  ;;  %v2493_v15 = vadd.f32 %v7820_v25, %v2410_v45  ;;  %v2412_v1 = vpop.f32.mrb[9].mxu1 }
 0x33f   :  { %v2608_v36 = vsel %vm7238_vm5, %v2606_v19, %v2607_v21  ;;  %v2548_v38 = vmul.bf16 %v7472_v16, %v2536_v52  ;;  %v2414_v28 = vpop.f32.mrb[10].mxu1  ;;  %v2494_v29 = vadd.f32 %v7823_v23, %v2412_v1 }
 0x340   :  { %v2693_v53 = vshll.u32 %v2608_v36, 16  ;;  %v2697_v2 = vshrl.u32 %v2608_v36, 16  ;;  %v2495_v58 = vadd.f32 %v7820_v25, %v2414_v28  ;;  %v2416_v31 = vpop.f32.mrb[11].mxu1  ;;  %v2517_v0 = vmax.f32 %v2493_v15, 0.0 }
 0x341   :  { %v5830_v11 = vcombine.low %v2547_v35, %v2548_v38  ;;  %v5831_v17 = vcombine.high %v2547_v35, %v2548_v38  ;;  %v2496_v54 = vadd.f32 %v7823_v23, %v2416_v31  ;;  %v2518_v7 = vmax.f32 %v2494_v29, 0.0 }
 0x342   :  { %v2695_v6 = vrot.slane %v2693_v53, 5  ;;  %v2699_v41 = vrot.slane %v2697_v2, 4  ;;  %v2519_v22 = vmax.f32 %v2495_v58, 0.0 }
 0x343   :  { %v2610_v40 = vrot.slane %v5830_v11, 7  ;;  %v7843_v13 = vrot.slane %v5831_v17, 7  ;;  %v2520_v24 = vmax.f32 %v2496_v54, 0.0 }
 0x344   :  { %v2666_v46 = vld [vmem:[#allocation4] sm:$0xee]  ;;  %v2700_v51 = vor.u32 %v2699_v41, %v2695_v6  ;;  %v2537_v56 = vpack.c.bf16 %v2519_v22, %v2517_v0 }
 0x345   :  { %v2684_v62 = vshrl.u32 %v2666_v46, 16  ;;  %v2687_v43 = vshll.u32 %v2666_v46, 16  ;;  %v2611_v3 = vsel %vm7238_vm5, %v2609_v50, %v2610_v40  ;;  %v2612_v44 = vrot.slane %v2610_v40, 4  ;;  %v2420_v27 = vpop.f32.mrb[12].mxu1 }
 0x346   :  { %v2701_v37 = vrot.slane %v2700_v51, 4  ;;  %v2615_v61 = vrot.slane %v7843_v13, 4  ;;  %v2703_v8 = vshll.u32 %v2611_v3, 16  ;;  %v2707_v12 = vshrl.u32 %v2611_v3, 16  ;;  %v2422_v42 = vpop.f32.mrb[13].mxu1 }
 0x347   :  { %v2686_v4 = vrot.slane %v2684_v62, 4  ;;  %v2689_v34 = vrot.slane %v2687_v43, 5  ;;  %v7857_v39 = vsel %vm7238_vm5, %v2612_v44, %v7843_v13  ;;  %v2549_v20 = vmul.bf16 %v7496_v49, %v2537_v56  ;;  %v2424_v63 = vpop.f32.mrb[14].mxu1 }
 0x348   :  { %v2705_v18 = vrot.slane %v2703_v8, 5  ;;  %v2709_v55 = vrot.slane %v2707_v12, 4  ;;  %v2713_v14 = vshll.u32 %v7857_v39, 16  ;;  %v2717_v5 = vshrl.u32 %v7857_v39, 16  ;;  %v2426_v57 = vpop.f32.mrb[15].mxu1 }
 0x349   :  { %v2690_v47 = vor.u32 %v2689_v34, %v2686_v4  ;;  %v2538_v19 = vpack.c.bf16 %v2520_v24, %v2518_v7  ;;  %v2497_v21 = vadd.f32 %v7820_v25, %v2420_v27  ;;  %v2498_v52 = vadd.f32 %v7823_v23, %v2422_v42 }
 0x34a   :  { %v2706_v45 = vsel %vm7850_vm12, %v2701_v37, %v2705_v18  ;;  %v2710_v35 = vor.u32 %v2709_v55, %v2705_v18  ;;  %v2715_v15 = vrot.slane %v2713_v14, 5  ;;  %v2719_v1 = vrot.slane %v2717_v5, 4 }
 0x34b   :  { %v2691_v38 = vrot.slane %v2690_v47, 4  ;;  %v7866_v28 = vmax.bf16 %v2706_v45, %v2608_v36  ;;  %v2550_v53 = vmul.bf16 %v7496_v49, %v2538_v19  ;;  %v2521_v2 = vmax.f32 %v2497_v21, 0.0 }
 0x34c   :  { %v2711_v29 = vrot.slane %v2710_v35, 4  ;;  %v2720_v58 = vor.u32 %v2719_v1, %v2715_v15  ;;  %v2522_v31 = vmax.f32 %v2498_v52, 0.0  ;;  %v2499_v11 = vadd.f32 %v7820_v25, %v2424_v63 }
 0x34d   :  { %v2696_v17 = vsel %vm7850_vm12, %v2691_v38, %v2695_v6  ;;  %v5832_v54 = vcombine.low %v2549_v20, %v2550_v53  ;;  %v5833_v41 = vcombine.high %v2549_v20, %v2550_v53  ;;  %v2500_v0 = vadd.f32 %v7823_v23, %v2426_v57  ;;  %v2430_v22 = vpop.f32.mrb[16].mxu1 }
 0x34e   :  { %v2825_v50 = vmax.bf16 %v2696_v17, %v2666_v46  ;;  %v2716_v36 = vsel %vm7850_vm12, %v2711_v29, %v2715_v15  ;;  %v7875_v40 = vrot.slane %v2720_v58, 4  ;;  %v2523_v13 = vmax.f32 %v2499_v11, 0.0  ;;  %v2432_v51 = vpop.f32.mrb[17].mxu1 }
 0x34f   :  { %v7877_v7 = vmax.bf16 %v2716_v36, %v2611_v3  ;;  %v2616_v56 = vrot.slane %v5832_v54, 7  ;;  %v2619_v24 = vrot.slane %v5833_v41, 7  ;;  %v2524_v62 = vmax.f32 %v2500_v0, 0.0  ;;  %v2434_v43 = vpop.f32.mrb[18].mxu1 }
 0x350   :  { %2838 = vst [vmem:[#allocation3] sm:$0xee] %v2825_v50  ;;  %v2539_v6 = vpack.c.bf16 %v2523_v13, %v2521_v2  ;;  %v2501_v44 = vadd.f32 %v7820_v25, %v2430_v22  ;;  %v2502_v27 = vadd.f32 %v7823_v23, %v2432_v51  ;;  %v2503_v46 = vadd.f32 %v7820_v25, %v2434_v43  ;;  %v2436_v37 = vpop.f32.mrb[19].mxu1 }
 0x351   :  { %v2617_v8 = vsel %vm7238_vm5, %v2615_v61, %v2616_v56  ;;  %v2618_v12 = vrot.slane %v2616_v56, 4  ;;  %v2621_v42 = vrot.slane %v2619_v24, 4  ;;  %v2540_v3 = vpack.c.bf16 %v2524_v62, %v2522_v31 }
 0x352   :  { %v2723_v4 = vshll.u32 %v2617_v8, 16  ;;  %v2727_v34 = vshrl.u32 %v2617_v8, 16  ;;  %v2551_v20 = vmul.bf16 %v7498_v59, %v2539_v6  ;;  %v2525_v63 = vmax.f32 %v2501_v44, 0.0 }
 0x353   :  { %v7887_v18 = vsel %vm7238_vm5, %v2618_v12, %v2619_v24  ;;  %v2552_v55 = vmul.bf16 %v7498_v59, %v2540_v3  ;;  %v2526_v14 = vmax.f32 %v2502_v27, 0.0  ;;  %v2527_v5 = vmax.f32 %v2503_v46, 0.0 }
 0x354   :  { %v2725_v57 = vrot.slane %v2723_v4, 5  ;;  %v2729_v47 = vrot.slane %v2727_v34, 4  ;;  %v2733_v61 = vshll.u32 %v7887_v18, 16  ;;  %v2737_v19 = vshrl.u32 %v7887_v18, 16 }
 0x355   :  { %v5834_v21 = vcombine.low %v2551_v20, %v2552_v55  ;;  %v5835_v52 = vcombine.high %v2551_v20, %v2552_v55  ;;  %v2541_v45 = vpack.c.bf16 %v2527_v5, %v2525_v63  ;;  %v2504_v35 = vadd.f32 %v7823_v23, %v2436_v37  ;;  %v2440_v15 = vpop.f32.mrb[20].mxu1 }
 0x356   :  { %v2730_v1 = vor.u32 %v2729_v47, %v2725_v57  ;;  %v2735_v38 = vrot.slane %v2733_v61, 5  ;;  %v2739_v53 = vrot.slane %v2737_v19, 4  ;;  %v2505_v2 = vadd.f32 %v7820_v25, %v2440_v15  ;;  %v2442_v29 = vpop.f32.mrb[21].mxu1 }
 0x357   :  { %v2622_v58 = vrot.slane %v5834_v21, 7  ;;  %v2625_v31 = vrot.slane %v5835_v52, 7  ;;  %v2553_v11 = vmul.bf16 %v7500_v60, %v2541_v45  ;;  %v2528_v17 = vmax.f32 %v2504_v35, 0.0  ;;  %v2444_v54 = vpop.f32.mrb[22].mxu1 }
 0x358   :  { %v2731_v41 = vrot.slane %v2730_v1, 4  ;;  %v2740_v0 = vor.u32 %v2739_v53, %v2735_v38  ;;  %v2529_v22 = vmax.f32 %v2505_v2, 0.0  ;;  %v2506_v50 = vadd.f32 %v7823_v23, %v2442_v29  ;;  %v2446_v36 = vpop.f32.mrb[23].mxu1 }
 0x359   :  { %v2623_v13 = vsel %vm7238_vm5, %v2621_v42, %v2622_v58  ;;  %v2624_v51 = vrot.slane %v2622_v58, 4  ;;  %v2627_v56 = vrot.slane %v2625_v31, 4  ;;  %v2542_v24 = vpack.c.bf16 %v2528_v17, %v2526_v14  ;;  %v2895_v14 = vld [vmem:[#allocation3] sm:$0xee] }
 0x35a   :  { %v2736_v62 = vsel %vm7850_vm12, %v2731_v41, %v2735_v38  ;;  %v7900_v43 = vrot.slane %v2740_v0, 4  ;;  %v2743_v6 = vshll.u32 %v2623_v13, 16  ;;  %v2747_v44 = vshrl.u32 %v2623_v13, 16 }
 0x35b   :  { %v7902_v27 = vmax.bf16 %v2736_v62, %v2617_v8  ;;  %v7906_v46 = vsel %vm7238_vm5, %v2624_v51, %v2625_v31  ;;  %v2554_v37 = vmul.bf16 %v7500_v60, %v2542_v24  ;;  %v2530_v12 = vmax.f32 %v2506_v50, 0.0 }
 0x35c   :  { %v2745_v42 = vrot.slane %v2743_v6, 5  ;;  %v2749_v3 = vrot.slane %v2747_v44, 4  ;;  %v2753_v4 = vshll.u32 %v7906_v46, 16  ;;  %v2757_v34 = vshrl.u32 %v7906_v46, 16 }
 0x35d   :  { %v5836_v20 = vcombine.low %v2553_v11, %v2554_v37  ;;  %v5837_v63 = vcombine.high %v2553_v11, %v2554_v37  ;;  %v2507_v55 = vadd.f32 %v7820_v25, %v2444_v54  ;;  %v2508_v8 = vadd.f32 %v7823_v23, %v2446_v36 }
 0x35e   :  { %v2750_v5 = vor.u32 %v2749_v3, %v2745_v42  ;;  %v2755_v47 = vrot.slane %v2753_v4, 5  ;;  %v2759_v61 = vrot.slane %v2757_v34, 4  ;;  %v2726_v19 = vsel %vm7850_vm12, %v7875_v40, %v2725_v57 }
 0x35f   :  { %v2628_v21 = vrot.slane %v5836_v20, 7  ;;  %v2631_v52 = vrot.slane %v5837_v63, 7  ;;  %v2531_v45 = vmax.f32 %v2507_v55, 0.0  ;;  %v2532_v35 = vmax.f32 %v2508_v8, 0.0  ;;  %v6565_v63 = vld [vmem:[#allocation10] ss:$8 sps:$4 sm:$0xff]  }
 0x360   :  { %v2751_v15 = vrot.slane %v2750_v5, 4  ;;  %v2760_v1 = vor.u32 %v2759_v61, %v2755_v47  ;;  %v2828_v38 = vmax.bf16 %v2726_v19, %v7857_v39  ;;  %v5840_v25 = vcombine.low %v2895_v14, %v7866_v28 }
 0x361   :  { %v2629_v23 = vsel %vm7238_vm5, %v2627_v56, %v2628_v21  ;;  %v2630_v53 = vrot.slane %v2628_v21, 4  ;;  %v2633_v2 = vrot.slane %v2631_v52, 4  ;;  %v2543_v29 = vpack.c.bf16 %v2531_v45, %v2529_v22 }
 0x362   :  { %v2756_v58 = vsel %vm7850_vm12, %v2751_v15, %v2755_v47  ;;  %v2761_v40 = vrot.slane %v2760_v1, 4  ;;  %v2763_v57 = vshll.u32 %v2629_v23, 16  ;;  %v2767_v31 = vshrl.u32 %v2629_v23, 16  ;;  %v6570_v47 = vld [vmem:[#allocation10 + $0x14] ss:$8 sps:$4 sm:$0xff]  }
 0x363   :  { %v2831_v11 = vmax.bf16 %v2756_v58, %v2623_v13  ;;  %v7924_v17 = vsel %vm7238_vm5, %v2630_v53, %v2631_v52  ;;  %v2555_v39 = vmul.bf16 %v7502_v33, %v2543_v29  ;;  %v2544_v54 = vpack.c.bf16 %v2532_v35, %v2530_v12 }
 0x364   :  { %v2765_v41 = vrot.slane %v2763_v57, 5  ;;  %v2769_v0 = vrot.slane %v2767_v31, 4  ;;  %v2773_v50 = vshll.u32 %v7924_v17, 16  ;;  %v2777_v22 = vshrl.u32 %v7924_v17, 16 }
 0x365   :  { %v2556_v36 = vmul.bf16 %v7502_v33, %v2544_v54  ;;  %v5841_v51 = vcombine.high %v2895_v14, %v7866_v28  ;;  %v7932_v56 = vcombine.low %v7877_v7, %v2828_v38  ;;  %v7935_v13 = vcombine.high %v7877_v7, %v2828_v38 }
 0x366   :  { %v2770_v24 = vor.u32 %v2769_v0, %v2765_v41  ;;  %v2775_v62 = vrot.slane %v2773_v50, 5  ;;  %v2779_v6 = vrot.slane %v2777_v22, 4  ;;  %v2983_v44 = vrot.slane %v5840_v25, 1 }
 0x367   :  { %v5838_v37 = vcombine.low %v2555_v39, %v2556_v36  ;;  %v5839_v12 = vcombine.high %v2555_v39, %v2556_v36  ;;  %v2986_v3 = vrot.slane %v5841_v51, 1  ;;  %v2987_v4 = vrot.slane %v7935_v13, 1  ;;  %v6571_v36 = vld [vmem:[#allocation10 + $0x20] ss:$8 sps:$4 sm:$0xff]  }
 0x368   :  { %v2771_v34 = vrot.slane %v2770_v24, 4  ;;  %v2780_v20 = vor.u32 %v2779_v6, %v2775_v62  ;;  %v2984_v55 = vrot.slane %v7932_v56, 1  ;;  %v2746_v8 = vsel %vm7850_vm12, %v7900_v43, %v2745_v42  ;;  %v6576_v24 = vld [vmem:[#allocation10 + $0x34] ss:$8 sps:$4 sm:$0xff]  }
 0x369   :  { %v2634_v7 = vrot.slane %v5838_v37, 7  ;;  %v2637_v14 = vrot.slane %v5839_v12, 7  ;;  %v2988_v5 = vsel %vm446_vm6, %v2986_v3, %v2987_v4  ;;  %v2830_v61 = vmax.bf16 %v2746_v8, %v7887_v18  ;;  %v6568_v18 = vld [vmem:[#allocation10 + $0x10] ss:$8 sps:$4 sm:$0xff]  }
 0x36a   :  { %v2776_v19 = vsel %vm7850_vm12, %v2771_v34, %v2775_v62  ;;  %3213 = vmatprep.mubr.bf16.mxu0 %v2988_v5  ;;  %v2985_v21 = vsel %vm446_vm6, %v2983_v44, %v2984_v55  ;;  %v2766_v52 = vsel %vm7850_vm12, %v2761_v40, %v2765_v41  ;;  %v2781_v53 = vrot.slane %v2780_v20, 4 }
 0x36b   :  { %v2833_v45 = vmax.bf16 %v2776_v19, %v2629_v23  ;;  %v2635_v43 = vsel %vm7238_vm5, %v2633_v2, %v2634_v7  ;;  %v2636_v42 = vrot.slane %v2634_v7, 4  ;;  %v2639_v35 = vrot.slane %v2637_v14, 4  ;;  %3214 = vmatmul.mubr.bf16.vlgmr.msra.gmra.mrb[24].mxu0 %v2985_v21  ;;  %v6573_v2 = vld [vmem:[#allocation10 + $0x24] ss:$8 sps:$4 sm:$0xff]   ;;  %v6577_v21 = vld [vmem:[#allocation10 + $0x40] ss:$8 sps:$4 sm:$0xff]  }
 0x36c   :  { %v2783_v15 = vshll.u32 %v2635_v43, 16  ;;  %v2787_v1 = vshrl.u32 %v2635_v43, 16  ;;  %3452 = vmatpush1.bf16.msra.mxu0 %v6565_v63  ;;  %v7952_v38 = vcombine.high %v7902_v27, %v2830_v61  ;;  %v7955_v25 = vcombine.low %v7902_v27, %v2830_v61 }
 0x36d   :  { %v2638_v23 = vsel %vm7238_vm5, %v2636_v42, %v2637_v14  ;;  %2665 = vst [vmem:[#allocation4 + $0x60] sm:$0x11] %v2639_v35  ;;  %3453 = vmatprep.subr.bf16.mxu0 %v6570_v47  ;;  %v2832_v29 = vmax.bf16 %v2766_v52, %v7906_v46 }
 0x36e   :  { %v2785_v58 = vrot.slane %v2783_v15, 5  ;;  %v2789_v40 = vrot.slane %v2787_v1, 4  ;;  %v2793_v57 = vshll.u32 %v2638_v23, 16  ;;  %v2797_v31 = vshrl.u32 %v2638_v23, 16 }
 0x36f   :  { %v2991_v39 = vrot.slane %v7952_v38, 1  ;;  %v2989_v54 = vrot.slane %v7955_v25, 1  ;;  %v7962_v41 = vcombine.high %v2831_v11, %v2832_v29  ;;  %v7964_v27 = vcombine.low %v2831_v11, %v2832_v29 }
 0x370   :  { %v2790_v0 = vor.u32 %v2789_v40, %v2785_v58  ;;  %v2795_v50 = vrot.slane %v2793_v57, 5  ;;  %v2799_v22 = vrot.slane %v2797_v31, 4  ;;  %3454 = vmatpush1.bf16.msra.mxu0 %v6568_v18  ;;  %v2786_v46 = vsel %vm7850_vm12, %v2781_v53, %v2785_v58  ;;  %v6580_v53 = vld [vmem:[#allocation10 + $0x50] ss:$8 sps:$4 sm:$0xff]   ;;  %v6585_v58 = vld [vmem:[#allocation10 + $0x64] ss:$8 sps:$4 sm:$0xff]  }
 0x371   :  { %v2992_v51 = vsel %vm446_vm6, %v2987_v4, %v2991_v39  ;;  %3455 = vmatprep.subr.bf16.mxu0 %v6573_v2  ;;  %v2995_v62 = vrot.slane %v7962_v41, 1  ;;  %v2990_v44 = vsel %vm446_vm6, %v2984_v55, %v2989_v54  ;;  %v2834_v11 = vmax.bf16 %v2786_v46, %v7924_v17  ;;  %v6574_v4 = vld [vmem:[#allocation10 + $0x30] ss:$8 sps:$4 sm:$0xff]   ;;  %v6579_v17 = vld [vmem:[#allocation10 + $0x44] ss:$8 sps:$4 sm:$0xff]  }
 0x372   :  { %v2791_v6 = vrot.slane %v2790_v0, 4  ;;  %3223 = vmatprep.mubr.bf16.mxu0 %v2992_v51  ;;  %v2800_v37 = vor.u32 %v2799_v22, %v2795_v50  ;;  %v2993_v14 = vrot.slane %v7964_v27, 1  ;;  %v6588_v31 = vld [vmem:[#allocation10 + $0x74] ss:$8 sps:$4 sm:$0xff]   ;;  %v6586_v0 = vld [vmem:[#allocation10 + $0x70] ss:$8 sps:$4 sm:$0xff]  }
 0x373   :  { %3224 = vmatmul.mubr.bf16.gmra.mrb[28].mxu0 %v2990_v44  ;;  %v2996_v12 = vsel %vm446_vm6, %v2991_v39, %v2995_v62  ;;  %v7975_v20 = vcombine.high %v2833_v45, %v2834_v11  ;;  %v7977_v63 = vcombine.low %v2833_v45, %v2834_v11  ;;  %v6582_v45 = vld [vmem:[#allocation10 + $0x54] ss:$8 sps:$4 sm:$0xff]   ;;  %v6589_v51 = vld [vmem:[#allocation10 + $0x80] ss:$8 sps:$4 sm:$0xff]  }
 0x374   :  { %v2679_v3 = vld [vmem:[#allocation4 + $0x60] sm:$0x33]  ;;  %v2796_v34 = vsel %vm7850_vm12, %v2791_v6, %v2795_v50  ;;  %3456 = vmatpush1.bf16.msra.mxu0 %v6571_v36  ;;  %3233 = vmatprep.mubr.bf16.mxu0 %v2996_v12  ;;  %v2801_v47 = vrot.slane %v2800_v37, 4  ;;  %v2994_v15 = vsel %vm446_vm6, %v2989_v54, %v2993_v14  ;;  %v6591_v50 = vld [vmem:[#allocation10 + $0x84] ss:$8 sps:$4 sm:$0xff]  }
 0x375   :  { %v2803_v8 = vshll.u32 %v2679_v3, 16  ;;  %v2807_v7 = vshrl.u32 %v2679_v3, 16  ;;  %v2835_v55 = vmax.bf16 %v2796_v34, %v2635_v43  ;;  %3457 = vmatprep.subr.bf16.mxu0 %v6576_v24  ;;  %v2999_v5 = vrot.slane %v7975_v20, 1  ;;  %v2678_v18 = vld [vmem:[#allocation4 + $0x60] sm:$0x11]  ;;  %v2851_v34 = vld [vmem:[#allocation3] sm:$0xff] }
 0x376   :  { %v2997_v40 = vrot.slane %v7977_v63, 1  ;;  %v6595_v6 = vld [vmem:[#allocation10 + $0x94] ss:$8 sps:$4 sm:$0xff]   ;;  %v6593_v37 = vld [vmem:[#allocation10 + $0x90] ss:$8 sps:$4 sm:$0xff]  }
 0x377   :  { %v2805_v61 = vrot.slane %v2803_v8, 5  ;;  %v2809_v19 = vrot.slane %v2807_v7, 4  ;;  %v3000_v35 = vsel %vm446_vm6, %v2995_v62, %v2999_v5  ;;  %v6598_v3 = vld [vmem:[#allocation10 + $0xa4] ss:$8 sps:$4 sm:$0xff]   ;;  %v6602_v7 = vld [vmem:[#allocation10 + $0xb4] ss:$8 sps:$4 sm:$0xff]  }
 0x378   :  { %3458 = vmatpush1.bf16.msra.mxu0 %v6574_v4  ;;  %v2998_v54 = vsel %vm446_vm6, %v2993_v14, %v2997_v40  ;;  %v6596_v4 = vld [vmem:[#allocation10 + $0xa0] ss:$8 sps:$4 sm:$0xff]   ;;  %v6667_v14 = vld [vmem:[#allocation11 + $0x104] ss:$8 sps:$4 sm:$0xff]  }
 0x379   :  { %v2806_v52 = vsel %vm7850_vm12, %v2801_v47, %v2805_v61  ;;  %v2810_v42 = vor.u32 %v2809_v19, %v2805_v61  ;;  %3459 = vmatprep.subr.bf16.mxu0 %v6579_v17  ;;  %v6665_v17 = vld [vmem:[#allocation11 + $0x100] ss:$8 sps:$4 sm:$0xff]   ;;  %v6670_v47 = vld [vmem:[#allocation11 + $0x114] ss:$8 sps:$4 sm:$0xff]   ;;  %v6605_v61 = vld [vmem:[#allocation10 + $0xc4] ss:$8 sps:$4 sm:$0xff]   ;;  %4428 = vmatprep.subr.bf16.mxu1 %v6667_v14 }
 0x37a   :  { %v2836_v43 = vmax.bf16 %v2806_v52, %v2638_v23  ;;  %v6583_v23 = vld [vmem:[#allocation10 + $0x60] ss:$8 sps:$4 sm:$0xff]   ;;  %4429 = vmatpush1.bf16.msra.mxu1 %v6665_v17  ;;  %v6668_v19 = vld [vmem:[#allocation11 + $0x110] ss:$8 sps:$4 sm:$0xff]   ;;  %v6647_v14 = vld [vmem:[#allocation10 + $0x2a4] ss:$8 sps:$4 sm:$0xff]  }
 0x37b   :  { %v2811_v1 = vrot.slane %v2810_v42, 4  ;;  %3234 = vmatmul.mubr.bf16.gmra.mrb[32].mxu0 %v2994_v15  ;;  %4430 = vmatprep.subr.bf16.mxu1 %v6670_v47  ;;  %v6603_v52 = vld [vmem:[#allocation10 + $0xc0] ss:$8 sps:$4 sm:$0xff]   ;;  %v6608_v42 = vld [vmem:[#allocation10 + $0xd4] ss:$8 sps:$4 sm:$0xff]  }
 0x37c   :  { %3460 = vmatpush1.bf16.msra.mxu0 %v6577_v21  ;;  %3243 = vmatprep.mubr.bf16.mxu0 %v3000_v35  ;;  %v7985_v2 = vcombine.high %v2835_v55, %v2836_v43  ;;  %v7987_v29 = vcombine.low %v2835_v55, %v2836_v43  ;;  %v5887_v55 = vcombine.high %v2851_v34, %v7866_v28  ;;  %v6673_v21 = vld [vmem:[#allocation11 + $0x124] ss:$8 sps:$4 sm:$0xff]   ;;  %v6676_v35 = vld [vmem:[#allocation11 + $0x134] ss:$8 sps:$4 sm:$0xff]   ;;  %v6606_v43 = vld [vmem:[#allocation10 + $0xd0] ss:$8 sps:$4 sm:$0xff]  }
 0x37d   :  { %v2837_v9 = vmax.bf16 %v2811_v1, %v2678_v18  ;;  %3461 = vmatprep.subr.bf16.mxu0 %v6582_v45  ;;  %v6671_v45 = vld [vmem:[#allocation11 + $0x120] ss:$8 sps:$4 sm:$0xff]   ;;  %v6611_v15 = vld [vmem:[#allocation10 + $0xe4] ss:$8 sps:$4 sm:$0xff]   ;;  %v6674_v1 = vld [vmem:[#allocation11 + $0x130] ss:$8 sps:$4 sm:$0xff]  }
 0x37e   :  { %v3003_v57 = vrot.slane %v7985_v2, 1  ;;  %v3001_v22 = vrot.slane %v7987_v29, 1  ;;  %4431 = vmatpush1.bf16.msra.mxu1 %v6668_v19  ;;  %v6679_v18 = vld [vmem:[#allocation11 + $0x144] ss:$8 sps:$4 sm:$0xff]   ;;  %v6642_v17 = vld [vmem:[#allocation10 + $0x290] ss:$8 sps:$4 sm:$0xff]  }
 0x37f   :  { %2850 = vst [vmem:[#allocation3 + $0x60] sm:$0x11] %v2837_v9  ;;  %4432 = vmatprep.subr.bf16.mxu1 %v6673_v21  ;;  %v6614_v9 = vld [vmem:[#allocation10 + $0xf4] ss:$8 sps:$4 sm:$0xff]   ;;  %v6645_v47 = vld [vmem:[#allocation10 + $0x2a0] ss:$8 sps:$4 sm:$0xff]  }
 0x380   :  { %3462 = vmatpush1.bf16.msra.mxu0 %v6580_v53  ;;  %v3004_v39 = vsel %vm446_vm6, %v2999_v5, %v3003_v57  ;;  %v3002_v44 = vsel %vm446_vm6, %v2997_v40, %v3001_v22  ;;  %v6600_v5 = vld [vmem:[#allocation10 + $0xb0] ss:$8 sps:$4 sm:$0xff]   ;;  %v6609_v53 = vld [vmem:[#allocation10 + $0xe0] ss:$8 sps:$4 sm:$0xff]   ;;  %v6682_v40 = vld [vmem:[#allocation11 + $0x154] ss:$8 sps:$4 sm:$0xff]  }
 0x381   :  { %3463 = vmatprep.subr.bf16.mxu0 %v6585_v58  ;;  %v6677_v58 = vld [vmem:[#allocation11 + $0x140] ss:$8 sps:$4 sm:$0xff]   ;;  %v6650_v19 = vld [vmem:[#allocation10 + $0x2b4] ss:$8 sps:$4 sm:$0xff]  }
 0x382   :  { %4433 = vmatpush1.bf16.msra.mxu1 %v6671_v45  ;;  %v6651_v45 = vld [vmem:[#allocation10 + $0x2c0] ss:$8 sps:$4 sm:$0xff]  }
 0x383   :  { %3244 = vmatmul.mubr.bf16.gmra.mrb[36].mxu0 %v2998_v54  ;;  %4434 = vmatprep.subr.bf16.mxu1 %v6676_v35  ;;  %v5886_v54 = vcombine.low %v2851_v34, %v7866_v28  ;;  %v6641_v34 = vld [vmem:[#allocation10 + $0x284] ss:$8 sps:$4 sm:$0xff]   ;;  %v6656_v35 = vld [vmem:[#allocation10 + $0x2d4] ss:$8 sps:$4 sm:$0xff]  }
 0x384   :  { %3464 = vmatpush1.bf16.msra.mxu0 %v6583_v23  ;;  %3253 = vmatprep.mubr.bf16.mxu0 %v3004_v39  ;;  %v6617_v23 = vld [vmem:[#allocation10 + $0x204] ss:$8 sps:$4 sm:$0xff]   ;;  %v6615_v39 = vld [vmem:[#allocation10 + $0x200] ss:$8 sps:$4 sm:$0xff]  }
 0x385   :  { %3465 = vmatprep.subr.bf16.mxu0 %v6588_v31  ;;  %v6680_v31 = vld [vmem:[#allocation11 + $0x150] ss:$8 sps:$4 sm:$0xff]  }
 0x386   :  { %v2896_v36 = vld [vmem:[#allocation3 + $0x60] sm:$0x11]  ;;  %4435 = vmatpush1.bf16.msra.mxu1 %v6674_v1 }
 0x387   :  { %v5853_v46 = vcombine.high %v2896_v36, %v2896_v36  ;;  %v5852_v24 = vcombine.low %v2896_v36, %v2896_v36  ;;  %4436 = vmatprep.subr.bf16.mxu1 %v6679_v18  ;;  %v6621_v36 = vld [vmem:[#allocation10 + $0x220] ss:$8 sps:$4 sm:$0xff]   ;;  %v6662_v1 = vld [vmem:[#allocation10 + $0x2f4] ss:$8 sps:$4 sm:$0xff]  }
 0x388   :  { %3466 = vmatpush1.bf16.msra.mxu0 %v6586_v0  ;;  %v6620_v0 = vld [vmem:[#allocation10 + $0x214] ss:$8 sps:$4 sm:$0xff]  }
 0x389   :  { %3467 = vmatprep.subr.bf16.mxu0 %v6591_v50  ;;  %v3007_v62 = vrot.slane %v5853_v46, 1  ;;  %v3005_v12 = vrot.slane %v5852_v24, 1  ;;  %v6618_v50 = vld [vmem:[#allocation10 + $0x210] ss:$8 sps:$4 sm:$0xff]   ;;  %v6626_v46 = vld [vmem:[#allocation10 + $0x234] ss:$8 sps:$4 sm:$0xff]  }
 0x38a   :  { %4437 = vmatpush1.bf16.msra.mxu1 %v6677_v58  ;;  %v6629_v24 = vld [vmem:[#allocation10 + $0x244] ss:$8 sps:$4 sm:$0xff]   ;;  %v3598_v58 = vrot.slane %v7952_v38, 2 }
 0x38b   :  { %3254 = vmatmul.mubr.bf16.gmra.mrb[40].mxu0 %v3002_v44  ;;  %v3008_v11 = vsel %vm446_vm6, %v3003_v57, %v3007_v62  ;;  %v3006_v8 = vsel %vm446_vm6, %v3001_v22, %v3005_v12  ;;  %v6612_v57 = vld [vmem:[#allocation10 + $0xf0] ss:$8 sps:$4 sm:$0xff]   ;;  %4438 = vmatprep.subr.bf16.mxu1 %v6682_v40  ;;  %v6623_v22 = vld [vmem:[#allocation10 + $0x224] ss:$8 sps:$4 sm:$0xff]   ;;  %v6627_v62 = vld [vmem:[#allocation10 + $0x240] ss:$8 sps:$4 sm:$0xff]  }
 0x38c   :  { %3468 = vmatpush1.bf16.msra.mxu0 %v6589_v51  ;;  %3263 = vmatprep.mubr.bf16.mxu0 %v3008_v11  ;;  %v6624_v51 = vld [vmem:[#allocation10 + $0x230] ss:$8 sps:$4 sm:$0xff]   ;;  %v6635_v11 = vld [vmem:[#allocation10 + $0x264] ss:$8 sps:$4 sm:$0xff]   ;;  %v6638_v12 = vld [vmem:[#allocation10 + $0x274] ss:$8 sps:$4 sm:$0xff]  }
 0x38d   :  { %3469 = vmatprep.subr.bf16.mxu0 %v6595_v6  ;;  %v6632_v6 = vld [vmem:[#allocation10 + $0x254] ss:$8 sps:$4 sm:$0xff]   ;;  %v6630_v44 = vld [vmem:[#allocation10 + $0x250] ss:$8 sps:$4 sm:$0xff]   ;;  %v3591_v40 = vrot.slane %v7932_v56, 2 }
 0x38e   :  { %4439 = vmatpush1.bf16.msra.mxu1 %v6680_v31  ;;  %v3596_v31 = vrot.slane %v7955_v25, 2 }
 0x390   :  { %3470 = vmatpush1.bf16.msra.mxu0 %v6593_v37  ;;  %v6633_v37 = vld [vmem:[#allocation10 + $0x260] ss:$8 sps:$4 sm:$0xff]  }
 0x391   :  { %3471 = vmatprep.subr.bf16.mxu0 %v6598_v3  ;;  %v6636_v3 = vld [vmem:[#allocation10 + $0x270] ss:$8 sps:$4 sm:$0xff]  }
 0x393   :  { %3264 = vmatmul.mubr.bf16.gmra.mrb[44].mxu0 %v3006_v8  ;;  %v3544_v8 = vld [vmem:[#allocation3] sm:$0xcc] }
 0x394   :  { %3472 = vmatpush1.bf16.msra.mxu0 %v6596_v4  ;;  %3483 = vmatprep.mubr.bf16.mxu0 %v5887_v55  ;;  %v6639_v4 = vld [vmem:[#allocation10 + $0x280] ss:$8 sps:$4 sm:$0xff]   ;;  %v5921_v55 = vcombine.high %v3544_v8, %v7866_v28  ;;  %v5920_v18 = vcombine.low %v3544_v8, %v7866_v28  ;;  %v3597_v28 = vsel %vm3589_vm13, %v3591_v40, %v3596_v31  ;;  %v6697_v8 = vld [vmem:[#allocation11 + $0x1a4] ss:$8 sps:$4 sm:$0xff]  }
 0x395   :  { %3473 = vmatprep.subr.bf16.mxu0 %v6602_v7  ;;  %v6644_v7 = vld [vmem:[#allocation10 + $0x294] ss:$8 sps:$4 sm:$0xff]  }
 0x398   :  { %3474 = vmatpush1.bf16.msra.mxu0 %v6600_v5  ;;  %v3593_v5 = vrot.slane %v5921_v55, 2  ;;  %v6698_v55 = vld [vmem:[#allocation11 + $0x1b0] ss:$8 sps:$4 sm:$0xff]  }
 0x399   :  { %3475 = vmatprep.subr.bf16.mxu0 %v6605_v61  ;;  %v3594_v61 = vrot.slane %v7935_v13, 2 }
 0x39b   :  { %v3595_v21 = vsel %vm3589_vm13, %v3593_v5, %v3594_v61  ;;  %v6701_v5 = vld [vmem:[#allocation11 + $0x1c0] ss:$8 sps:$4 sm:$0xff]  }
 0x39c   :  { %3476 = vmatpush1.bf16.msra.mxu0 %v6603_v52  ;;  %v6648_v52 = vld [vmem:[#allocation10 + $0x2b0] ss:$8 sps:$4 sm:$0xff]  }
 0x39d   :  { %3477 = vmatprep.subr.bf16.mxu0 %v6608_v42  ;;  %v6653_v42 = vld [vmem:[#allocation10 + $0x2c4] ss:$8 sps:$4 sm:$0xff]  }
 0x3a0   :  { %3478 = vmatpush1.bf16.msra.mxu0 %v6606_v43  ;;  %v6654_v43 = vld [vmem:[#allocation10 + $0x2d0] ss:$8 sps:$4 sm:$0xff]  }
 0x3a1   :  { %3479 = vmatprep.subr.bf16.mxu0 %v6611_v15  ;;  %v6659_v15 = vld [vmem:[#allocation10 + $0x2e4] ss:$8 sps:$4 sm:$0xff]  }
 0x3a4   :  { %3480 = vmatpush1.bf16.msra.mxu0 %v6609_v53  ;;  %v6660_v53 = vld [vmem:[#allocation10 + $0x2f0] ss:$8 sps:$4 sm:$0xff]  }
 0x3a5   :  { %3481 = vmatprep.subr.bf16.mxu0 %v6614_v9  ;;  %v3590_v9 = vrot.slane %v5920_v18, 2 }
 0x3a8   :  { %3482 = vmatpush1.bf16.msra.mxu0 %v6612_v57  ;;  %v3592_v57 = vsel %vm3589_vm13, %v3590_v9, %v3591_v40 }
 0x3a9   :  { %3788 = vmatprep.subr.bf16.mxu0 %v6617_v23  ;;  %v3599_v23 = vsel %vm3589_vm13, %v3594_v61, %v3598_v58  ;;  %v6706_v61 = vld [vmem:[#allocation11 + $0x1d4] ss:$8 sps:$4 sm:$0xff]  }
 0x3ab   :  { %3484 = vmatmul.mubr.bf16.vlgmr.msra.gmra.mrb[24].mxu0 %v5886_v54 }
 0x3ac   :  { %3493 = vmatprep.mubr.bf16.mxu0 %v7935_v13  ;;  %3789 = vmatpush1.bf16.msra.mxu0 %v6615_v39  ;;  %v6657_v13 = vld [vmem:[#allocation10 + $0x2e0] ss:$8 sps:$4 sm:$0xff]   ;;  %v3602_v39 = vrot.slane %v7962_v41, 2 }
 0x3ad   :  { %3790 = vmatprep.subr.bf16.mxu0 %v6620_v0 }
 0x3ae   :  { %v3603_v54 = vsel %vm3589_vm13, %v3598_v58, %v3602_v39 }
 0x3b0   :  { %3791 = vmatpush1.bf16.msra.mxu0 %v6618_v50 }
 0x3b1   :  { %3792 = vmatprep.subr.bf16.mxu0 %v6623_v22  ;;  %v3545_v22 = vld [vmem:[#allocation3 + $0x60] sm:$0x33] }
 0x3b3   :  { %3494 = vmatmul.mubr.bf16.gmra.mrb[28].mxu0 %v7932_v56  ;;  %v3606_v56 = vrot.slane %v7975_v20, 2 }
 0x3b4   :  { %3503 = vmatprep.mubr.bf16.mxu0 %v7952_v38  ;;  %3793 = vmatpush1.bf16.msra.mxu0 %v6621_v36  ;;  %v3600_v38 = vrot.slane %v7964_v27, 2 }
 0x3b5   :  { %3794 = vmatprep.subr.bf16.mxu0 %v6626_v46  ;;  %v3607_v50 = vsel %vm3589_vm13, %v3602_v39, %v3606_v56 }
 0x3b6   :  { %v3601_v0 = vsel %vm3589_vm13, %v3596_v31, %v3600_v38 }
 0x3b8   :  { %3795 = vmatpush1.bf16.msra.mxu0 %v6624_v51  ;;  %v5923_v51 = vcombine.high %v3545_v22, %v3545_v22 }
 0x3b9   :  { %3796 = vmatprep.subr.bf16.mxu0 %v6629_v24 }
 0x3bb   :  { %3504 = vmatmul.mubr.bf16.gmra.mrb[32].mxu0 %v7955_v25  ;;  %v3604_v25 = vrot.slane %v7977_v63, 2 }
 0x3bc   :  { %3513 = vmatprep.mubr.bf16.mxu0 %v7962_v41  ;;  %3797 = vmatpush1.bf16.msra.mxu0 %v6627_v62  ;;  %v3610_v41 = vrot.slane %v7985_v2, 2  ;;  %v5922_v62 = vcombine.low %v3545_v22, %v3545_v22 }
 0x3bd   :  { %3798 = vmatprep.subr.bf16.mxu0 %v6632_v6  ;;  %v3605_v36 = vsel %vm3589_vm13, %v3600_v38, %v3604_v25 }
 0x3be   :  { %v3611_v46 = vsel %vm3589_vm13, %v3606_v56, %v3610_v41 }
 0x3c0   :  { %3799 = vmatpush1.bf16.msra.mxu0 %v6630_v44  ;;  %v6683_v44 = vld [vmem:[#allocation11 + $0x160] ss:$8 sps:$4 sm:$0xff]  }
 0x3c1   :  { %3800 = vmatprep.subr.bf16.mxu0 %v6635_v11  ;;  %v6685_v11 = vld [vmem:[#allocation11 + $0x164] ss:$8 sps:$4 sm:$0xff]  }
 0x3c2   :  { %4440 = vmatprep.subr.bf16.mxu1 %v6685_v11 }
 0x3c3   :  { %3514 = vmatmul.mubr.bf16.gmra.mrb[36].mxu0 %v7964_v27  ;;  %v3608_v27 = vrot.slane %v7987_v29, 2  ;;  %4441 = vmatpush1.bf16.msra.mxu1 %v6683_v44 }
 0x3c4   :  { %3523 = vmatprep.mubr.bf16.mxu0 %v7975_v20  ;;  %3801 = vmatpush1.bf16.msra.mxu0 %v6633_v37  ;;  %v3614_v20 = vrot.slane %v5923_v51, 2  ;;  %v6686_v37 = vld [vmem:[#allocation11 + $0x170] ss:$8 sps:$4 sm:$0xff]  }
 0x3c5   :  { %3802 = vmatprep.subr.bf16.mxu0 %v6638_v12  ;;  %v3609_v24 = vsel %vm3589_vm13, %v3604_v25, %v3608_v27  ;;  %v6688_v12 = vld [vmem:[#allocation11 + $0x174] ss:$8 sps:$4 sm:$0xff]  }
 0x3c6   :  { %v3615_v6 = vsel %vm3589_vm13, %v3610_v41, %v3614_v20  ;;  %4442 = vmatprep.subr.bf16.mxu1 %v6688_v12 }
 0x3c7   :  { %4443 = vmatpush1.bf16.msra.mxu1 %v6686_v37 }
 0x3c8   :  { %3803 = vmatpush1.bf16.msra.mxu0 %v6636_v3  ;;  %v6691_v3 = vld [vmem:[#allocation11 + $0x184] ss:$8 sps:$4 sm:$0xff]  }
 0x3c9   :  { %3804 = vmatprep.subr.bf16.mxu0 %v6641_v34  ;;  %4444 = vmatprep.subr.bf16.mxu1 %v6691_v3  ;;  %v6692_v34 = vld [vmem:[#allocation11 + $0x190] ss:$8 sps:$4 sm:$0xff]  }
 0x3cb   :  { %3524 = vmatmul.mubr.bf16.gmra.mrb[40].mxu0 %v7977_v63  ;;  %v3612_v63 = vrot.slane %v5922_v62, 2 }
 0x3cc   :  { %3533 = vmatprep.mubr.bf16.mxu0 %v7985_v2  ;;  %3805 = vmatpush1.bf16.msra.mxu0 %v6639_v4  ;;  %v6694_v4 = vld [vmem:[#allocation11 + $0x194] ss:$8 sps:$4 sm:$0xff]  }
 0x3cd   :  { %3806 = vmatprep.subr.bf16.mxu0 %v6644_v7  ;;  %v3613_v2 = vsel %vm3589_vm13, %v3608_v27, %v3612_v63  ;;  %v6695_v7 = vld [vmem:[#allocation11 + $0x1a0] ss:$8 sps:$4 sm:$0xff]  }
 0x3d0   :  { %3807 = vmatpush1.bf16.msra.mxu0 %v6642_v17  ;;  %v6700_v17 = vld [vmem:[#allocation11 + $0x1b4] ss:$8 sps:$4 sm:$0xff]  }
 0x3d1   :  { %3808 = vmatprep.subr.bf16.mxu0 %v6647_v14  ;;  %v6703_v14 = vld [vmem:[#allocation11 + $0x1c4] ss:$8 sps:$4 sm:$0xff]  }
 0x3d3   :  { %3534 = vmatmul.mubr.bf16.gmra.mrb[44].mxu0 %v7987_v29  ;;  %v6689_v29 = vld [vmem:[#allocation11 + $0x180] ss:$8 sps:$4 sm:$0xff]  }
 0x3d4   :  { %3809 = vmatpush1.bf16.msra.mxu0 %v6645_v47  ;;  %3820 = vmatprep.mubr.bf16.mxu0 %v3595_v21  ;;  %v6704_v47 = vld [vmem:[#allocation11 + $0x1d0] ss:$8 sps:$4 sm:$0xff]   ;;  %v6707_v21 = vld [vmem:[#allocation11 + $0x1e0] ss:$8 sps:$4 sm:$0xff]  }
 0x3d5   :  { %3810 = vmatprep.subr.bf16.mxu0 %v6650_v19  ;;  %4445 = vmatpush1.bf16.msra.mxu1 %v6689_v29  ;;  %v6709_v19 = vld [vmem:[#allocation11 + $0x1e4] ss:$8 sps:$4 sm:$0xff]  }
 0x3d6   :  { %4446 = vmatprep.subr.bf16.mxu1 %v6694_v4 }
 0x3d8   :  { %3811 = vmatpush1.bf16.msra.mxu0 %v6648_v52  ;;  %v6710_v52 = vld [vmem:[#allocation11 + $0x1f0] ss:$8 sps:$4 sm:$0xff]  }
 0x3d9   :  { %3812 = vmatprep.subr.bf16.mxu0 %v6653_v42  ;;  %4447 = vmatpush1.bf16.msra.mxu1 %v6692_v34  ;;  %v6712_v42 = vld [vmem:[#allocation11 + $0x1f4] ss:$8 sps:$4 sm:$0xff]  }
 0x3da   :  { %4448 = vmatprep.subr.bf16.mxu1 %v6697_v8 }
 0x3dc   :  { %3813 = vmatpush1.bf16.msra.mxu0 %v6651_v45  ;;  %v6715_v45 = vld [vmem:[#allocation11 + $0x4] ss:$8 sps:$4 sm:$0xff]  }
 0x3dd   :  { %3814 = vmatprep.subr.bf16.mxu0 %v6656_v35  ;;  %4449 = vmatpush1.bf16.msra.mxu1 %v6695_v7  ;;  %v3905_v35 = vld [vmem:[%s8241_s7] sm:$0x3] }
 0x3de   :  { %4450 = vmatprep.subr.bf16.mxu1 %v6700_v17 }
 0x3e0   :  { %3815 = vmatpush1.bf16.msra.mxu0 %v6654_v43  ;;  %v8037_v43 = vrot.slane %v3905_v35, %v7431_v30 }
 0x3e1   :  { %3816 = vmatprep.subr.bf16.mxu0 %v6659_v15  ;;  %4451 = vmatpush1.bf16.msra.mxu1 %v6698_v55  ;;  %v8040_v15 = vrot.slane %v3905_v35, %v7437_v32 }
 0x3e2   :  { %4452 = vmatprep.subr.bf16.mxu1 %v6703_v14 }
 0x3e4   :  { %3817 = vmatpush1.bf16.msra.mxu0 %v6657_v13 }
 0x3e5   :  { %3818 = vmatprep.subr.bf16.mxu0 %v6662_v1  ;;  %4453 = vmatpush1.bf16.msra.mxu1 %v6701_v5 }
 0x3e6   :  { %4454 = vmatprep.subr.bf16.mxu1 %v6706_v61 }
 0x3e8   :  { %3819 = vmatpush1.bf16.msra.mxu0 %v6660_v53 }
 0x3e9   :  { %4455 = vmatpush1.bf16.msra.mxu1 %v6704_v47 }
 0x3ea   :  { %4456 = vmatprep.subr.bf16.mxu1 %v6709_v19 }
 0x3eb   :  { %3821 = vmatmul.mubr.bf16.vlgmr.msra.gmra.mrb[24].mxu0 %v3592_v57 }
 0x3ec   :  { %3830 = vmatprep.mubr.bf16.mxu0 %v3599_v23 }
 0x3ed   :  { %4457 = vmatpush1.bf16.msra.mxu1 %v6707_v21 }
 0x3ee   :  { %4458 = vmatprep.subr.bf16.mxu1 %v6712_v42 }
 0x3f1   :  { %4459 = vmatpush1.bf16.msra.mxu1 %v6710_v52 }
 0x3f2   :  { %4698 = vmatprep.subr.bf16.mxu1 %v6715_v45 }
 0x3f3   :  { %3831 = vmatmul.mubr.bf16.gmra.mrb[28].mxu0 %v3597_v28 }
 0x3f4   :  { %3840 = vmatprep.mubr.bf16.mxu0 %v3603_v54 }
 0x3fb   :  { %3841 = vmatmul.mubr.bf16.gmra.mrb[32].mxu0 %v3601_v0 }
 0x3fc   :  { %3850 = vmatprep.mubr.bf16.mxu0 %v3607_v50 }
 0x403   :  { %3851 = vmatmul.mubr.bf16.gmra.mrb[36].mxu0 %v3605_v36 }
 0x404   :  { %3860 = vmatprep.mubr.bf16.mxu0 %v3611_v46 }
 0x40b   :  { %3861 = vmatmul.mubr.bf16.gmra.mrb[40].mxu0 %v3609_v24 }
 0x40c   :  { %3870 = vmatprep.mubr.bf16.mxu0 %v3615_v6 }
 0x413   :  { %3871 = vmatmul.mubr.bf16.gmra.mrb[44].mxu0 %v3613_v2 }
 0x4be   :  { %v3822_v13 = vpop.f32.mrb[24].mxu0 }
 0x4bf   :  { %v3917_v1 = vadd.f32 %v8037_v43, %v3822_v13  ;;  %v3824_v18 = vpop.f32.mrb[25].mxu0 }
 0x4c0   :  { %v3918_v53 = vadd.f32 %v8040_v15, %v3824_v18  ;;  %v3826_v9 = vpop.f32.mrb[26].mxu0 }
 0x4c1   :  { %v3919_v58 = vadd.f32 %v8037_v43, %v3826_v9  ;;  %v3828_v40 = vpop.f32.mrb[27].mxu0  ;;  %v3941_v23 = vmax.f32 %v3917_v1, 0.0 }
 0x4c2   :  { %v3920_v57 = vadd.f32 %v8040_v15, %v3828_v40  ;;  %v3942_v39 = vmax.f32 %v3918_v53, 0.0 }
 0x4c3   :  { %v3943_v31 = vmax.f32 %v3919_v58, 0.0 }
 0x4c4   :  { %v3944_v28 = vmax.f32 %v3920_v57, 0.0 }
 0x4c5   :  { %v3965_v54 = vpack.c.bf16 %v3943_v31, %v3941_v23 }
 0x4c6   :  { %v3966_v38 = vpack.c.bf16 %v3944_v28, %v3942_v39  ;;  %v3832_v56 = vpop.f32.mrb[28].mxu0 }
 0x4c7   :  { %v3977_v0 = vmul.bf16 %v7462_v48, %v3965_v54  ;;  %v3921_v50 = vadd.f32 %v8037_v43, %v3832_v56  ;;  %v3834_v25 = vpop.f32.mrb[29].mxu0 }
 0x4c8   :  { %v3978_v41 = vmul.bf16 %v7462_v48, %v3966_v38  ;;  %v3922_v22 = vadd.f32 %v8040_v15, %v3834_v25  ;;  %v3836_v36 = vpop.f32.mrb[30].mxu0 }
 0x4c9   :  { %v3923_v46 = vadd.f32 %v8037_v43, %v3836_v36  ;;  %v3838_v51 = vpop.f32.mrb[31].mxu0  ;;  %v3945_v62 = vmax.f32 %v3921_v50, 0.0 }
 0x4ca   :  { %v5956_v27 = vcombine.low %v3977_v0, %v3978_v41  ;;  %v5957_v20 = vcombine.high %v3977_v0, %v3978_v41  ;;  %v3924_v24 = vadd.f32 %v8040_v15, %v3838_v51  ;;  %v3946_v2 = vmax.f32 %v3922_v22, 0.0 }
 0x4cb   :  { %v3947_v6 = vmax.f32 %v3923_v46, 0.0 }
 0x4cc   :  { %v4037_v63 = vrot.slane %v5956_v27, 7  ;;  %v3948_v44 = vmax.f32 %v3924_v24, 0.0  ;;  %v4039_v12 = vrot.slane %v5957_v20, 7 }
 0x4cd   :  { %v3967_v11 = vpack.c.bf16 %v3947_v6, %v3945_v62 }
 0x4ce   :  { %v4038_v37 = vrot.slane %v4037_v63, 4  ;;  %4085 = vst [vmem:[#allocation4] sm:$0xee] %v4037_v63  ;;  %v3968_v48 = vpack.c.bf16 %v3948_v44, %v3946_v2  ;;  %v3842_v3 = vpop.f32.mrb[32].mxu0  ;;  %v4041_v42 = vrot.slane %v4039_v12, 4 }
 0x4cf   :  { %v3979_v29 = vmul.bf16 %v7472_v16, %v3967_v11  ;;  %v3925_v34 = vadd.f32 %v8037_v43, %v3842_v3  ;;  %v3844_v4 = vpop.f32.mrb[33].mxu0 }
 0x4d0   :  { %v8056_v8 = vsel %vm7238_vm5, %v4038_v37, %v4039_v12  ;;  %v3980_v7 = vmul.bf16 %v7472_v16, %v3968_v48  ;;  %v3926_v55 = vadd.f32 %v8040_v15, %v3844_v4  ;;  %v3846_v17 = vpop.f32.mrb[34].mxu0  ;;  %v6713_v48 = vld [vmem:[#allocation11] ss:$8 sps:$4 sm:$0xff]  }
 0x4d1   :  { %v3927_v14 = vadd.f32 %v8037_v43, %v3846_v17  ;;  %v3848_v5 = vpop.f32.mrb[35].mxu0  ;;  %v3949_v21 = vmax.f32 %v3925_v34, 0.0 }
 0x4d2   :  { %v5958_v47 = vcombine.low %v3979_v29, %v3980_v7  ;;  %v5959_v61 = vcombine.high %v3979_v29, %v3980_v7  ;;  %v3928_v19 = vadd.f32 %v8040_v15, %v3848_v5  ;;  %v3950_v35 = vmax.f32 %v3926_v55, 0.0  ;;  %v6718_v55 = vld [vmem:[#allocation11 + $0x14] ss:$8 sps:$4 sm:$0xff]  }
 0x4d3   :  { %v3951_v52 = vmax.f32 %v3927_v14, 0.0 }
 0x4d4   :  { %v4042_v45 = vrot.slane %v5958_v47, 7  ;;  %v3952_v13 = vmax.f32 %v3928_v19, 0.0  ;;  %v4045_v9 = vrot.slane %v5959_v61, 7 }
 0x4d5   :  { %v3969_v1 = vpack.c.bf16 %v3951_v52, %v3949_v21  ;;  %v4142_v18 = vld [vmem:[#allocation4] sm:$0xee] }
 0x4d6   :  { %v4043_v16 = vsel %vm7238_vm5, %v4041_v42, %v4042_v45  ;;  %v4044_v53 = vrot.slane %v4042_v45, 4  ;;  %v3970_v58 = vpack.c.bf16 %v3952_v13, %v3950_v35  ;;  %v3852_v40 = vpop.f32.mrb[36].mxu0  ;;  %v5969_v39 = vcombine.high %v4142_v18, %v8056_v8  ;;  %v6716_v35 = vld [vmem:[#allocation11 + $0x10] ss:$8 sps:$4 sm:$0xff]  }
 0x4d7   :  { %v3981_v57 = vmul.bf16 %v7496_v49, %v3969_v1  ;;  %v3929_v23 = vadd.f32 %v8037_v43, %v3852_v40  ;;  %v3854_v31 = vpop.f32.mrb[37].mxu0  ;;  %v5968_v25 = vcombine.low %v4142_v18, %v8056_v8  ;;  %v4047_v36 = vrot.slane %v4045_v9, 4 }
 0x4d8   :  { %v4046_v28 = vsel %vm7238_vm5, %v4044_v53, %v4045_v9  ;;  %v3982_v54 = vmul.bf16 %v7496_v49, %v3970_v58  ;;  %v3930_v38 = vadd.f32 %v8040_v15, %v3854_v31  ;;  %v3856_v56 = vpop.f32.mrb[38].mxu0  ;;  %v4233_v49 = vrot.slane %v5969_v39, 1  ;;  %v6721_v9 = vld [vmem:[#allocation11 + $0x24] ss:$8 sps:$4 sm:$0xff]  }
 0x4d9   :  { %v3931_v0 = vadd.f32 %v8037_v43, %v3856_v56  ;;  %v3858_v50 = vpop.f32.mrb[39].mxu0  ;;  %v8073_v41 = vcombine.low %v4043_v16, %v4046_v28  ;;  %v8075_v22 = vcombine.high %v4043_v16, %v4046_v28  ;;  %v3953_v20 = vmax.f32 %v3929_v23, 0.0  ;;  %v6719_v56 = vld [vmem:[#allocation11 + $0x20] ss:$8 sps:$4 sm:$0xff]  }
 0x4da   :  { %v5960_v46 = vcombine.low %v3981_v57, %v3982_v54  ;;  %v5961_v51 = vcombine.high %v3981_v57, %v3982_v54  ;;  %v3932_v27 = vadd.f32 %v8040_v15, %v3858_v50  ;;  %v3954_v63 = vmax.f32 %v3930_v38, 0.0 }
 0x4db   :  { %v3955_v24 = vmax.f32 %v3931_v0, 0.0  ;;  %v4234_v62 = vrot.slane %v8075_v22, 1  ;;  %v4231_v44 = vrot.slane %v8073_v41, 1  ;;  %v4230_v37 = vrot.slane %v5968_v25, 1 }
 0x4dc   :  { %v4048_v6 = vrot.slane %v5960_v46, 7  ;;  %v3956_v2 = vmax.f32 %v3932_v27, 0.0  ;;  %v4051_v34 = vrot.slane %v5961_v51, 7  ;;  %v6724_v27 = vld [vmem:[#allocation11 + $0x34] ss:$8 sps:$4 sm:$0xff]  }
 0x4dd   :  { %v3971_v11 = vpack.c.bf16 %v3955_v24, %v3953_v20  ;;  %v4235_v12 = vsel %vm446_vm6, %v4233_v49, %v4234_v62  ;;  %v4232_v47 = vsel %vm446_vm6, %v4230_v37, %v4231_v44  ;;  %v6722_v37 = vld [vmem:[#allocation11 + $0x30] ss:$8 sps:$4 sm:$0xff]  }
 0x4de   :  { %v4049_v3 = vsel %vm7238_vm5, %v4047_v36, %v4048_v6  ;;  %v4050_v29 = vrot.slane %v4048_v6, 4  ;;  %v3972_v4 = vpack.c.bf16 %v3956_v2, %v3954_v63  ;;  %v3862_v7 = vpop.f32.mrb[40].mxu0  ;;  %4460 = vmatprep.mubr.bf16.mxu1 %v4235_v12  ;;  %v4053_v23 = vrot.slane %v4051_v34, 4 }
 0x4df   :  { %v3983_v17 = vmul.bf16 %v7498_v59, %v3971_v11  ;;  %v3933_v14 = vadd.f32 %v8037_v43, %v3862_v7  ;;  %v3864_v5 = vpop.f32.mrb[41].mxu0  ;;  %4461 = vmatmul.mubr.bf16.vlgmr.msra.gmra.mrb[24].mxu1 %v4232_v47 }
 0x4e0   :  { %v4052_v61 = vsel %vm7238_vm5, %v4050_v29, %v4051_v34  ;;  %v3984_v19 = vmul.bf16 %v7498_v59, %v3972_v4  ;;  %v3934_v21 = vadd.f32 %v8040_v15, %v3864_v5  ;;  %v3866_v52 = vpop.f32.mrb[42].mxu0  ;;  %4699 = vmatpush1.bf16.msra.mxu1 %v6713_v48  ;;  %v6727_v4 = vld [vmem:[#allocation11 + $0x44] ss:$8 sps:$4 sm:$0xff]  }
 0x4e1   :  { %v3935_v42 = vadd.f32 %v8037_v43, %v3866_v52  ;;  %v3868_v45 = vpop.f32.mrb[43].mxu0  ;;  %v8091_v13 = vcombine.high %v4049_v3, %v4052_v61  ;;  %v8093_v1 = vcombine.low %v4049_v3, %v4052_v61  ;;  %4700 = vmatprep.subr.bf16.mxu1 %v6718_v55  ;;  %v3957_v59 = vmax.f32 %v3933_v14, 0.0 }
 0x4e2   :  { %v5962_v18 = vcombine.low %v3983_v17, %v3984_v19  ;;  %v5963_v16 = vcombine.high %v3983_v17, %v3984_v19  ;;  %v3936_v53 = vadd.f32 %v8040_v15, %v3868_v45  ;;  %v3958_v39 = vmax.f32 %v3934_v21, 0.0  ;;  %v6725_v21 = vld [vmem:[#allocation11 + $0x40] ss:$8 sps:$4 sm:$0xff]  }
 0x4e3   :  { %v3959_v58 = vmax.f32 %v3935_v42, 0.0  ;;  %v4238_v40 = vrot.slane %v8091_v13, 1  ;;  %v4236_v57 = vrot.slane %v8093_v1, 1 }
 0x4e4   :  { %v4054_v31 = vrot.slane %v5962_v18, 7  ;;  %v3960_v28 = vmax.f32 %v3936_v53, 0.0  ;;  %4701 = vmatpush1.bf16.msra.mxu1 %v6716_v35  ;;  %v4057_v36 = vrot.slane %v5963_v16, 7  ;;  %v6730_v18 = vld [vmem:[#allocation11 + $0x54] ss:$8 sps:$4 sm:$0xff]  }
 0x4e5   :  { %v3973_v54 = vpack.c.bf16 %v3959_v58, %v3957_v59  ;;  %v4239_v38 = vsel %vm446_vm6, %v4234_v62, %v4238_v40  ;;  %v4237_v0 = vsel %vm446_vm6, %v4231_v44, %v4236_v57  ;;  %4702 = vmatprep.subr.bf16.mxu1 %v6721_v9  ;;  %v6728_v59 = vld [vmem:[#allocation11 + $0x50] ss:$8 sps:$4 sm:$0xff]  }
 0x4e6   :  { %v4055_v50 = vsel %vm7238_vm5, %v4053_v23, %v4054_v31  ;;  %v4056_v25 = vrot.slane %v4054_v31, 4  ;;  %v3974_v46 = vpack.c.bf16 %v3960_v28, %v3958_v39  ;;  %v3872_v51 = vpop.f32.mrb[44].mxu0  ;;  %4470 = vmatprep.mubr.bf16.mxu1 %v4239_v38  ;;  %v6733_v31 = vld [vmem:[#allocation11 + $0x64] ss:$8 sps:$4 sm:$0xff]  }
 0x4e7   :  { %v3985_v20 = vmul.bf16 %v7500_v60, %v3973_v54  ;;  %v3937_v24 = vadd.f32 %v8037_v43, %v3872_v51  ;;  %v3874_v49 = vpop.f32.mrb[45].mxu0  ;;  %4471 = vmatmul.mubr.bf16.gmra.mrb[28].mxu1 %v4237_v0  ;;  %v6731_v0 = vld [vmem:[#allocation11 + $0x60] ss:$8 sps:$4 sm:$0xff]   ;;  %v6736_v51 = vld [vmem:[#allocation11 + $0x74] ss:$8 sps:$4 sm:$0xff]  }
 0x4e8   :  { %v4058_v62 = vsel %vm7238_vm5, %v4056_v25, %v4057_v36  ;;  %v3986_v6 = vmul.bf16 %v7500_v60, %v3974_v46  ;;  %v3938_v63 = vadd.f32 %v8040_v15, %v3874_v49  ;;  %v3876_v2 = vpop.f32.mrb[46].mxu0  ;;  %4703 = vmatpush1.bf16.msra.mxu1 %v6719_v56 }
 0x4e9   :  { %v3939_v44 = vadd.f32 %v8037_v43, %v3876_v2  ;;  %v3878_v11 = vpop.f32.mrb[47].mxu0  ;;  %v8109_v12 = vcombine.high %v4055_v50, %v4058_v62  ;;  %v8111_v48 = vcombine.low %v4055_v50, %v4058_v62  ;;  %4704 = vmatprep.subr.bf16.mxu1 %v6724_v27  ;;  %v3961_v60 = vmax.f32 %v3937_v24, 0.0  ;;  %v6739_v62 = vld [vmem:[#allocation11 + $0x84] ss:$8 sps:$4 sm:$0xff]  }
 0x4ea   :  { %v5964_v3 = vcombine.low %v3985_v20, %v3986_v6  ;;  %v5965_v29 = vcombine.high %v3985_v20, %v3986_v6  ;;  %v3940_v34 = vadd.f32 %v8040_v15, %v3878_v11  ;;  %v4059_v43 = vrot.slane %v4057_v36, 4  ;;  %v6734_v20 = vld [vmem:[#allocation11 + $0x70] ss:$8 sps:$4 sm:$0xff]   ;;  %v6743_v11 = vld [vmem:[#allocation11 + $0x94] ss:$8 sps:$4 sm:$0xff]  }
 0x4eb   :  { %v3963_v7 = vmax.f32 %v3939_v44, 0.0  ;;  %v4242_v55 = vrot.slane %v8109_v12, 1  ;;  %v4240_v17 = vrot.slane %v8111_v48, 1  ;;  %v3962_v5 = vmax.f32 %v3938_v63, 0.0  ;;  %v6737_v44 = vld [vmem:[#allocation11 + $0x80] ss:$8 sps:$4 sm:$0xff]  }
 0x4ec   :  { %v4060_v14 = vrot.slane %v5964_v3, 7  ;;  %v3964_v47 = vmax.f32 %v3940_v34, 0.0  ;;  %4705 = vmatpush1.bf16.msra.mxu1 %v6722_v37  ;;  %v4063_v45 = vrot.slane %v5965_v29, 7  ;;  %v6741_v34 = vld [vmem:[#allocation11 + $0x90] ss:$8 sps:$4 sm:$0xff]  }
 0x4ed   :  { %v3975_v61 = vpack.c.bf16 %v3963_v7, %v3961_v60  ;;  %v4243_v19 = vsel %vm446_vm6, %v4238_v40, %v4242_v55  ;;  %v4241_v52 = vsel %vm446_vm6, %v4236_v57, %v4240_v17  ;;  %4706 = vmatprep.subr.bf16.mxu1 %v6727_v4  ;;  %v6746_v60 = vld [vmem:[#allocation11 + $0xa4] ss:$8 sps:$4 sm:$0xff]  }
 0x4ee   :  { %v4061_v15 = vsel %vm7238_vm5, %v4059_v43, %v4060_v14  ;;  %v4062_v42 = vrot.slane %v4060_v14, 4  ;;  %v3976_v35 = vpack.c.bf16 %v3964_v47, %v3962_v5  ;;  %4480 = vmatprep.mubr.bf16.mxu1 %v4243_v19  ;;  %v4065_v54 = vrot.slane %v4063_v45, 4  ;;  %v6744_v43 = vld [vmem:[#allocation11 + $0xa0] ss:$8 sps:$4 sm:$0xff]   ;;  %v6750_v14 = vld [vmem:[#allocation11 + $0xb4] ss:$8 sps:$4 sm:$0xff]  }
 0x4ef   :  { %v3987_v16 = vmul.bf16 %v7502_v33, %v3975_v61  ;;  %4481 = vmatmul.mubr.bf16.gmra.mrb[32].mxu1 %v4241_v52  ;;  %v6813_v61 = vld [vmem:[#allocation13] ss:$8 sps:$4 sm:$0xff]   ;;  %v6815_v19 = vld [vmem:[#allocation13 + $0x4] ss:$8 sps:$4 sm:$0xff]   ;;  %v6818_v52 = vld [vmem:[#allocation13 + $0x14] ss:$8 sps:$4 sm:$0xff]  }
 0x4f0   :  { %v4064_v53 = vsel %vm7238_vm5, %v4062_v42, %v4063_v45  ;;  %v3988_v9 = vmul.bf16 %v7502_v33, %v3976_v35  ;;  %4707 = vmatpush1.bf16.msra.mxu1 %v6725_v21  ;;  %v6748_v21 = vld [vmem:[#allocation11 + $0xb0] ss:$8 sps:$4 sm:$0xff]   ;;  %5415 = vmatprep.subr.bf16.mxu0 %v6815_v19  ;;  %v6821_v45 = vld [vmem:[#allocation13 + $0x24] ss:$8 sps:$4 sm:$0xff]   ;;  %v6751_v35 = vld [vmem:[#allocation11 + $0xc0] ss:$8 sps:$4 sm:$0xff]  }
 0x4f1   :  { %v8124_v58 = vcombine.high %v4061_v15, %v4064_v53  ;;  %v8126_v40 = vcombine.low %v4061_v15, %v4064_v53  ;;  %4708 = vmatprep.subr.bf16.mxu1 %v6730_v18  ;;  %v6753_v15 = vld [vmem:[#allocation11 + $0xc4] ss:$8 sps:$4 sm:$0xff]   ;;  %5416 = vmatpush1.bf16.msra.mxu0 %v6813_v61  ;;  %v6816_v42 = vld [vmem:[#allocation13 + $0x10] ss:$8 sps:$4 sm:$0xff]   ;;  %v6756_v18 = vld [vmem:[#allocation11 + $0xd4] ss:$8 sps:$4 sm:$0xff]  }
 0x4f2   :  { %v5966_v57 = vcombine.low %v3987_v16, %v3988_v9  ;;  %v5967_v23 = vcombine.high %v3987_v16, %v3988_v9  ;;  %5417 = vmatprep.subr.bf16.mxu0 %v6818_v52  ;;  %v6819_v16 = vld [vmem:[#allocation13 + $0x20] ss:$8 sps:$4 sm:$0xff]   ;;  %v6824_v53 = vld [vmem:[#allocation13 + $0x34] ss:$8 sps:$4 sm:$0xff]   ;;  %v6754_v9 = vld [vmem:[#allocation11 + $0xd0] ss:$8 sps:$4 sm:$0xff]  }
 0x4f3   :  { %v4246_v39 = vrot.slane %v8124_v58, 1  ;;  %v4244_v28 = vrot.slane %v8126_v40, 1  ;;  %v6849_v61 = vld [vmem:[#allocation13 + $0xc0] ss:$8 sps:$4 sm:$0xff]   ;;  %v6854_v19 = vld [vmem:[#allocation13 + $0xd4] ss:$8 sps:$4 sm:$0xff]  }
 0x4f4   :  { %v4066_v38 = vrot.slane %v5966_v57, 7  ;;  %v4069_v56 = vrot.slane %v5967_v23, 7  ;;  %4709 = vmatpush1.bf16.msra.mxu1 %v6728_v59  ;;  %v6759_v59 = vld [vmem:[#allocation11 + $0xe4] ss:$8 sps:$4 sm:$0xff]   ;;  %v6822_v57 = vld [vmem:[#allocation13 + $0x30] ss:$8 sps:$4 sm:$0xff]  }
 0x4f5   :  { %v4247_v33 = vsel %vm446_vm6, %v4242_v55, %v4246_v39  ;;  %v4245_v50 = vsel %vm446_vm6, %v4240_v17, %v4244_v28  ;;  %4710 = vmatprep.subr.bf16.mxu1 %v6733_v31  ;;  %v4098_v17 = vld [vmem:[#allocation4] sm:$0xff]  ;;  %5418 = vmatpush1.bf16.msra.mxu0 %v6816_v42  ;;  %v6827_v23 = vld [vmem:[#allocation13 + $0x44] ss:$8 sps:$4 sm:$0xff]   ;;  %v6757_v31 = vld [vmem:[#allocation11 + $0xe0] ss:$8 sps:$4 sm:$0xff]  }
 0x4f6   :  { %v4067_v25 = vsel %vm7238_vm5, %v4065_v54, %v4066_v38  ;;  %v4068_v36 = vrot.slane %v4066_v38, 4  ;;  %v4071_v46 = vrot.slane %v4069_v56, 4  ;;  %4490 = vmatprep.mubr.bf16.mxu1 %v4247_v33  ;;  %v6015_v47 = vcombine.high %v4098_v17, %v8056_v8  ;;  %5419 = vmatprep.subr.bf16.mxu0 %v6821_v45  ;;  %v6830_v54 = vld [vmem:[#allocation13 + $0x54] ss:$8 sps:$4 sm:$0xff]   ;;  %v6760_v38 = vld [vmem:[#allocation11 + $0xf0] ss:$8 sps:$4 sm:$0xff]  }
 0x4f7   :  { %4491 = vmatmul.mubr.bf16.gmra.mrb[36].mxu1 %v4245_v50  ;;  %v6828_v33 = vld [vmem:[#allocation13 + $0x50] ss:$8 sps:$4 sm:$0xff]   ;;  %v6763_v50 = vld [vmem:[#allocation11 + $0x200] ss:$8 sps:$4 sm:$0xff]   ;;  %v6789_v52 = vld [vmem:[#allocation11 + $0x284] ss:$8 sps:$4 sm:$0xff]  }
 0x4f8   :  { %v4070_v27 = vsel %vm7238_vm5, %v4068_v36, %v4069_v56  ;;  %4097 = vst [vmem:[#allocation4 + $0x60] sm:$0x11] %v4071_v46  ;;  %4711 = vmatpush1.bf16.msra.mxu1 %v6731_v0  ;;  %v6765_v56 = vld [vmem:[#allocation11 + $0x204] ss:$8 sps:$4 sm:$0xff]   ;;  %v6768_v36 = vld [vmem:[#allocation11 + $0x214] ss:$8 sps:$4 sm:$0xff]  }
 0x4f9   :  { %v8136_v24 = vcombine.high %v4067_v25, %v4070_v27  ;;  %v8138_v49 = vcombine.low %v4067_v25, %v4070_v27  ;;  %4712 = vmatprep.subr.bf16.mxu1 %v6736_v51  ;;  %5420 = vmatpush1.bf16.msra.mxu0 %v6819_v16  ;;  %v6833_v0 = vld [vmem:[#allocation13 + $0x64] ss:$8 sps:$4 sm:$0xff]   ;;  %v6014_v25 = vcombine.low %v4098_v17, %v8056_v8  ;;  %v6831_v46 = vld [vmem:[#allocation13 + $0x60] ss:$8 sps:$4 sm:$0xff]   ;;  %v6836_v51 = vld [vmem:[#allocation13 + $0x74] ss:$8 sps:$4 sm:$0xff]  }
 0x4fa   :  { %5421 = vmatprep.subr.bf16.mxu0 %v6824_v53  ;;  %v6766_v27 = vld [vmem:[#allocation11 + $0x210] ss:$8 sps:$4 sm:$0xff]   ;;  %v6783_v17 = vld [vmem:[#allocation11 + $0x264] ss:$8 sps:$4 sm:$0xff]   ;;  %v6787_v42 = vld [vmem:[#allocation11 + $0x280] ss:$8 sps:$4 sm:$0xff]  }
 0x4fb   :  { %v4250_v6 = vrot.slane %v8136_v24, 1  ;;  %v4248_v63 = vrot.slane %v8138_v49, 1  ;;  %v6792_v45 = vld [vmem:[#allocation11 + $0x294] ss:$8 sps:$4 sm:$0xff]   ;;  %v6795_v16 = vld [vmem:[#allocation11 + $0x2a4] ss:$8 sps:$4 sm:$0xff]  }
 0x4fc   :  { %4713 = vmatpush1.bf16.msra.mxu1 %v6734_v20  ;;  %v6771_v20 = vld [vmem:[#allocation11 + $0x224] ss:$8 sps:$4 sm:$0xff]  }
 0x4fd   :  { %v4251_v2 = vsel %vm446_vm6, %v4246_v39, %v4250_v6  ;;  %v4249_v10 = vsel %vm446_vm6, %v4244_v28, %v4248_v63  ;;  %4714 = vmatprep.subr.bf16.mxu1 %v6739_v62  ;;  %v6762_v39 = vld [vmem:[#allocation11 + $0xf4] ss:$8 sps:$4 sm:$0xff]   ;;  %5422 = vmatpush1.bf16.msra.mxu0 %v6822_v57  ;;  %v6825_v28 = vld [vmem:[#allocation13 + $0x40] ss:$8 sps:$4 sm:$0xff]   ;;  %v6834_v62 = vld [vmem:[#allocation13 + $0x70] ss:$8 sps:$4 sm:$0xff]  }
 0x4fe   :  { %4500 = vmatprep.mubr.bf16.mxu1 %v4251_v2  ;;  %5423 = vmatprep.subr.bf16.mxu0 %v6827_v23  ;;  %v6774_v2 = vld [vmem:[#allocation11 + $0x234] ss:$8 sps:$4 sm:$0xff]  }
 0x4ff   :  { %v4143_v37 = vld [vmem:[#allocation4 + $0x60] sm:$0x11]  ;;  %4501 = vmatmul.mubr.bf16.gmra.mrb[40].mxu1 %v4249_v10 }
 0x500   :  { %v5981_v3 = vcombine.high %v4143_v37, %v4143_v37  ;;  %v5980_v29 = vcombine.low %v4143_v37, %v4143_v37  ;;  %4715 = vmatpush1.bf16.msra.mxu1 %v6737_v44  ;;  %v6837_v44 = vld [vmem:[#allocation13 + $0x80] ss:$8 sps:$4 sm:$0xff]   ;;  %v6842_v10 = vld [vmem:[#allocation13 + $0x94] ss:$8 sps:$4 sm:$0xff]   ;;  %v6777_v37 = vld [vmem:[#allocation11 + $0x244] ss:$8 sps:$4 sm:$0xff]  }
 0x501   :  { %4716 = vmatprep.subr.bf16.mxu1 %v6743_v11  ;;  %5424 = vmatpush1.bf16.msra.mxu0 %v6825_v28  ;;  %v6772_v11 = vld [vmem:[#allocation11 + $0x230] ss:$8 sps:$4 sm:$0xff]   ;;  %v6798_v23 = vld [vmem:[#allocation11 + $0x2b4] ss:$8 sps:$4 sm:$0xff]   ;;  %v6801_v28 = vld [vmem:[#allocation11 + $0x2c4] ss:$8 sps:$4 sm:$0xff]  }
 0x502   :  { %v4254_v4 = vrot.slane %v5981_v3, 1  ;;  %v4252_v7 = vrot.slane %v5980_v29, 1  ;;  %5425 = vmatprep.subr.bf16.mxu0 %v6830_v54  ;;  %v6840_v3 = vld [vmem:[#allocation13 + $0x90] ss:$8 sps:$4 sm:$0xff]   ;;  %v6845_v29 = vld [vmem:[#allocation13 + $0xa4] ss:$8 sps:$4 sm:$0xff]  }
 0x503   :  { %v6799_v54 = vld [vmem:[#allocation11 + $0x2c0] ss:$8 sps:$4 sm:$0xff]  }
 0x504   :  { %v4255_v55 = vsel %vm446_vm6, %v4250_v6, %v4254_v4  ;;  %4717 = vmatpush1.bf16.msra.mxu1 %v6741_v34  ;;  %v4253_v5 = vsel %vm446_vm6, %v4248_v63, %v4252_v7  ;;  %v6839_v6 = vld [vmem:[#allocation13 + $0x84] ss:$8 sps:$4 sm:$0xff]   ;;  %v6769_v63 = vld [vmem:[#allocation11 + $0x220] ss:$8 sps:$4 sm:$0xff]   ;;  %v6780_v4 = vld [vmem:[#allocation11 + $0x254] ss:$8 sps:$4 sm:$0xff]  }
 0x505   :  { %4510 = vmatprep.mubr.bf16.mxu1 %v4255_v55  ;;  %4718 = vmatprep.subr.bf16.mxu1 %v6746_v60  ;;  %v6775_v34 = vld [vmem:[#allocation11 + $0x240] ss:$8 sps:$4 sm:$0xff]   ;;  %v6848_v7 = vld [vmem:[#allocation13 + $0xb4] ss:$8 sps:$4 sm:$0xff]   ;;  %v6778_v55 = vld [vmem:[#allocation11 + $0x250] ss:$8 sps:$4 sm:$0xff]  }
 0x506   :  { %5426 = vmatpush1.bf16.msra.mxu0 %v6828_v33  ;;  %v6843_v60 = vld [vmem:[#allocation13 + $0xa0] ss:$8 sps:$4 sm:$0xff]  }
 0x507   :  { %4511 = vmatmul.mubr.bf16.gmra.mrb[44].mxu1 %v4253_v5  ;;  %5427 = vmatprep.subr.bf16.mxu0 %v6833_v0  ;;  %v6781_v5 = vld [vmem:[#allocation11 + $0x260] ss:$8 sps:$4 sm:$0xff]   ;;  %v6810_v0 = vld [vmem:[#allocation11 + $0x2f4] ss:$8 sps:$4 sm:$0xff]  }
 0x508   :  { %4719 = vmatpush1.bf16.msra.mxu1 %v6744_v43  ;;  %4730 = vmatprep.mubr.bf16.mxu1 %v6015_v47  ;;  %v6846_v43 = vld [vmem:[#allocation13 + $0xb0] ss:$8 sps:$4 sm:$0xff]   ;;  %v6786_v47 = vld [vmem:[#allocation11 + $0x274] ss:$8 sps:$4 sm:$0xff]   ;;  %v6805_v33 = vld [vmem:[#allocation11 + $0x2e0] ss:$8 sps:$4 sm:$0xff]  }
 0x509   :  { %4720 = vmatprep.subr.bf16.mxu1 %v6750_v14  ;;  %v6851_v14 = vld [vmem:[#allocation13 + $0xc4] ss:$8 sps:$4 sm:$0xff]  }
 0x50a   :  { %5428 = vmatpush1.bf16.msra.mxu0 %v6831_v46  ;;  %v4844_v46 = vrot.slane %v8091_v13, 2 }
 0x50b   :  { %5429 = vmatprep.subr.bf16.mxu0 %v6836_v51 }
 0x50c   :  { %4721 = vmatpush1.bf16.msra.mxu1 %v6748_v21  ;;  %v6784_v21 = vld [vmem:[#allocation11 + $0x270] ss:$8 sps:$4 sm:$0xff]  }
 0x50d   :  { %4722 = vmatprep.subr.bf16.mxu1 %v6753_v15  ;;  %v6852_v15 = vld [vmem:[#allocation13 + $0xd0] ss:$8 sps:$4 sm:$0xff]  }
 0x50e   :  { %5430 = vmatpush1.bf16.msra.mxu0 %v6834_v62  ;;  %v4842_v62 = vrot.slane %v8093_v1, 2 }
 0x50f   :  { %5431 = vmatprep.subr.bf16.mxu0 %v6839_v6  ;;  %v4848_v6 = vrot.slane %v8109_v12, 2 }
 0x510   :  { %4723 = vmatpush1.bf16.msra.mxu1 %v6751_v35  ;;  %v4791_v35 = vld [vmem:[#allocation4] sm:$0xcc] }
 0x511   :  { %4724 = vmatprep.subr.bf16.mxu1 %v6756_v18  ;;  %v6790_v18 = vld [vmem:[#allocation11 + $0x290] ss:$8 sps:$4 sm:$0xff]   ;;  %v6049_v53 = vcombine.high %v4791_v35, %v8056_v8 }
 0x512   :  { %5432 = vmatpush1.bf16.msra.mxu0 %v6837_v44 }
 0x513   :  { %5433 = vmatprep.subr.bf16.mxu0 %v6842_v10  ;;  %v4839_v57 = vrot.slane %v6049_v53, 2  ;;  %v4792_v10 = vld [vmem:[#allocation4 + $0x60] sm:$0x33] }
 0x514   :  { %4725 = vmatpush1.bf16.msra.mxu1 %v6754_v9  ;;  %v4840_v9 = vrot.slane %v8075_v22, 2 }
 0x515   :  { %4726 = vmatprep.subr.bf16.mxu1 %v6759_v59  ;;  %v6793_v59 = vld [vmem:[#allocation11 + $0x2a0] ss:$8 sps:$4 sm:$0xff]  }
 0x516   :  { %5434 = vmatpush1.bf16.msra.mxu0 %v6840_v3  ;;  %v6051_v3 = vcombine.high %v4792_v10, %v4792_v10 }
 0x517   :  { %5435 = vmatprep.subr.bf16.mxu0 %v6845_v29 }
 0x518   :  { %4727 = vmatpush1.bf16.msra.mxu1 %v6757_v31  ;;  %v4841_v31 = vsel %vm3589_vm13, %v4839_v57, %v4840_v9 }
 0x519   :  { %4728 = vmatprep.subr.bf16.mxu1 %v6762_v39  ;;  %v6796_v39 = vld [vmem:[#allocation11 + $0x2b0] ss:$8 sps:$4 sm:$0xff]  }
 0x51a   :  { %5436 = vmatpush1.bf16.msra.mxu0 %v6843_v60  ;;  %v6855_v60 = vld [vmem:[#allocation13 + $0xe0] ss:$8 sps:$4 sm:$0xff]  }
 0x51b   :  { %5437 = vmatprep.subr.bf16.mxu0 %v6848_v7  ;;  %v6857_v7 = vld [vmem:[#allocation13 + $0xe4] ss:$8 sps:$4 sm:$0xff]  }
 0x51c   :  { %4729 = vmatpush1.bf16.msra.mxu1 %v6760_v38  ;;  %v6804_v38 = vld [vmem:[#allocation11 + $0x2d4] ss:$8 sps:$4 sm:$0xff]  }
 0x51d   :  { %5034 = vmatprep.subr.bf16.mxu1 %v6765_v56  ;;  %v6807_v56 = vld [vmem:[#allocation11 + $0x2e4] ss:$8 sps:$4 sm:$0xff]  }
 0x51e   :  { %5438 = vmatpush1.bf16.msra.mxu0 %v6846_v43 }
 0x51f   :  { %4731 = vmatmul.mubr.bf16.vlgmr.msra.gmra.mrb[24].mxu1 %v6014_v25  ;;  %5439 = vmatprep.subr.bf16.mxu0 %v6851_v14  ;;  %v6808_v25 = vld [vmem:[#allocation11 + $0x2f0] ss:$8 sps:$4 sm:$0xff]  }
 0x520   :  { %4740 = vmatprep.mubr.bf16.mxu1 %v8075_v22  ;;  %5035 = vmatpush1.bf16.msra.mxu1 %v6763_v50  ;;  %v6802_v22 = vld [vmem:[#allocation11 + $0x2d0] ss:$8 sps:$4 sm:$0xff]   ;;  %v6048_v50 = vcombine.low %v4791_v35, %v8056_v8 }
 0x521   :  { %5036 = vmatprep.subr.bf16.mxu1 %v6768_v36  ;;  %v4837_v36 = vrot.slane %v8073_v41, 2 }
 0x522   :  { %5440 = vmatpush1.bf16.msra.mxu0 %v6849_v61  ;;  %v4836_v51 = vrot.slane %v6048_v50, 2 }
 0x523   :  { %5441 = vmatprep.subr.bf16.mxu0 %v6854_v19  ;;  %v4843_v8 = vsel %vm3589_vm13, %v4837_v36, %v4842_v62 }
 0x524   :  { %5037 = vmatpush1.bf16.msra.mxu1 %v6766_v27  ;;  %v4838_v27 = vsel %vm3589_vm13, %v4836_v51, %v4837_v36 }
 0x525   :  { %5038 = vmatprep.subr.bf16.mxu1 %v6771_v20  ;;  %v4845_v20 = vsel %vm3589_vm13, %v4840_v9, %v4844_v46 }
 0x526   :  { %5442 = vmatpush1.bf16.msra.mxu0 %v6852_v15 }
 0x527   :  { %4741 = vmatmul.mubr.bf16.gmra.mrb[28].mxu1 %v8073_v41  ;;  %v4846_v41 = vrot.slane %v8111_v48, 2  ;;  %5443 = vmatprep.subr.bf16.mxu0 %v6857_v7 }
 0x528   :  { %4750 = vmatprep.mubr.bf16.mxu1 %v8091_v13  ;;  %5039 = vmatpush1.bf16.msra.mxu1 %v6769_v63  ;;  %v4849_v63 = vsel %vm3589_vm13, %v4844_v46, %v4848_v6  ;;  %v4852_v13 = vrot.slane %v8124_v58, 2 }
 0x529   :  { %5040 = vmatprep.subr.bf16.mxu1 %v6774_v2  ;;  %v4847_v2 = vsel %vm3589_vm13, %v4842_v62, %v4846_v41 }
 0x52a   :  { %v4853_v44 = vsel %vm3589_vm13, %v4848_v6, %v4852_v13  ;;  %5444 = vmatpush1.bf16.msra.mxu0 %v6855_v60 }
 0x52c   :  { %5041 = vmatpush1.bf16.msra.mxu1 %v6772_v11 }
 0x52d   :  { %5042 = vmatprep.subr.bf16.mxu1 %v6777_v37 }
 0x52f   :  { %4751 = vmatmul.mubr.bf16.gmra.mrb[32].mxu1 %v8093_v1  ;;  %v4850_v1 = vrot.slane %v8126_v40, 2 }
 0x530   :  { %4760 = vmatprep.mubr.bf16.mxu1 %v8109_v12  ;;  %5043 = vmatpush1.bf16.msra.mxu1 %v6775_v34  ;;  %v4856_v12 = vrot.slane %v8136_v24, 2  ;;  %v6050_v34 = vcombine.low %v4792_v10, %v4792_v10 }
 0x531   :  { %5044 = vmatprep.subr.bf16.mxu1 %v6780_v4  ;;  %v4851_v11 = vsel %vm3589_vm13, %v4846_v41, %v4850_v1 }
 0x532   :  { %v4857_v37 = vsel %vm3589_vm13, %v4852_v13, %v4856_v12 }
 0x534   :  { %5045 = vmatpush1.bf16.msra.mxu1 %v6778_v55  ;;  %v6860_v55 = vld [vmem:[#allocation13 + $0xf4] ss:$8 sps:$4 sm:$0xff]  }
 0x535   :  { %5046 = vmatprep.subr.bf16.mxu1 %v6783_v17  ;;  %v6858_v17 = vld [vmem:[#allocation13 + $0xf0] ss:$8 sps:$4 sm:$0xff]   ;;  %5445 = vmatprep.subr.bf16.mxu0 %v6860_v55 }
 0x536   :  { %5446 = vmatpush1.bf16.msra.mxu0 %v6858_v17 }
 0x537   :  { %4761 = vmatmul.mubr.bf16.gmra.mrb[36].mxu1 %v8111_v48  ;;  %v4854_v48 = vrot.slane %v8138_v49, 2 }
 0x538   :  { %4770 = vmatprep.mubr.bf16.mxu1 %v8124_v58  ;;  %5047 = vmatpush1.bf16.msra.mxu1 %v6781_v5  ;;  %v4860_v58 = vrot.slane %v6051_v3, 2 }
 0x539   :  { %5048 = vmatprep.subr.bf16.mxu1 %v6786_v47  ;;  %v4855_v29 = vsel %vm3589_vm13, %v4850_v1, %v4854_v48 }
 0x53a   :  { %v4861_v4 = vsel %vm3589_vm13, %v4856_v12, %v4860_v58 }
 0x53c   :  { %5049 = vmatpush1.bf16.msra.mxu1 %v6784_v21 }
 0x53d   :  { %5050 = vmatprep.subr.bf16.mxu1 %v6789_v52 }
 0x53f   :  { %4771 = vmatmul.mubr.bf16.gmra.mrb[40].mxu1 %v8126_v40  ;;  %v4858_v40 = vrot.slane %v6050_v34, 2 }
 0x540   :  { %4780 = vmatprep.mubr.bf16.mxu1 %v8136_v24  ;;  %5051 = vmatpush1.bf16.msra.mxu1 %v6787_v42 }
 0x541   :  { %5052 = vmatprep.subr.bf16.mxu1 %v6792_v45  ;;  %v4859_v24 = vsel %vm3589_vm13, %v4854_v48, %v4858_v40 }
 0x544   :  { %5053 = vmatpush1.bf16.msra.mxu1 %v6790_v18 }
 0x545   :  { %5054 = vmatprep.subr.bf16.mxu1 %v6795_v16 }
 0x547   :  { %4781 = vmatmul.mubr.bf16.gmra.mrb[44].mxu1 %v8138_v49  ;;  %v5151_v49 = vld [vmem:[%s8242_s8] sm:$0x3] }
 0x548   :  { %5055 = vmatpush1.bf16.msra.mxu1 %v6793_v59  ;;  %5066 = vmatprep.mubr.bf16.mxu1 %v4841_v31  ;;  %v8186_v43 = vrot.slane %v5151_v49, %v7431_v30  ;;  %v8189_v14 = vrot.slane %v5151_v49, %v7437_v32 }
 0x549   :  { %5056 = vmatprep.subr.bf16.mxu1 %v6798_v23 }
 0x54c   :  { %5057 = vmatpush1.bf16.msra.mxu1 %v6796_v39 }
 0x54d   :  { %5058 = vmatprep.subr.bf16.mxu1 %v6801_v28 }
 0x550   :  { %5059 = vmatpush1.bf16.msra.mxu1 %v6799_v54 }
 0x551   :  { %5060 = vmatprep.subr.bf16.mxu1 %v6804_v38 }
 0x554   :  { %5061 = vmatpush1.bf16.msra.mxu1 %v6802_v22 }
 0x555   :  { %5062 = vmatprep.subr.bf16.mxu1 %v6807_v56 }
 0x558   :  { %5063 = vmatpush1.bf16.msra.mxu1 %v6805_v33 }
 0x559   :  { %5064 = vmatprep.subr.bf16.mxu1 %v6810_v0 }
 0x55c   :  { %5065 = vmatpush1.bf16.msra.mxu1 %v6808_v25 }
 0x55f   :  { %5067 = vmatmul.mubr.bf16.vlgmr.msra.gmra.mrb[24].mxu1 %v4838_v27 }
 0x560   :  { %5076 = vmatprep.mubr.bf16.mxu1 %v4845_v20 }
 0x567   :  { %5077 = vmatmul.mubr.bf16.gmra.mrb[28].mxu1 %v4843_v8 }
 0x568   :  { %5086 = vmatprep.mubr.bf16.mxu1 %v4849_v63 }
 0x56f   :  { %5087 = vmatmul.mubr.bf16.gmra.mrb[32].mxu1 %v4847_v2 }
 0x570   :  { %5096 = vmatprep.mubr.bf16.mxu1 %v4853_v44 }
 0x577   :  { %5097 = vmatmul.mubr.bf16.gmra.mrb[36].mxu1 %v4851_v11 }
 0x578   :  { %5106 = vmatprep.mubr.bf16.mxu1 %v4857_v37 }
 0x57f   :  { %5107 = vmatmul.mubr.bf16.gmra.mrb[40].mxu1 %v4855_v29 }
 0x580   :  { %5116 = vmatprep.mubr.bf16.mxu1 %v4861_v4 }
 0x587   :  { %5117 = vmatmul.mubr.bf16.gmra.mrb[44].mxu1 %v4859_v24 }
 0x632   :  { %v5068_v5 = vpop.f32.mrb[24].mxu1 }
 0x633   :  { %v5163_v47 = vadd.f32 %v8186_v43, %v5068_v5  ;;  %v5070_v61 = vpop.f32.mrb[25].mxu1 }
 0x634   :  { %v5164_v19 = vadd.f32 %v8189_v14, %v5070_v61  ;;  %v5072_v21 = vpop.f32.mrb[26].mxu1 }
 0x635   :  { %v5165_v52 = vadd.f32 %v8186_v43, %v5072_v21  ;;  %v5074_v15 = vpop.f32.mrb[27].mxu1  ;;  %v5187_v45 = vmax.f32 %v5163_v47, 0.0 }
 0x636   :  { %v5166_v42 = vadd.f32 %v8189_v14, %v5074_v15  ;;  %v5188_v18 = vmax.f32 %v5164_v19, 0.0 }
 0x637   :  { %v5189_v35 = vmax.f32 %v5165_v52, 0.0 }
 0x638   :  { %v5190_v16 = vmax.f32 %v5166_v42, 0.0 }
 0x639   :  { %v5211_v53 = vpack.c.bf16 %v5189_v35, %v5187_v45 }
 0x63a   :  { %v5212_v9 = vpack.c.bf16 %v5190_v16, %v5188_v18  ;;  %v5078_v59 = vpop.f32.mrb[28].mxu1 }
 0x63b   :  { %v5167_v57 = vadd.f32 %v8186_v43, %v5078_v59  ;;  %v5080_v23 = vpop.f32.mrb[29].mxu1 }
 0x63c   :  { %v5168_v31 = vadd.f32 %v8189_v14, %v5080_v23  ;;  %v5082_v39 = vpop.f32.mrb[30].mxu1  ;;  %5447 = vmatprep.mubr.bf16.mxu0 %v5212_v9 }
 0x63d   :  { %v5169_v28 = vadd.f32 %v8186_v43, %v5082_v39  ;;  %v5084_v54 = vpop.f32.mrb[31].mxu1  ;;  %5448 = vmatmul.mubr.bf16.vlgmr.msra.gmra.mrb[48].mxu0 %v5211_v53  ;;  %v5191_v22 = vmax.f32 %v5167_v57, 0.0 }
 0x63e   :  { %v5170_v38 = vadd.f32 %v8189_v14, %v5084_v54  ;;  %v5192_v33 = vmax.f32 %v5168_v31, 0.0 }
 0x63f   :  { %v5193_v56 = vmax.f32 %v5169_v28, 0.0 }
 0x640   :  { %v5194_v0 = vmax.f32 %v5170_v38, 0.0 }
 0x641   :  { %v5213_v50 = vpack.c.bf16 %v5193_v56, %v5191_v22 }
 0x642   :  { %v5214_v25 = vpack.c.bf16 %v5194_v0, %v5192_v33  ;;  %v5088_v36 = vpop.f32.mrb[32].mxu1 }
 0x643   :  { %v5171_v46 = vadd.f32 %v8186_v43, %v5088_v36  ;;  %v5090_v51 = vpop.f32.mrb[33].mxu1 }
 0x644   :  { %v5172_v27 = vadd.f32 %v8189_v14, %v5090_v51  ;;  %v5092_v20 = vpop.f32.mrb[34].mxu1  ;;  %5457 = vmatprep.mubr.bf16.mxu0 %v5214_v25  ;;  %v5510_v25 = vld [vmem:[#allocation14 + $0x10] sm:$0xff]  ;;  %v5511_v51 = vld [vmem:[#allocation14 + $0x18] sm:$0xff] }
 0x645   :  { %v5173_v62 = vadd.f32 %v8186_v43, %v5092_v20  ;;  %v5094_v6 = vpop.f32.mrb[35].mxu1  ;;  %5458 = vmatmul.mubr.bf16.gmra.mrb[52].mxu0 %v5213_v50  ;;  %v5195_v63 = vmax.f32 %v5171_v46, 0.0  ;;  %v5508_v50 = vld [vmem:[#allocation14] sm:$0xff]  ;;  %v5509_v46 = vld [vmem:[#allocation14 + $0x8] sm:$0xff] }
 0x646   :  { %v5174_v8 = vadd.f32 %v8189_v14, %v5094_v6  ;;  %v5196_v13 = vmax.f32 %v5172_v27, 0.0 }
 0x647   :  { %v5197_v41 = vmax.f32 %v5173_v62, 0.0 }
 0x648   :  { %v5198_v2 = vmax.f32 %v5174_v8, 0.0 }
 0x649   :  { %v5215_v44 = vpack.c.bf16 %v5197_v41, %v5195_v63  ;;  %v5512_v41 = vld [vmem:[#allocation14 + $0x20] sm:$0xff] }
 0x64a   :  { %v5216_v1 = vpack.c.bf16 %v5198_v2, %v5196_v13  ;;  %v5098_v12 = vpop.f32.mrb[36].mxu1  ;;  %v5513_v13 = vld [vmem:[#allocation14 + $0x28] sm:$0xff] }
 0x64b   :  { %v5175_v10 = vadd.f32 %v8186_v43, %v5098_v12  ;;  %v5100_v11 = vpop.f32.mrb[37].mxu1 }
 0x64c   :  { %v5176_v37 = vadd.f32 %v8189_v14, %v5100_v11  ;;  %v5102_v3 = vpop.f32.mrb[38].mxu1  ;;  %5467 = vmatprep.mubr.bf16.mxu0 %v5216_v1 }
 0x64d   :  { %v5177_v48 = vadd.f32 %v8186_v43, %v5102_v3  ;;  %v5104_v58 = vpop.f32.mrb[39].mxu1  ;;  %5468 = vmatmul.mubr.bf16.gmra.mrb[56].mxu0 %v5215_v44  ;;  %v5199_v34 = vmax.f32 %v5175_v10, 0.0  ;;  %v5514_v44 = vld [vmem:[#allocation14 + $0x30] sm:$0xff]  ;;  %v5515_v10 = vld [vmem:[#allocation14 + $0x38] sm:$0xff] }
 0x64e   :  { %v5178_v29 = vadd.f32 %v8189_v14, %v5104_v58  ;;  %v5200_v40 = vmax.f32 %v5176_v37, 0.0 }
 0x64f   :  { %v5201_v4 = vmax.f32 %v5177_v48, 0.0 }
 0x650   :  { %v5202_v24 = vmax.f32 %v5178_v29, 0.0 }
 0x651   :  { %v5217_v60 = vpack.c.bf16 %v5201_v4, %v5199_v34 }
 0x652   :  { %v5218_v7 = vpack.c.bf16 %v5202_v24, %v5200_v40  ;;  %v5108_v55 = vpop.f32.mrb[40].mxu1  ;;  %v5516_v24 = vld [vmem:[#allocation14 + $0x40] sm:$0xff] }
 0x653   :  { %v5179_v17 = vadd.f32 %v8186_v43, %v5108_v55  ;;  %v5110_v49 = vpop.f32.mrb[41].mxu1  ;;  %v5518_v55 = vld [vmem:[#allocation14 + $0x50] sm:$0xff] }
 0x654   :  { %v5180_v5 = vadd.f32 %v8189_v14, %v5110_v49  ;;  %v5112_v47 = vpop.f32.mrb[42].mxu1  ;;  %5477 = vmatprep.mubr.bf16.mxu0 %v5218_v7 }
 0x655   :  { %v5181_v61 = vadd.f32 %v8186_v43, %v5112_v47  ;;  %v5114_v19 = vpop.f32.mrb[43].mxu1  ;;  %5478 = vmatmul.mubr.bf16.gmra.mrb[60].mxu0 %v5217_v60  ;;  %v5203_v52 = vmax.f32 %v5179_v17, 0.0  ;;  %v5517_v60 = vld [vmem:[#allocation14 + $0x48] sm:$0xff] }
 0x656   :  { %v5182_v21 = vadd.f32 %v8189_v14, %v5114_v19  ;;  %v5204_v42 = vmax.f32 %v5180_v5, 0.0  ;;  %v5519_v5 = vld [vmem:[#allocation14 + $0x58] sm:$0xff] }
 0x657   :  { %v5205_v15 = vmax.f32 %v5181_v61, 0.0 }
 0x658   :  { %v5206_v45 = vmax.f32 %v5182_v21, 0.0 }
 0x659   :  { %v5219_v35 = vpack.c.bf16 %v5205_v15, %v5203_v52 }
 0x65a   :  { %v5220_v18 = vpack.c.bf16 %v5206_v45, %v5204_v42  ;;  %v5118_v16 = vpop.f32.mrb[44].mxu1 }
 0x65b   :  { %v5183_v53 = vadd.f32 %v8186_v43, %v5118_v16  ;;  %v5120_v9 = vpop.f32.mrb[45].mxu1  ;;  %v5521_v16 = vld [vmem:[#allocation14 + $0x68] sm:$0xff] }
 0x65c   :  { %v5184_v59 = vadd.f32 %v8189_v14, %v5120_v9  ;;  %v5122_v57 = vpop.f32.mrb[46].mxu1  ;;  %5487 = vmatprep.mubr.bf16.mxu0 %v5220_v18  ;;  %v5520_v18 = vld [vmem:[#allocation14 + $0x60] sm:$0xff]  ;;  %v5522_v9 = vld [vmem:[#allocation14 + $0x70] sm:$0xff] }
 0x65d   :  { %v5185_v23 = vadd.f32 %v8186_v43, %v5122_v57  ;;  %v5124_v31 = vpop.f32.mrb[47].mxu1  ;;  %5488 = vmatmul.mubr.bf16.gmra.mrb[64].mxu0 %v5219_v35  ;;  %v5207_v28 = vmax.f32 %v5183_v53, 0.0 }
 0x65e   :  { %v5186_v39 = vadd.f32 %v8189_v14, %v5124_v31  ;;  %v5208_v38 = vmax.f32 %v5184_v59, 0.0 }
 0x65f   :  { %v5209_v54 = vmax.f32 %v5185_v23, 0.0  ;;  %v5523_v23 = vld [vmem:[#allocation14 + $0x78] sm:$0xff] }
 0x660   :  { %v5210_v22 = vmax.f32 %v5186_v39, 0.0 }
 0x661   :  { %v5221_v56 = vpack.c.bf16 %v5209_v54, %v5207_v28 }
 0x662   :  { %v5222_v33 = vpack.c.bf16 %v5210_v22, %v5208_v38 }
 0x664   :  { %5497 = vmatprep.mubr.bf16.mxu0 %v5222_v33 }
 0x665   :  { %5498 = vmatmul.mubr.bf16.gmra.mrb[68].mxu0 %v5221_v56 }
 0x710   :  { %v5449_v0 = vpop.f32.mrb[48].mxu0 }
 0x711   :  { %v5451_v36 = vpop.f32.mrb[49].mxu0  ;;  %v5532_v43 = vmul.f32 %v5508_v50, %v5449_v0  ;;  %v5524_v50 = vld [vmem:[#allocation14 + $0x80] sm:$0xff] }
 0x712   :  { %v5453_v27 = vpop.f32.mrb[50].mxu0  ;;  %v5533_v6 = vmul.f32 %v5509_v46, %v5451_v36  ;;  %v5526_v46 = vld [vmem:[#allocation14 + $0x90] sm:$0xff] }
 0x713   :  { %v5534_v20 = vmul.f32 %v5510_v25, %v5453_v27  ;;  %v5455_v62 = vpop.f32.mrb[51].mxu0  ;;  %v5525_v25 = vld [vmem:[#allocation14 + $0x88] sm:$0xff] }
 0x714   :  { %v5535_v14 = vmul.f32 %v5511_v51, %v5455_v62 }
 0x715   :  { %v5556_v8 = vadd.f32 %v5534_v20, %v5532_v43  ;;  %v5527_v43 = vld [vmem:[#allocation14 + $0x98] sm:$0xff] }
 0x716   :  { %v5573_v63 = vadd.f32 %v5535_v14, %v5533_v6 }
 0x718   :  { %v5459_v2 = vpop.f32.mrb[52].mxu0 }
 0x719   :  { %v5536_v1 = vmul.f32 %v5512_v41, %v5459_v2  ;;  %v5461_v12 = vpop.f32.mrb[53].mxu0 }
 0x71a   :  { %v5537_v11 = vmul.f32 %v5513_v13, %v5461_v12  ;;  %v5463_v37 = vpop.f32.mrb[54].mxu0 }
 0x71b   :  { %v5557_v3 = vadd.f32 %v5556_v8, %v5536_v1  ;;  %v5538_v48 = vmul.f32 %v5514_v44, %v5463_v37  ;;  %v5465_v58 = vpop.f32.mrb[55].mxu0  ;;  %v5528_v44 = vld [vmem:[#allocation14 + $0xa0] sm:$0xff]  ;;  %v5529_v1 = vld [vmem:[#allocation14 + $0xa8] sm:$0xff] }
 0x71c   :  { %v5574_v29 = vadd.f32 %v5573_v63, %v5537_v11  ;;  %v5539_v34 = vmul.f32 %v5515_v10, %v5465_v58  ;;  %v5530_v10 = vld [vmem:[#allocation14 + $0xb0] sm:$0xff] }
 0x71d   :  { %v5558_v4 = vadd.f32 %v5557_v3, %v5538_v48  ;;  %v5531_v3 = vld [vmem:[#allocation14 + $0xb8] sm:$0xff] }
 0x71e   :  { %v5575_v40 = vadd.f32 %v5574_v29, %v5539_v34 }
 0x720   :  { %v5469_v7 = vpop.f32.mrb[56].mxu0 }
 0x721   :  { %v5540_v17 = vmul.f32 %v5516_v24, %v5469_v7  ;;  %v5471_v49 = vpop.f32.mrb[57].mxu0 }
 0x722   :  { %v5541_v47 = vmul.f32 %v5517_v60, %v5471_v49  ;;  %v5473_v61 = vpop.f32.mrb[58].mxu0 }
 0x723   :  { %v5559_v19 = vadd.f32 %v5558_v4, %v5540_v17  ;;  %v5542_v21 = vmul.f32 %v5518_v55, %v5473_v61  ;;  %v5475_v52 = vpop.f32.mrb[59].mxu0  ;;  %v5590_v61 = vld [vmem:[%s8246_s12] sm:$0x3]  ;;  %s7038_s12 = smov [#allocation16]  }
 0x724   :  { %v5576_v15 = vadd.f32 %v5575_v40, %v5541_v47  ;;  %v5543_v42 = vmul.f32 %v5519_v5, %v5475_v52  ;;  %s5633_s2 = sshll.u32 %s7038_s12, 4  ;;  %s5634_s2 = int_to_ptr.vmem [resolvable:$true] %s5633_s2 }
 0x725   :  { %v5560_v45 = vadd.f32 %v5559_v19, %v5542_v21  ;;  %v7037_v21 = vmov 1966171168   ;;  %s6993_s26 = scalar_lea.vmem %s5634_s2, 32  ;;  %p6998_p7 = scmp.lt.s32.totalorder %s5634_s2, %s5634_s2 }
 0x726   :  { %v5577_v35 = vadd.f32 %v5576_v15, %v5543_v42  ;;  %v5608_v52 = vunpack.c.l.s4 %v7037_v21  ;;  %p6994_p6 = scmp.ne.s32.totalorder %s5634_s2, %s6993_s26  ;;  %p6999_p8 = scmp.lt.s32.totalorder %s6993_s26, %s6993_s26 }
 0x728   :  { %v5479_v53 = vpop.f32.mrb[60].mxu0  ;;  %p7000_p9 = por %p6999_p8, %p6998_p7 }
 0x729   :  { %v5544_v59 = vmul.f32 %v5520_v18, %v5479_v53  ;;  %v5481_v57 = vpop.f32.mrb[61].mxu0  ;;  %v5609_v53 = vunpack.c.0.s8 %v5608_v52 }
 0x72a   :  { %v5545_v31 = vmul.f32 %v5521_v16, %v5481_v57  ;;  %v5483_v39 = vpop.f32.mrb[62].mxu0  ;;  %v5599_v16 = vrot.slane %v5590_v61, %v7437_v32  ;;  %p7001_p10 = pnand %p7000_p9, %p6994_p6 }
 0x72b   :  { %v5561_v28 = vadd.f32 %v5560_v45, %v5544_v59  ;;  %v5546_v54 = vmul.f32 %v5522_v9, %v5483_v39  ;;  %v5485_v38 = vpop.f32.mrb[63].mxu0 }
 0x72c   :  { %v5578_v22 = vadd.f32 %v5577_v35, %v5545_v31  ;;  %v5547_v56 = vmul.f32 %v5523_v23, %v5485_v38  ;;  %v5595_v35 = vrot.slane %v5590_v61, %v7431_v30  ;;  %v5612_v31 = vsub.s32 %v5609_v53, %v7428_v26 }
 0x72d   :  { %v5562_v33 = vadd.f32 %v5561_v28, %v5546_v54  ;;  %v8265_v54 = vlaneseq }
 0x72e   :  { %v5579_v0 = vadd.f32 %v5578_v22, %v5547_v56 }
 0x72f   :  { %vm5624_vm14 = vcmp.lt.s32.totalorder %v8265_v54, 256 }
 0x730   :  { %v5489_v36 = vpop.f32.mrb[64].mxu0 }
 0x731   :  { %v5548_v51 = vmul.f32 %v5524_v50, %v5489_v36  ;;  %v5491_v27 = vpop.f32.mrb[65].mxu0 }
 0x732   :  { %v5549_v20 = vmul.f32 %v5525_v25, %v5491_v27  ;;  %v5493_v62 = vpop.f32.mrb[66].mxu0 }
 0x733   :  { %v5563_v6 = vadd.f32 %v5562_v33, %v5548_v51  ;;  %v5550_v14 = vmul.f32 %v5526_v46, %v5493_v62  ;;  %v5495_v8 = vpop.f32.mrb[67].mxu0 }
 0x734   :  { %v5580_v63 = vadd.f32 %v5579_v0, %v5549_v20  ;;  %v5551_v41 = vmul.f32 %v5527_v43, %v5495_v8 }
 0x735   :  { %v5564_v13 = vadd.f32 %v5563_v6, %v5550_v14 }
 0x736   :  { %v5581_v2 = vadd.f32 %v5580_v63, %v5551_v41 }
 0x738   :  { %v5499_v12 = vpop.f32.mrb[68].mxu0 }
 0x739   :  { %v5552_v11 = vmul.f32 %v5528_v44, %v5499_v12  ;;  %v5501_v37 = vpop.f32.mrb[69].mxu0 }
 0x73a   :  { %v5553_v48 = vmul.f32 %v5529_v1, %v5501_v37  ;;  %v5503_v58 = vpop.f32.mrb[70].mxu0 }
 0x73b   :  { %v5565_v29 = vadd.f32 %v5564_v13, %v5552_v11  ;;  %v5554_v34 = vmul.f32 %v5530_v10, %v5503_v58  ;;  %v5505_v4 = vpop.f32.mrb[71].mxu0 }
 0x73c   :  { %v5582_v40 = vadd.f32 %v5581_v2, %v5553_v48  ;;  %v5555_v24 = vmul.f32 %v5531_v3, %v5505_v4 }
 0x73d   :  { %v5566_v60 = vadd.f32 %v5565_v29, %v5554_v34 }
 0x73e   :  { %v5583_v7 = vadd.f32 %v5582_v40, %v5555_v24 }
 0x73f   :  { %v5567_v55 = vrot.slane %v5566_v60, 4 }
 0x740   :  { %v5584_v17 = vrot.slane %v5583_v7, 4 }
 0x741   :  { %v5568_v49 = vadd.f32 %v5567_v55, %v5566_v60 }
 0x742   :  { %v5585_v5 = vadd.f32 %v5584_v17, %v5583_v7 }
 0x743   :  { %v5569_v47 = vrot.slane %v5568_v49, 2 }
 0x744   :  { %v5586_v19 = vrot.slane %v5585_v5, 2 }
 0x745   :  { %v5570_v15 = vadd.f32 %v5569_v47, %v5568_v49 }
 0x746   :  { %v5587_v42 = vadd.f32 %v5586_v19, %v5585_v5 }
 0x747   :  { %v5571_v45 = vrot.slane %v5570_v15, 1 }
 0x748   :  { %v5588_v18 = vrot.slane %v5587_v42, 1 }
 0x749   :  { %v5572_v9 = vadd.f32 %v5571_v45, %v5570_v15 }
 0x74a   :  { %v5589_v59 = vadd.f32 %v5588_v18, %v5587_v42 }
 0x74b   :  { %v5602_v57 = vadd.f32 %v5595_v35, %v5572_v9 }
 0x74c   :  { %v5603_v23 = vadd.f32 %v5599_v16, %v5589_v59 }
 0x74e   :  { %v5606_v39 = vcombine.low %v5602_v57, %v5603_v23 }
 0x750   :  { %v5613_v28 = vrot.slane %v5606_v39, %v5612_v31 }
 0x752   :  { %v5620_v38 = vrot.slane %v5613_v28, %v5612_v31 }
 0x754   :  { %5626 = vst.msk [vmem:[#allocation16] sm:$0x3] %vm5624_vm14, %v5620_v38 }
 0x755   :  { %7004 = shalt.err (!%p7001_p10)
}
 0x756   :  { %s7005_s22 = scalar_lea.hbm %s8247_s13, 32 }
 0x757   :  { %p7006_p11 = scmp.ne.s32.totalorder %s8247_s13, %s7005_s22  ;;  %p7009_p12 = scmp.lt.u32.totalorder %s7005_s22, %s8247_s13 }
 0x759   :  { %p7011_p13 = pnand %p7009_p12, %p7006_p11 }
 0x75b   :  { %7014 = shalt.err (!%p7011_p13)
}
 0x75c   :  { %5636 = dma.vmem_to_hbm [thread:$0]  %s5634_s2, 32, %s8247_s13, [#allocation7]  }
 0x75d   :  { %7023 = dma.done.wait [#allocation7], 32  }
 0x75e   :  { %7024 = vsyncadd [#allocation7], 4294967264 }
 0x75f   :  { %5640 = vsyncpa [#allocation6], 1 }
 0x760   :  { %5641 = vsyncpa [#allocation9], 1 }
 0x761   :  { %5642 = vsyncpa [#allocation12], 1 }
 0x762   :  { %5643 = vsyncpa [#allocation15], 1 }
 0x763   :  { %5644 = vsyncpa [#allocation7], 1 }

</bundles_post_ra>
